<compile_context>
chip_gen: v7x
topology: tpu7x:2x2x1
jax: 0.10.0
libtpu: 0.0.40
codegen_flags: <defaults>
</compile_context>

<pallas_src>
import math

import jax
import jax.numpy as jnp
from jax.experimental import pallas as pl
from jax.experimental.pallas import tpu as pltpu

BN_EPS = 1e-5
ACT_DTYPE = jnp.bfloat16          # activations / weights fed to the MXU
VMEM_LIMIT = 32 * 1024 * 1024     # safe on v5e/v6e/v7x; raise on v5e/v6e (128 MiB VMEM)


def _cdiv(a, b):
    return (a + b - 1) // b


def _round_up(x, m):
    return _cdiv(x, m) * m


def _pick_div_tile(dim, candidates):
    for c in candidates:
        if dim % c == 0:
            return c
    return None


def _pick_tm(m, target=512):
    """M tile: exact divisor of M when possible, else minimal-padding tile."""
    m16 = _round_up(m, 16)
    if m16 <= target:
        return m16
    for tm in range(target, 127, -16):
        if m % tm == 0:
            return tm
    nt = _cdiv(m, target)
    return _round_up(_cdiv(m, nt), 16)


def _pick_tm_grid(mg, halo_b, target=512):
    """M tile for the grid conv: must be a multiple of the halo block."""
    target = max(halo_b, (target // halo_b) * halo_b)
    if mg <= target:
        return _round_up(mg, halo_b)
    nt = _cdiv(mg, target)
    return _round_up(_cdiv(mg, nt), halo_b)


# -----------------------------------------------------------------------------
# Fused matmul kernel: out = [relu]((x @ w) * scale + bias [+ residual])
# Used for 1x1 convs, stride-2 im2col convs, and the FC head.
# -----------------------------------------------------------------------------
def _make_matmul_kernel(apply_relu, use_residual):

    def _epilogue(acc, sb_ref, r_ref, o_ref):
        y = acc * sb_ref[0:1, :] + sb_ref[1:2, :]
        if use_residual:
            y = y + r_ref[...].astype(jnp.float32)
        if apply_relu:
            y = jnp.maximum(y, 0.0)
        o_ref[...] = y.astype(o_ref.dtype)

    if use_residual:
        def kernel(x_ref, w_ref, sb_ref, r_ref, o_ref, acc_ref):
            k = pl.program_id(2)

            @pl.when(k == 0)
            def _():
                acc_ref[...] = jnp.zeros_like(acc_ref)

            acc_ref[...] += jnp.dot(x_ref[...], w_ref[...],
                                    preferred_element_type=jnp.float32)

            @pl.when(k == pl.num_programs(2) - 1)
            def _():
                _epilogue(acc_ref[...], sb_ref, r_ref, o_ref)
    else:
        def kernel(x_ref, w_ref, sb_ref, o_ref, acc_ref):
            k = pl.program_id(2)

            @pl.when(k == 0)
            def _():
                acc_ref[...] = jnp.zeros_like(acc_ref)

            acc_ref[...] += jnp.dot(x_ref[...], w_ref[...],
                                    preferred_element_type=jnp.float32)

            @pl.when(k == pl.num_programs(2) - 1)
            def _():
                _epilogue(acc_ref[...], sb_ref, None, o_ref)

    return kernel


def fused_matmul(x, w, sb, residual=None, relu=False, out_dtype=ACT_DTYPE):
    """x: (M, K) bf16, w: (K, N) bf16, sb: (2, N) f32 -> (M, N)."""
    M, K = x.shape
    _, N = w.shape

    TK = _pick_div_tile(K, (512, 256, 128)) or K
    TN = _pick_div_tile(N, (256, 128)) or N
    TM = _pick_tm(M, target=512)
    Mp = _round_up(M, TM)

    xp = x.astype(ACT_DTYPE)
    if Mp != M:
        xp = jnp.pad(xp, ((0, Mp - M), (0, 0)))

    args = [xp, w, sb]
    in_specs = [
        pl.BlockSpec((TM, TK), lambda i, j, k: (i, k)),
        pl.BlockSpec((TK, TN), lambda i, j, k: (k, j)),
        pl.BlockSpec((2, TN), lambda i, j, k: (0, j)),
    ]
    use_res = residual is not None
    if use_res:
        rp = residual.astype(ACT_DTYPE)
        if Mp != M:
            rp = jnp.pad(rp, ((0, Mp - M), (0, 0)))
        args.append(rp)
        in_specs.append(pl.BlockSpec((TM, TN), lambda i, j, k: (i, j)))

    out = pl.pallas_call(
        _make_matmul_kernel(relu, use_res),
        out_shape=jax.ShapeDtypeStruct((Mp, N), out_dtype),
        grid_spec=pltpu.PrefetchScalarGridSpec(
            num_scalar_prefetch=0,
            grid=(Mp // TM, N // TN, K // TK),
            in_specs=in_specs,
            out_specs=pl.BlockSpec((TM, TN), lambda i, j, k: (i, j)),
            scratch_shapes=[pltpu.VMEM((TM, TN), jnp.float32)],
        ),
        compiler_params=pltpu.CompilerParams(
            dimension_semantics=("parallel", "parallel", "arbitrary"),
            vmem_limit_bytes=VMEM_LIMIT),
    )(*args)
    return out[:M] if Mp != M else out


# -----------------------------------------------------------------------------
# "Grid conv": 3x3 stride-1 pad-1 conv without HBM im2col.
# Activation lives on the zero-padded (Hp, Wp) grid, flattened; each tap is a
# constant row offset into the flattened array, handled via a halo'd VMEM slab.
# -----------------------------------------------------------------------------
def _make_grid_conv_kernel(tm, halo_b, offsets, relu):
    def kernel(xc_ref, xn_ref, w_ref, sb_ref, m_ref, o_ref, slab_ref):
        # Build the halo'd slab: rows [i*TM, i*TM + TM + halo_b) of the input.
        slab_ref[0:tm, :] = xc_ref[...]
        slab_ref[tm:tm + halo_b, :] = xn_ref[...]

        acc = jnp.zeros(o_ref.shape, jnp.float32)
        for t, off in enumerate(offsets):        # static unroll over 9 taps
            acc = acc + jnp.dot(slab_ref[off:off + tm, :], w_ref[t],
                                preferred_element_type=jnp.float32)

        y = acc * sb_ref[0:1, :] + sb_ref[1:2, :]
        if relu:
            y = jnp.maximum(y, 0.0)
        # Border/padding mask keeps the padded-grid output zero outside the image.
        o_ref[...] = (y * m_ref[...]).astype(o_ref.dtype)

    return kernel


def conv3x3_s1_grid(x, prep, relu):
    """3x3 conv, stride 1, padding 1, + BN affine (+ReLU), NHWC bf16."""
    B, H, W, cin = x.shape
    cout = prep['cout']
    Hp, Wp = H + 2, W + 2
    Mg = B * Hp * Wp
    lead = Wp + 1                       # shift so tap offsets are non-negative
    halo = 2 * Wp + 2                   # max tap offset
    halo_b = _round_up(halo, 16)
    TM = _pick_tm_grid(Mg, halo_b, target=512)
    nM = _cdiv(Mg, TM)
    Mp = nM * TM
    N = cout
    TN = _pick_div_tile(N, (256, 128)) or N

    xg = jnp.pad(x.astype(ACT_DTYPE), ((0, 0), (1, 1), (1, 1), (0, 0)))
    xf = xg.reshape(Mg, cin)
    xlead = jnp.pad(xf, ((lead, Mp + halo_b - lead - Mg), (0, 0)))

    # 0/1 interior mask over the padded grid (static shapes -> constant-folded).
    idx = jnp.arange(Mp, dtype=jnp.int32)
    r = (idx // Wp) % Hp
    c = idx % Wp
    interior = ((idx < Mg) & (r >= 1) & (r <= Hp - 2) &
                (c >= 1) & (c <= Wp - 2))
    mask = interior.astype(jnp.float32).reshape(Mp, 1)

    offsets = [dy * Wp + dx for dy in range(3) for dx in range(3)]
    blocks_per_tm = TM // halo_b

    out = pl.pallas_call(
        _make_grid_conv_kernel(TM, halo_b, offsets, relu),
        out_shape=jax.ShapeDtypeStruct((Mp, N), ACT_DTYPE),
        grid_spec=pltpu.PrefetchScalarGridSpec(
            num_scalar_prefetch=0,
            grid=(nM, N // TN),
            in_specs=[
                pl.BlockSpec((TM, cin), lambda i, j: (i, 0)),
                pl.BlockSpec((halo_b, cin),
                             lambda i, j: ((i + 1) * blocks_per_tm, 0)),
                pl.BlockSpec((9, cin, TN), lambda i, j: (0, 0, j)),
                pl.BlockSpec((2, TN), lambda i, j: (0, j)),
                pl.BlockSpec((TM, 1), lambda i, j: (i, 0)),
            ],
            out_specs=pl.BlockSpec((TM, TN), lambda i, j: (i, j)),
            scratch_shapes=[pltpu.VMEM((TM + halo_b, cin), ACT_DTYPE)],
        ),
        compiler_params=pltpu.CompilerParams(
            dimension_semantics=("parallel", "parallel"),
            vmem_limit_bytes=VMEM_LIMIT),
    )(xlead, xlead, prep['wtap'], prep['sb'], mask)

    yg = out[:Mg].reshape(B, Hp, Wp, cout)
    return yg[:, 1:1 + H, 1:1 + W, :]


# -----------------------------------------------------------------------------
# MaxPool 3x3 / stride 2 / pad 1 via 4 even/odd phase tensors (no 9x stack).
# -----------------------------------------------------------------------------
def _maxpool_kernel(ee_ref, eo_ref, oe_ref, oo_ref, o_ref):
    ee = ee_ref[0]            # (Ho+1, Wo+1, C)
    eo = eo_ref[0]            # (Ho+1, Wo,   C)
    oe = oe_ref[0]            # (Ho,   Wo+1, C)
    oo = oo_ref[0]            # (Ho,   Wo,   C)
    ho, wo = oo.shape[0], oo.shape[1]
    m = oo
    m = jnp.maximum(m, ee[0:ho, 0:wo])
    m = jnp.maximum(m, ee[0:ho, 1:wo + 1])
    m = jnp.maximum(m, ee[1:ho + 1, 0:wo])
    m = jnp.maximum(m, ee[1:ho + 1, 1:wo + 1])
    m = jnp.maximum(m, eo[0:ho, :])
    m = jnp.maximum(m, eo[1:ho + 1, :])
    m = jnp.maximum(m, oe[:, 0:wo])
    m = jnp.maximum(m, oe[:, 1:wo + 1])
    o_ref[0] = m


def maxpool_3x3_s2_p1(x):
    """nn.MaxPool2d(kernel_size=3, stride=2, padding=1) on NHWC bf16 input."""
    B, H, W, C = x.shape
    Ho = (H - 1) // 2 + 1
    Wo = (W - 1) // 2 + 1
    xp = jnp.pad(x, ((0, 0), (1, 1), (1, 1), (0, 0)),
                 constant_values=float("-inf"))
    # Even/odd row x col phases (one activation pass total).
    ee = xp[:, 0:2 * Ho + 1:2, 0:2 * Wo + 1:2, :]
    eo = xp[:, 0:2 * Ho + 1:2, 1:2 * Wo:2, :]
    oe = xp[:, 1:2 * Ho:2, 0:2 * Wo + 1:2, :]
    oo = xp[:, 1:2 * Ho:2, 1:2 * Wo:2, :]

    return pl.pallas_call(
        _maxpool_kernel,
        out_shape=jax.ShapeDtypeStruct((B, Ho, Wo, C), x.dtype),
        grid_spec=pltpu.PrefetchScalarGridSpec(
            num_scalar_prefetch=0,
            grid=(B,),
            in_specs=[
                pl.BlockSpec((1, Ho + 1, Wo + 1, C), lambda b: (b, 0, 0, 0)),
                pl.BlockSpec((1, Ho + 1, Wo, C), lambda b: (b, 0, 0, 0)),
                pl.BlockSpec((1, Ho, Wo + 1, C), lambda b: (b, 0, 0, 0)),
                pl.BlockSpec((1, Ho, Wo, C), lambda b: (b, 0, 0, 0)),
            ],
            out_specs=pl.BlockSpec((1, Ho, Wo, C), lambda b: (b, 0, 0, 0)),
        ),
        compiler_params=pltpu.CompilerParams(
            dimension_semantics=("parallel",),
            vmem_limit_bytes=VMEM_LIMIT),
    )(ee, eo, oe, oo)


# -----------------------------------------------------------------------------
# Conv dispatcher: grid conv for 3x3/s1, im2col + fused matmul otherwise.
# -----------------------------------------------------------------------------
def _im2col(x, kh, kw, stride, padding):
    """NHWC -> (B*Ho*Wo, kh*kw*C) patches (only for 1x1 and stride-2 convs)."""
    B, H, W, C = x.shape
    if kh == 1 and kw == 1 and padding == 0:
        if stride > 1:
            x = x[:, ::stride, ::stride, :]
        B, Ho, Wo, C = x.shape
        return x.reshape(B * Ho * Wo, C), (B, Ho, Wo)
    xp = jnp.pad(x, ((0, 0), (padding, padding), (padding, padding), (0, 0)))
    Ho = (H + 2 * padding - kh) // stride + 1
    Wo = (W + 2 * padding - kw) // stride + 1
    cols = []
    for dy in range(kh):
        for dx in range(kw):
            cols.append(xp[:, dy:dy + (Ho - 1) * stride + 1:stride,
                           dx:dx + (Wo - 1) * stride + 1:stride, :])
    patches = jnp.concatenate(cols, axis=-1)
    return patches.reshape(B * Ho * Wo, kh * kw * C), (B, Ho, Wo)


def conv_bn(x, prep, stride, padding, relu, residual=None):
    """Conv2d(+bias) -> BatchNorm2d(eval) [-> +residual] [-> ReLU], NHWC bf16."""
    kh, kw = prep['kh'], prep['kw']
    if kh == 3 and kw == 3 and stride == 1 and padding == 1 and residual is None:
        return conv3x3_s1_grid(x, prep, relu)
    patches, (B, Ho, Wo) = _im2col(x, kh, kw, stride, padding)
    res2d = None
    if residual is not None:
        res2d = residual.reshape(B * Ho * Wo, prep['cout'])
    out2d = fused_matmul(patches, prep['wmat'], prep['sb'],
                         residual=res2d, relu=relu)
    return out2d.reshape(B, Ho, Wo, prep['cout'])


# -----------------------------------------------------------------------------
# ResidBlock / ResNet50 forward
# -----------------------------------------------------------------------------
def resid_block(x, bp, stride):
    identity = x
    out = conv_bn(x, bp['l1'], stride=1, padding=0, relu=True)           # 1x1
    out = conv_bn(out, bp['l2'], stride=stride, padding=1, relu=True)    # 3x3
    if 'skip' in bp:
        skip = conv_bn(identity, bp['skip'], stride=stride, padding=0, relu=False)
    else:
        skip = identity
    # layer3 (1x1 conv + BN); residual add and final ReLU fused in the epilogue.
    return conv_bn(out, bp['l3'], stride=1, padding=0, relu=True, residual=skip)


def run_stage(x, blocks, first_stride):
    for i, bp in enumerate(blocks):
        x = resid_block(x, bp, stride=first_stride if i == 0 else 1)
    return x


def resnet50_forward(x_nchw, prep):
    x = jnp.transpose(x_nchw, (0, 2, 3, 1)).astype(ACT_DTYPE)  # NCHW -> NHWC bf16
    # layer1: Conv 7x7 s2 p3 + BN + ReLU + MaxPool 3x3 s2 p1
    x = conv_bn(x, prep['stem'], stride=2, padding=3, relu=True)
    x = maxpool_3x3_s2_p1(x)
    # NOTE: reference forward feeds the SAME post-stem tensor to all 4 stages.
    C1 = run_stage(x, prep['stage1'], first_stride=1)
    C2 = run_stage(x, prep['stage2'], first_stride=2)
    C3 = run_stage(x, prep['stage3'], first_stride=2)
    C4 = run_stage(x, prep['stage4'], first_stride=2)
    # AdaptiveAvgPool2d((1,1)): spatial mean, then a small fused matmul FC.
    pooled = jnp.mean(C4.astype(jnp.float32), axis=(1, 2))              # (B, C)
    out = fused_matmul(pooled.astype(ACT_DTYPE), prep['fc']['wmat'],
                       prep['fc']['sb'], relu=False, out_dtype=jnp.float32)
    out = out[:, :prep['fc']['nout']]

    to_nchw = lambda t: jnp.transpose(t, (0, 3, 1, 2)).astype(jnp.float32)
    return to_nchw(C1), to_nchw(C2), to_nchw(C3), to_nchw(C4), out


# -----------------------------------------------------------------------------
# One-time parameter preparation (hoisted out of the forward pass):
# BN folding, weight transpose / per-tap layout, bf16 cast.  No channel padding.
# -----------------------------------------------------------------------------
def prepare_conv_bn(p):
    cout, cin, kh, kw = p['w'].shape
    wkh = jnp.transpose(p['w'], (2, 3, 1, 0))                 # (kh, kw, cin, cout)
    wmat = wkh.reshape(kh * kw * cin, cout).astype(ACT_DTYPE)
    scale = p['gamma'] / jnp.sqrt(p['var'] + BN_EPS)
    bias = p['beta'] + scale * (p['b'] - p['mean'])
    sb = jnp.stack([scale, bias], axis=0).astype(jnp.float32)  # (2, cout)
    prep = {'wmat': wmat, 'sb': sb, 'cout': cout, 'kh': kh, 'kw': kw}
    if kh == 3 and kw == 3:
        prep['wtap'] = wkh.reshape(9, cin, cout).astype(ACT_DTYPE)
    return prep


def prepare_block(bp):
    out = {'l1': prepare_conv_bn(bp['l1']),
           'l2': prepare_conv_bn(bp['l2']),
           'l3': prepare_conv_bn(bp['l3'])}
    if 'skip' in bp:
        out['skip'] = prepare_conv_bn(bp['skip'])
    return out


def prepare_params(params):
    prep = {'stem': prepare_conv_bn(params['stem'])}
    for s in ('stage1', 'stage2', 'stage3', 'stage4'):
        prep[s] = [prepare_block(bp) for bp in params[s]]
    wfc, bfc = params['fc']['w'], params['fc']['b']
    ncls, cin = wfc.shape
    wmat = wfc.T.astype(ACT_DTYPE)                             # (cin, ncls)
    sb = jnp.stack([jnp.ones((ncls,), jnp.float32),
                    bfc.astype(jnp.float32)], axis=0)          # identity scale + bias
    prep['fc'] = {'wmat': wmat, 'sb': sb, 'nout': ncls}
    return prep


# -----------------------------------------------------------------------------
# Deterministic parameter construction (synthetic, no checkpoint load)
# -----------------------------------------------------------------------------
def init_conv_bn(key, cin, cout, ksize):
    k1, k2, k3, k4, k5, k6 = jax.random.split(key, 6)
    fan_in = cin * ksize * ksize
    return {
        'w': jax.random.normal(k1, (cout, cin, ksize, ksize), jnp.float32)
             / math.sqrt(fan_in),
        'b': 0.05 * jax.random.normal(k2, (cout,), jnp.float32),
        'gamma': 1.0 + 0.1 * jax.random.normal(k3, (cout,), jnp.float32),
        'beta': 0.1 * jax.random.normal(k4, (cout,), jnp.float32),
        'mean': 0.1 * jax.random.normal(k5, (cout,), jnp.float32),
        'var': jax.random.uniform(k6, (cout,), jnp.float32, 0.5, 1.5),
    }


def init_block(key, cin, cout, expansion, skip):
    ks = jax.random.split(key, 4)
    p = {
        'l1': init_conv_bn(ks[0], cin, cout, 1),
        'l2': init_conv_bn(ks[1], cout, cout, 3),
        'l3': init_conv_bn(ks[2], cout, cout * expansion, 1),
    }
    if skip:
        p['skip'] = init_conv_bn(ks[3], cin, cout * expansion, 1)
    return p


def init_stage(key, cin, cout, expansion, num_blocks):
    keys = jax.random.split(key, num_blocks)
    blocks = []
    for i in range(num_blocks):
        if i == 0:
            blocks.append(init_block(keys[i], cin, cout, expansion, True))
        else:
            blocks.append(init_block(keys[i], cout * expansion, cout, expansion, False))
    return blocks


def init_resnet50_params(key, cfg):
    e = cfg['expansion']
    keys = jax.random.split(key, 6)
    params = {
        'stem': init_conv_bn(keys[0], cfg['in_channels'], cfg['layer_filter'], 7),
        'stage1': init_stage(keys[1], cfg['layer_filter'], cfg['conv1_filters'],
                             e, cfg['num_blocks_1']),
        'stage2': init_stage(keys[2], cfg['conv1_filters'] * e, cfg['conv2_filters'],
                             e, cfg['num_blocks_2']),
        'stage3': init_stage(keys[3], cfg['conv2_filters'] * e, cfg['conv3_filters'],
                             e, cfg['num_blocks_3']),
        'stage4': init_stage(keys[4], cfg['conv3_filters'] * e, cfg['conv4_filters'],
                             e, cfg['num_blocks_4']),
    }
    kf1, kf2 = jax.random.split(keys[5])
    fin = cfg['conv4_filters'] * e
    params['fc'] = {
        'w': jax.random.normal(kf1, (cfg['num_classes'], fin), jnp.float32)
             / math.sqrt(fin),
        'b': 0.05 * jax.random.normal(kf2, (cfg['num_classes'],), jnp.float32),
    }
    return params


if __name__ == "__main__":
    # Small, self-consistent config (the reference forward requires
    # conv{1,2,3}_filters * expansion == layer_filter since every stage
    # consumes the same post-stem tensor).
    cfg = dict(in_channels=4, num_classes=10, layer_filter=16, expansion=4,
               num_blocks_1=2, num_blocks_2=1, num_blocks_3=1, num_blocks_4=1,
               conv1_filters=4, conv2_filters=4, conv3_filters=4, conv4_filters=8)

    key = jax.random.PRNGKey(0)
    kx, kp = jax.random.split(key)
    x = jax.random.normal(kx, (2, cfg['in_channels'], 16, 16), jnp.float32)

    params = init_resnet50_params(kp, cfg)
    prep = prepare_params(params)          # one-time weight prep (outside forward)

    fwd = jax.jit(lambda inp: resnet50_forward(inp, prep))
    C1, C2, C3, C4, out = fwd(x)
    jax.block_until_ready((C1, C2, C3, C4, out))

    assert C1.shape == (2, cfg['conv1_filters'] * cfg['expansion'], 4, 4)
    assert C2.shape == (2, cfg['conv2_filters'] * cfg['expansion'], 2, 2)
    assert C3.shape == (2, cfg['conv3_filters'] * cfg['expansion'], 2, 2)
    assert C4.shape == (2, cfg['conv4_filters'] * cfg['expansion'], 2, 2)
    assert out.shape == (2, cfg['num_classes'])
    assert bool(jnp.all(jnp.isfinite(out)))
    print("KERNEL_OK")
</pallas_src>

<mosaic_0001>
module attributes {stable_mosaic.version = 11 : i64} {
  func.func @kernel(%arg0: i32, %arg1: i32, %arg2: i32, %arg3: memref<128x196xbf16, #tpu.memory_space<vmem>>, %arg4: memref<196x16xbf16, #tpu.memory_space<vmem>>, %arg5: memref<2x16xf32, #tpu.memory_space<vmem>>, %arg6: memref<128x16xbf16, #tpu.memory_space<vmem>>, %arg7: memref<128x16xf32, #tpu.memory_space<vmem>>) attributes {dimension_semantics = [#tpu.dimension_semantics<parallel>, #tpu.dimension_semantics<parallel>, #tpu.dimension_semantics<arbitrary>], iteration_bounds = array<i64: 1, 1, 1>, scalar_prefetch = 0 : i64, scratch_operands = 1 : i64, tpu.core_type = #tpu.core_type<tc>, window_params = [{transform_indices = @transform_0, window_bounds = array<i64: 128, 196>}, {transform_indices = @transform_1, window_bounds = array<i64: 196, 16>}, {transform_indices = @transform_2, window_bounds = array<i64: 2, 16>}, {transform_indices = @transform_3, window_bounds = array<i64: 128, 16>}]} {
    %c0_i32 = arith.constant 0 : i32
    %0 = arith.cmpi eq, %arg2, %c0_i32 : i32
    %1 = arith.extui %0 : i1 to i32
    %c0_i32_0 = arith.constant 0 : i32
    %2 = arith.cmpi ne, %1, %c0_i32_0 : i32
    scf.if %2 {
      %cst_10 = arith.constant 0.000000e+00 : f32
      %12 = vector.broadcast %cst_10 : f32 to vector<128x16xf32>
      %c0_11 = arith.constant 0 : index
      %c0_12 = arith.constant 0 : index
      %13 = vector.load %arg7[%c0_11, %c0_12] : memref<128x16xf32, #tpu.memory_space<vmem>>, vector<128x16xf32>
      tpu.vector_store %arg7[%c0_11, %c0_12], %12 {strides = array<i32>} : memref<128x16xf32, #tpu.memory_space<vmem>>, vector<128x16xf32>,
    } else {
    }
    %c0 = arith.constant 0 : index
    %c0_1 = arith.constant 0 : index
    %3 = vector.load %arg7[%c0, %c0_1] : memref<128x16xf32, #tpu.memory_space<vmem>>, vector<128x16xf32>
    %c0_2 = arith.constant 0 : index
    %c0_3 = arith.constant 0 : index
    %4 = vector.load %arg3[%c0_2, %c0_3] : memref<128x196xbf16, #tpu.memory_space<vmem>>, vector<128x196xbf16>
    %c0_4 = arith.constant 0 : index
    %c0_5 = arith.constant 0 : index
    %5 = vector.load %arg4[%c0_4, %c0_5] : memref<196x16xbf16, #tpu.memory_space<vmem>>, vector<196x16xbf16>
    %cst = arith.constant dense<0.000000e+00> : vector<128x16xf32>
    %6 = tpu.matmul %4, %5, %cst {dimension_numbers = #tpu.dot_dimension_numbers<[1], [0], [0], [1], [0, 0, 1, 1], [], []>} : vector<128x196xbf16>, vector<196x16xbf16>, vector<128x16xf32> -> vector<128x16xf32>
    %7 = arith.addf %3, %6 : vector<128x16xf32>
    %c0_6 = arith.constant 0 : index
    %c0_7 = arith.constant 0 : index
    %8 = vector.load %arg7[%c0_6, %c0_7] : memref<128x16xf32, #tpu.memory_space<vmem>>, vector<128x16xf32>
    tpu.vector_store %arg7[%c0_6, %c0_7], %7 {strides = array<i32>} : memref<128x16xf32, #tpu.memory_space<vmem>>, vector<128x16xf32>,
    %c0_i32_8 = arith.constant 0 : i32
    %9 = arith.cmpi eq, %arg2, %c0_i32_8 : i32
    %10 = arith.extui %9 : i1 to i32
    %c0_i32_9 = arith.constant 0 : i32
    %11 = arith.cmpi ne, %10, %c0_i32_9 : i32
    scf.if %11 {
      %c0_10 = arith.constant 0 : index
      %c0_11 = arith.constant 0 : index
      %12 = vector.load %arg7[%c0_10, %c0_11] : memref<128x16xf32, #tpu.memory_space<vmem>>, vector<128x16xf32>
      %c0_12 = arith.constant 0 : index
      %c0_13 = arith.constant 0 : index
      %13 = vector.load %arg5[%c0_12, %c0_13] : memref<2x16xf32, #tpu.memory_space<vmem>>, vector<1x16xf32>
      %14 = vector.broadcast %13 : vector<1x16xf32> to vector<128x16xf32>
      %15 = arith.mulf %12, %14 : vector<128x16xf32>
      %c1 = arith.constant 1 : index
      %c0_14 = arith.constant 0 : index
      %16 = vector.load %arg5[%c1, %c0_14] : memref<2x16xf32, #tpu.memory_space<vmem>>, vector<1x16xf32>
      %17 = vector.broadcast %16 : vector<1x16xf32> to vector<128x16xf32>
      %18 = arith.addf %15, %17 : vector<128x16xf32>
      %cst_15 = arith.constant 0.000000e+00 : f32
      %19 = vector.broadcast %cst_15 : f32 to vector<128x16xf32>
      %20 = arith.maximumf %18, %19 : vector<128x16xf32>
      %21 = arith.truncf %20 : vector<128x16xf32> to vector<128x16xbf16>
      %c0_16 = arith.constant 0 : index
      %c0_17 = arith.constant 0 : index
      %22 = vector.load %arg6[%c0_16, %c0_17] : memref<128x16xbf16, #tpu.memory_space<vmem>>, vector<128x16xbf16>
      tpu.vector_store %arg6[%c0_16, %c0_17], %21 {strides = array<i32>} : memref<128x16xbf16, #tpu.memory_space<vmem>>, vector<128x16xbf16>,
    } else {
    }
    return
  }
  func.func @transform_0(%arg0: i32, %arg1: i32, %arg2: i32) -> (i32, i32) {
    %c0_i32 = arith.constant 0 : i32
    return %arg0, %arg2 : i32, i32
  }
  func.func @transform_1(%arg0: i32, %arg1: i32, %arg2: i32) -> (i32, i32) {
    %c0_i32 = arith.constant 0 : i32
    return %arg2, %arg1 : i32, i32
  }
  func.func @transform_2(%arg0: i32, %arg1: i32, %arg2: i32) -> (i32, i32) {
    %c0_i32 = arith.constant 0 : i32
    %c0_i32_0 = arith.constant 0 : i32
    return %c0_i32, %arg1 : i32, i32
  }
  func.func @transform_3(%arg0: i32, %arg1: i32, %arg2: i32) -> (i32, i32) {
    %c0_i32 = arith.constant 0 : i32
    return %arg0, %arg1 : i32, i32
  }
}

module attributes {stable_mosaic.version = 11 : i64} {
  func.func @_maxpool_kernel(%arg0: i32, %arg1: memref<1x5x5x16xbf16, #tpu.memory_space<vmem>>, %arg2: memref<1x5x4x16xbf16, #tpu.memory_space<vmem>>, %arg3: memref<1x4x5x16xbf16, #tpu.memory_space<vmem>>, %arg4: memref<1x4x4x16xbf16, #tpu.memory_space<vmem>>, %arg5: memref<1x4x4x16xbf16, #tpu.memory_space<vmem>>) attributes {dimension_semantics = [#tpu.dimension_semantics<parallel>], iteration_bounds = array<i64: 2>, scalar_prefetch = 0 : i64, scratch_operands = 0 : i64, tpu.core_type = #tpu.core_type<tc>, window_params = [{transform_indices = @transform_0, window_bounds = array<i64: 1, 5, 5, 16>}, {transform_indices = @transform_1, window_bounds = array<i64: 1, 5, 4, 16>}, {transform_indices = @transform_2, window_bounds = array<i64: 1, 4, 5, 16>}, {transform_indices = @transform_3, window_bounds = array<i64: 1, 4, 4, 16>}, {transform_indices = @transform_4, window_bounds = array<i64: 1, 4, 4, 16>}]} {
    %c0 = arith.constant 0 : index
    %c0_0 = arith.constant 0 : index
    %c0_1 = arith.constant 0 : index
    %c0_2 = arith.constant 0 : index
    %0 = vector.load %arg1[%c0, %c0_0, %c0_1, %c0_2] : memref<1x5x5x16xbf16, #tpu.memory_space<vmem>>, vector<1x5x5x16xbf16>
    %1 = vector.shape_cast %0 : vector<1x5x5x16xbf16> to vector<5x5x16xbf16>
    %c0_3 = arith.constant 0 : index
    %c0_4 = arith.constant 0 : index
    %c0_5 = arith.constant 0 : index
    %c0_6 = arith.constant 0 : index
    %2 = vector.load %arg2[%c0_3, %c0_4, %c0_5, %c0_6] : memref<1x5x4x16xbf16, #tpu.memory_space<vmem>>, vector<1x5x4x16xbf16>
    %3 = vector.shape_cast %2 : vector<1x5x4x16xbf16> to vector<5x4x16xbf16>
    %c0_7 = arith.constant 0 : index
    %c0_8 = arith.constant 0 : index
    %c0_9 = arith.constant 0 : index
    %c0_10 = arith.constant 0 : index
    %4 = vector.load %arg3[%c0_7, %c0_8, %c0_9, %c0_10] : memref<1x4x5x16xbf16, #tpu.memory_space<vmem>>, vector<1x4x5x16xbf16>
    %5 = vector.shape_cast %4 : vector<1x4x5x16xbf16> to vector<4x5x16xbf16>
    %c0_11 = arith.constant 0 : index
    %c0_12 = arith.constant 0 : index
    %c0_13 = arith.constant 0 : index
    %c0_14 = arith.constant 0 : index
    %6 = vector.load %arg4[%c0_11, %c0_12, %c0_13, %c0_14] : memref<1x4x4x16xbf16, #tpu.memory_space<vmem>>, vector<1x4x4x16xbf16>
    %7 = vector.shape_cast %6 : vector<1x4x4x16xbf16> to vector<4x4x16xbf16>
    %8 = vector.extract_strided_slice %1 {offsets = [0, 0, 0], sizes = [4, 4, 16], strides = [1, 1, 1]} : vector<5x5x16xbf16> to vector<4x4x16xbf16>
    %9 = arith.maximumf %7, %8 : vector<4x4x16xbf16>
    %10 = vector.extract_strided_slice %1 {offsets = [0, 1, 0], sizes = [4, 4, 16], strides = [1, 1, 1]} : vector<5x5x16xbf16> to vector<4x4x16xbf16>
    %11 = arith.maximumf %9, %10 : vector<4x4x16xbf16>
    %12 = vector.extract_strided_slice %1 {offsets = [1, 0, 0], sizes = [4, 4, 16], strides = [1, 1, 1]} : vector<5x5x16xbf16> to vector<4x4x16xbf16>
    %13 = arith.maximumf %11, %12 : vector<4x4x16xbf16>
    %14 = vector.extract_strided_slice %1 {offsets = [1, 1, 0], sizes = [4, 4, 16], strides = [1, 1, 1]} : vector<5x5x16xbf16> to vector<4x4x16xbf16>
    %15 = arith.maximumf %13, %14 : vector<4x4x16xbf16>
    %16 = vector.extract_strided_slice %3 {offsets = [0, 0, 0], sizes = [4, 4, 16], strides = [1, 1, 1]} : vector<5x4x16xbf16> to vector<4x4x16xbf16>
    %17 = arith.maximumf %15, %16 : vector<4x4x16xbf16>
    %18 = vector.extract_strided_slice %3 {offsets = [1, 0, 0], sizes = [4, 4, 16], strides = [1, 1, 1]} : vector<5x4x16xbf16> to vector<4x4x16xbf16>
    %19 = arith.maximumf %17, %18 : vector<4x4x16xbf16>
    %20 = vector.extract_strided_slice %5 {offsets = [0, 0, 0], sizes = [4, 4, 16], strides = [1, 1, 1]} : vector<4x5x16xbf16> to vector<4x4x16xbf16>
    %21 = arith.maximumf %19, %20 : vector<4x4x16xbf16>
    %22 = vector.extract_strided_slice %5 {offsets = [0, 1, 0], sizes = [4, 4, 16], strides = [1, 1, 1]} : vector<4x5x16xbf16> to vector<4x4x16xbf16>
    %23 = arith.maximumf %21, %22 : vector<4x4x16xbf16>
    %c0_15 = arith.constant 0 : index
    %c0_16 = arith.constant 0 : index
    %c0_17 = arith.constant 0 : index
    %c0_18 = arith.constant 0 : index
    %24 = vector.load %arg5[%c0_15, %c0_16, %c0_17, %c0_18] : memref<1x4x4x16xbf16, #tpu.memory_space<vmem>>, vector<1x4x4x16xbf16>
    %25 = vector.shape_cast %24 : vector<1x4x4x16xbf16> to vector<4x4x16xbf16>
    %26 = vector.shape_cast %23 : vector<4x4x16xbf16> to vector<1x4x4x16xbf16>
    tpu.vector_store %arg5[%c0_15, %c0_16, %c0_17, %c0_18], %26 {strides = array<i32>} : memref<1x4x4x16xbf16, #tpu.memory_space<vmem>>, vector<1x4x4x16xbf16>,
    return
  }
  func.func @transform_0(%arg0: i32) -> (i32, i32, i32, i32) {
    %c0_i32 = arith.constant 0 : i32
    %c0_i32_0 = arith.constant 0 : i32
    %c0_i32_1 = arith.constant 0 : i32
    %c0_i32_2 = arith.constant 0 : i32
    return %arg0, %c0_i32, %c0_i32_0, %c0_i32_1 : i32, i32, i32, i32
  }
  func.func @transform_1(%arg0: i32) -> (i32, i32, i32, i32) {
    %c0_i32 = arith.constant 0 : i32
    %c0_i32_0 = arith.constant 0 : i32
    %c0_i32_1 = arith.constant 0 : i32
    %c0_i32_2 = arith.constant 0 : i32
    return %arg0, %c0_i32, %c0_i32_0, %c0_i32_1 : i32, i32, i32, i32
  }
  func.func @transform_2(%arg0: i32) -> (i32, i32, i32, i32) {
    %c0_i32 = arith.constant 0 : i32
    %c0_i32_0 = arith.constant 0 : i32
    %c0_i32_1 = arith.constant 0 : i32
    %c0_i32_2 = arith.constant 0 : i32
    return %arg0, %c0_i32, %c0_i32_0, %c0_i32_1 : i32, i32, i32, i32
  }
  func.func @transform_3(%arg0: i32) -> (i32, i32, i32, i32) {
    %c0_i32 = arith.constant 0 : i32
    %c0_i32_0 = arith.constant 0 : i32
    %c0_i32_1 = arith.constant 0 : i32
    %c0_i32_2 = arith.constant 0 : i32
    return %arg0, %c0_i32, %c0_i32_0, %c0_i32_1 : i32, i32, i32, i32
  }
  func.func @transform_4(%arg0: i32) -> (i32, i32, i32, i32) {
    %c0_i32 = arith.constant 0 : i32
    %c0_i32_0 = arith.constant 0 : i32
    %c0_i32_1 = arith.constant 0 : i32
    %c0_i32_2 = arith.constant 0 : i32
    return %arg0, %c0_i32, %c0_i32_0, %c0_i32_1 : i32, i32, i32, i32
  }
}

module attributes {stable_mosaic.version = 11 : i64} {
  func.func @kernel(%arg0: i32, %arg1: i32, %arg2: i32, %arg3: memref<16x16xbf16, #tpu.memory_space<vmem>>, %arg4: memref<16x32xbf16, #tpu.memory_space<vmem>>, %arg5: memref<2x32xf32, #tpu.memory_space<vmem>>, %arg6: memref<16x32xbf16, #tpu.memory_space<vmem>>, %arg7: memref<16x32xf32, #tpu.memory_space<vmem>>) attributes {dimension_semantics = [#tpu.dimension_semantics<parallel>, #tpu.dimension_semantics<parallel>, #tpu.dimension_semantics<arbitrary>], iteration_bounds = array<i64: 1, 1, 1>, scalar_prefetch = 0 : i64, scratch_operands = 1 : i64, tpu.core_type = #tpu.core_type<tc>, window_params = [{transform_indices = @transform_0, window_bounds = array<i64: 16, 16>}, {transform_indices = @transform_1, window_bounds = array<i64: 16, 32>}, {transform_indices = @transform_2, window_bounds = array<i64: 2, 32>}, {transform_indices = @transform_3, window_bounds = array<i64: 16, 32>}]} {
    %c0_i32 = arith.constant 0 : i32
    %0 = arith.cmpi eq, %arg2, %c0_i32 : i32
    %1 = arith.extui %0 : i1 to i32
    %c0_i32_0 = arith.constant 0 : i32
    %2 = arith.cmpi ne, %1, %c0_i32_0 : i32
    scf.if %2 {
      %cst_10 = arith.constant 0.000000e+00 : f32
      %12 = vector.broadcast %cst_10 : f32 to vector<16x32xf32>
      %c0_11 = arith.constant 0 : index
      %c0_12 = arith.constant 0 : index
      %13 = vector.load %arg7[%c0_11, %c0_12] : memref<16x32xf32, #tpu.memory_space<vmem>>, vector<16x32xf32>
      tpu.vector_store %arg7[%c0_11, %c0_12], %12 {strides = array<i32>} : memref<16x32xf32, #tpu.memory_space<vmem>>, vector<16x32xf32>,
    } else {
    }
    %c0 = arith.constant 0 : index
    %c0_1 = arith.constant 0 : index
    %3 = vector.load %arg7[%c0, %c0_1] : memref<16x32xf32, #tpu.memory_space<vmem>>, vector<16x32xf32>
    %c0_2 = arith.constant 0 : index
    %c0_3 = arith.constant 0 : index
    %4 = vector.load %arg3[%c0_2, %c0_3] : memref<16x16xbf16, #tpu.memory_space<vmem>>, vector<16x16xbf16>
    %c0_4 = arith.constant 0 : index
    %c0_5 = arith.constant 0 : index
    %5 = vector.load %arg4[%c0_4, %c0_5] : memref<16x32xbf16, #tpu.memory_space<vmem>>, vector<16x32xbf16>
    %cst = arith.constant dense<0.000000e+00> : vector<16x32xf32>
    %6 = tpu.matmul %4, %5, %cst {dimension_numbers = #tpu.dot_dimension_numbers<[1], [0], [0], [1], [0, 0, 1, 1], [], []>} : vector<16x16xbf16>, vector<16x32xbf16>, vector<16x32xf32> -> vector<16x32xf32>
    %7 = arith.addf %3, %6 : vector<16x32xf32>
    %c0_6 = arith.constant 0 : index
    %c0_7 = arith.constant 0 : index
    %8 = vector.load %arg7[%c0_6, %c0_7] : memref<16x32xf32, #tpu.memory_space<vmem>>, vector<16x32xf32>
    tpu.vector_store %arg7[%c0_6, %c0_7], %7 {strides = array<i32>} : memref<16x32xf32, #tpu.memory_space<vmem>>, vector<16x32xf32>,
    %c0_i32_8 = arith.constant 0 : i32
    %9 = arith.cmpi eq, %arg2, %c0_i32_8 : i32
    %10 = arith.extui %9 : i1 to i32
    %c0_i32_9 = arith.constant 0 : i32
    %11 = arith.cmpi ne, %10, %c0_i32_9 : i32
    scf.if %11 {
      %c0_10 = arith.constant 0 : index
      %c0_11 = arith.constant 0 : index
      %12 = vector.load %arg7[%c0_10, %c0_11] : memref<16x32xf32, #tpu.memory_space<vmem>>, vector<16x32xf32>
      %c0_12 = arith.constant 0 : index
      %c0_13 = arith.constant 0 : index
      %13 = vector.load %arg5[%c0_12, %c0_13] : memref<2x32xf32, #tpu.memory_space<vmem>>, vector<1x32xf32>
      %14 = vector.broadcast %13 : vector<1x32xf32> to vector<16x32xf32>
      %15 = arith.mulf %12, %14 : vector<16x32xf32>
      %c1 = arith.constant 1 : index
      %c0_14 = arith.constant 0 : index
      %16 = vector.load %arg5[%c1, %c0_14] : memref<2x32xf32, #tpu.memory_space<vmem>>, vector<1x32xf32>
      %17 = vector.broadcast %16 : vector<1x32xf32> to vector<16x32xf32>
      %18 = arith.addf %15, %17 : vector<16x32xf32>
      %19 = arith.truncf %18 : vector<16x32xf32> to vector<16x32xbf16>
      %c0_15 = arith.constant 0 : index
      %c0_16 = arith.constant 0 : index
      %20 = vector.load %arg6[%c0_15, %c0_16] : memref<16x32xbf16, #tpu.memory_space<vmem>>, vector<16x32xbf16>
      tpu.vector_store %arg6[%c0_15, %c0_16], %19 {strides = array<i32>} : memref<16x32xbf16, #tpu.memory_space<vmem>>, vector<16x32xbf16>,
    } else {
    }
    return
  }
  func.func @transform_0(%arg0: i32, %arg1: i32, %arg2: i32) -> (i32, i32) {
    %c0_i32 = arith.constant 0 : i32
    return %arg0, %arg2 : i32, i32
  }
  func.func @transform_1(%arg0: i32, %arg1: i32, %arg2: i32) -> (i32, i32) {
    %c0_i32 = arith.constant 0 : i32
    return %arg2, %arg1 : i32, i32
  }
  func.func @transform_2(%arg0: i32, %arg1: i32, %arg2: i32) -> (i32, i32) {
    %c0_i32 = arith.constant 0 : i32
    %c0_i32_0 = arith.constant 0 : i32
    return %c0_i32, %arg1 : i32, i32
  }
  func.func @transform_3(%arg0: i32, %arg1: i32, %arg2: i32) -> (i32, i32) {
    %c0_i32 = arith.constant 0 : i32
    return %arg0, %arg1 : i32, i32
  }
}

module attributes {stable_mosaic.version = 11 : i64} {
  func.func @kernel(%arg0: i32, %arg1: i32, %arg2: i32, %arg3: memref<16x16xbf16, #tpu.memory_space<vmem>>, %arg4: memref<16x16xbf16, #tpu.memory_space<vmem>>, %arg5: memref<2x16xf32, #tpu.memory_space<vmem>>, %arg6: memref<16x16xbf16, #tpu.memory_space<vmem>>, %arg7: memref<16x16xf32, #tpu.memory_space<vmem>>) attributes {dimension_semantics = [#tpu.dimension_semantics<parallel>, #tpu.dimension_semantics<parallel>, #tpu.dimension_semantics<arbitrary>], iteration_bounds = array<i64: 1, 1, 1>, scalar_prefetch = 0 : i64, scratch_operands = 1 : i64, tpu.core_type = #tpu.core_type<tc>, window_params = [{transform_indices = @transform_0, window_bounds = array<i64: 16, 16>}, {transform_indices = @transform_1, window_bounds = array<i64: 16, 16>}, {transform_indices = @transform_2, window_bounds = array<i64: 2, 16>}, {transform_indices = @transform_3, window_bounds = array<i64: 16, 16>}]} {
    %c0_i32 = arith.constant 0 : i32
    %0 = arith.cmpi eq, %arg2, %c0_i32 : i32
    %1 = arith.extui %0 : i1 to i32
    %c0_i32_0 = arith.constant 0 : i32
    %2 = arith.cmpi ne, %1, %c0_i32_0 : i32
    scf.if %2 {
      %cst_10 = arith.constant 0.000000e+00 : f32
      %12 = vector.broadcast %cst_10 : f32 to vector<16x16xf32>
      %c0_11 = arith.constant 0 : index
      %c0_12 = arith.constant 0 : index
      %13 = vector.load %arg7[%c0_11, %c0_12] : memref<16x16xf32, #tpu.memory_space<vmem>>, vector<16x16xf32>
      tpu.vector_store %arg7[%c0_11, %c0_12], %12 {strides = array<i32>} : memref<16x16xf32, #tpu.memory_space<vmem>>, vector<16x16xf32>,
    } else {
    }
    %c0 = arith.constant 0 : index
    %c0_1 = arith.constant 0 : index
    %3 = vector.load %arg7[%c0, %c0_1] : memref<16x16xf32, #tpu.memory_space<vmem>>, vector<16x16xf32>
    %c0_2 = arith.constant 0 : index
    %c0_3 = arith.constant 0 : index
    %4 = vector.load %arg3[%c0_2, %c0_3] : memref<16x16xbf16, #tpu.memory_space<vmem>>, vector<16x16xbf16>
    %c0_4 = arith.constant 0 : index
    %c0_5 = arith.constant 0 : index
    %5 = vector.load %arg4[%c0_4, %c0_5] : memref<16x16xbf16, #tpu.memory_space<vmem>>, vector<16x16xbf16>
    %cst = arith.constant dense<0.000000e+00> : vector<16x16xf32>
    %6 = tpu.matmul %4, %5, %cst {dimension_numbers = #tpu.dot_dimension_numbers<[1], [0], [0], [1], [0, 0, 1, 1], [], []>} : vector<16x16xbf16>, vector<16x16xbf16>, vector<16x16xf32> -> vector<16x16xf32>
    %7 = arith.addf %3, %6 : vector<16x16xf32>
    %c0_6 = arith.constant 0 : index
    %c0_7 = arith.constant 0 : index
    %8 = vector.load %arg7[%c0_6, %c0_7] : memref<16x16xf32, #tpu.memory_space<vmem>>, vector<16x16xf32>
    tpu.vector_store %arg7[%c0_6, %c0_7], %7 {strides = array<i32>} : memref<16x16xf32, #tpu.memory_space<vmem>>, vector<16x16xf32>,
    %c0_i32_8 = arith.constant 0 : i32
    %9 = arith.cmpi eq, %arg2, %c0_i32_8 : i32
    %10 = arith.extui %9 : i1 to i32
    %c0_i32_9 = arith.constant 0 : i32
    %11 = arith.cmpi ne, %10, %c0_i32_9 : i32
    scf.if %11 {
      %c0_10 = arith.constant 0 : index
      %c0_11 = arith.constant 0 : index
      %12 = vector.load %arg7[%c0_10, %c0_11] : memref<16x16xf32, #tpu.memory_space<vmem>>, vector<16x16xf32>
      %c0_12 = arith.constant 0 : index
      %c0_13 = arith.constant 0 : index
      %13 = vector.load %arg5[%c0_12, %c0_13] : memref<2x16xf32, #tpu.memory_space<vmem>>, vector<1x16xf32>
      %14 = vector.broadcast %13 : vector<1x16xf32> to vector<16x16xf32>
      %15 = arith.mulf %12, %14 : vector<16x16xf32>
      %c1 = arith.constant 1 : index
      %c0_14 = arith.constant 0 : index
      %16 = vector.load %arg5[%c1, %c0_14] : memref<2x16xf32, #tpu.memory_space<vmem>>, vector<1x16xf32>
      %17 = vector.broadcast %16 : vector<1x16xf32> to vector<16x16xf32>
      %18 = arith.addf %15, %17 : vector<16x16xf32>
      %19 = arith.truncf %18 : vector<16x16xf32> to vector<16x16xbf16>
      %c0_15 = arith.constant 0 : index
      %c0_16 = arith.constant 0 : index
      %20 = vector.load %arg6[%c0_15, %c0_16] : memref<16x16xbf16, #tpu.memory_space<vmem>>, vector<16x16xbf16>
      tpu.vector_store %arg6[%c0_15, %c0_16], %19 {strides = array<i32>} : memref<16x16xbf16, #tpu.memory_space<vmem>>, vector<16x16xbf16>,
    } else {
    }
    return
  }
  func.func @transform_0(%arg0: i32, %arg1: i32, %arg2: i32) -> (i32, i32) {
    %c0_i32 = arith.constant 0 : i32
    return %arg0, %arg2 : i32, i32
  }
  func.func @transform_1(%arg0: i32, %arg1: i32, %arg2: i32) -> (i32, i32) {
    %c0_i32 = arith.constant 0 : i32
    return %arg2, %arg1 : i32, i32
  }
  func.func @transform_2(%arg0: i32, %arg1: i32, %arg2: i32) -> (i32, i32) {
    %c0_i32 = arith.constant 0 : i32
    %c0_i32_0 = arith.constant 0 : i32
    return %c0_i32, %arg1 : i32, i32
  }
  func.func @transform_3(%arg0: i32, %arg1: i32, %arg2: i32) -> (i32, i32) {
    %c0_i32 = arith.constant 0 : i32
    return %arg0, %arg1 : i32, i32
  }
}

module attributes {stable_mosaic.version = 11 : i64} {
  func.func @kernel(%arg0: i32, %arg1: i32, %arg2: i32, %arg3: memref<32x16xbf16, #tpu.memory_space<vmem>>, %arg4: memref<16x8xbf16, #tpu.memory_space<vmem>>, %arg5: memref<2x8xf32, #tpu.memory_space<vmem>>, %arg6: memref<32x8xbf16, #tpu.memory_space<vmem>>, %arg7: memref<32x8xf32, #tpu.memory_space<vmem>>) attributes {dimension_semantics = [#tpu.dimension_semantics<parallel>, #tpu.dimension_semantics<parallel>, #tpu.dimension_semantics<arbitrary>], iteration_bounds = array<i64: 1, 1, 1>, scalar_prefetch = 0 : i64, scratch_operands = 1 : i64, tpu.core_type = #tpu.core_type<tc>, window_params = [{transform_indices = @transform_0, window_bounds = array<i64: 32, 16>}, {transform_indices = @transform_1, window_bounds = array<i64: 16, 8>}, {transform_indices = @transform_2, window_bounds = array<i64: 2, 8>}, {transform_indices = @transform_3, window_bounds = array<i64: 32, 8>}]} {
    %c0_i32 = arith.constant 0 : i32
    %0 = arith.cmpi eq, %arg2, %c0_i32 : i32
    %1 = arith.extui %0 : i1 to i32
    %c0_i32_0 = arith.constant 0 : i32
    %2 = arith.cmpi ne, %1, %c0_i32_0 : i32
    scf.if %2 {
      %cst_10 = arith.constant 0.000000e+00 : f32
      %12 = vector.broadcast %cst_10 : f32 to vector<32x8xf32>
      %c0_11 = arith.constant 0 : index
      %c0_12 = arith.constant 0 : index
      %13 = vector.load %arg7[%c0_11, %c0_12] : memref<32x8xf32, #tpu.memory_space<vmem>>, vector<32x8xf32>
      tpu.vector_store %arg7[%c0_11, %c0_12], %12 {strides = array<i32>} : memref<32x8xf32, #tpu.memory_space<vmem>>, vector<32x8xf32>,
    } else {
    }
    %c0 = arith.constant 0 : index
    %c0_1 = arith.constant 0 : index
    %3 = vector.load %arg7[%c0, %c0_1] : memref<32x8xf32, #tpu.memory_space<vmem>>, vector<32x8xf32>
    %c0_2 = arith.constant 0 : index
    %c0_3 = arith.constant 0 : index
    %4 = vector.load %arg3[%c0_2, %c0_3] : memref<32x16xbf16, #tpu.memory_space<vmem>>, vector<32x16xbf16>
    %c0_4 = arith.constant 0 : index
    %c0_5 = arith.constant 0 : index
    %5 = vector.load %arg4[%c0_4, %c0_5] : memref<16x8xbf16, #tpu.memory_space<vmem>>, vector<16x8xbf16>
    %cst = arith.constant dense<0.000000e+00> : vector<32x8xf32>
    %6 = tpu.matmul %4, %5, %cst {dimension_numbers = #tpu.dot_dimension_numbers<[1], [0], [0], [1], [0, 0, 1, 1], [], []>} : vector<32x16xbf16>, vector<16x8xbf16>, vector<32x8xf32> -> vector<32x8xf32>
    %7 = arith.addf %3, %6 : vector<32x8xf32>
    %c0_6 = arith.constant 0 : index
    %c0_7 = arith.constant 0 : index
    %8 = vector.load %arg7[%c0_6, %c0_7] : memref<32x8xf32, #tpu.memory_space<vmem>>, vector<32x8xf32>
    tpu.vector_store %arg7[%c0_6, %c0_7], %7 {strides = array<i32>} : memref<32x8xf32, #tpu.memory_space<vmem>>, vector<32x8xf32>,
    %c0_i32_8 = arith.constant 0 : i32
    %9 = arith.cmpi eq, %arg2, %c0_i32_8 : i32
    %10 = arith.extui %9 : i1 to i32
    %c0_i32_9 = arith.constant 0 : i32
    %11 = arith.cmpi ne, %10, %c0_i32_9 : i32
    scf.if %11 {
      %c0_10 = arith.constant 0 : index
      %c0_11 = arith.constant 0 : index
      %12 = vector.load %arg7[%c0_10, %c0_11] : memref<32x8xf32, #tpu.memory_space<vmem>>, vector<32x8xf32>
      %c0_12 = arith.constant 0 : index
      %c0_13 = arith.constant 0 : index
      %13 = vector.load %arg5[%c0_12, %c0_13] : memref<2x8xf32, #tpu.memory_space<vmem>>, vector<1x8xf32>
      %14 = vector.broadcast %13 : vector<1x8xf32> to vector<32x8xf32>
      %15 = arith.mulf %12, %14 : vector<32x8xf32>
      %c1 = arith.constant 1 : index
      %c0_14 = arith.constant 0 : index
      %16 = vector.load %arg5[%c1, %c0_14] : memref<2x8xf32, #tpu.memory_space<vmem>>, vector<1x8xf32>
      %17 = vector.broadcast %16 : vector<1x8xf32> to vector<32x8xf32>
      %18 = arith.addf %15, %17 : vector<32x8xf32>
      %cst_15 = arith.constant 0.000000e+00 : f32
      %19 = vector.broadcast %cst_15 : f32 to vector<32x8xf32>
      %20 = arith.maximumf %18, %19 : vector<32x8xf32>
      %21 = arith.truncf %20 : vector<32x8xf32> to vector<32x8xbf16>
      %c0_16 = arith.constant 0 : index
      %c0_17 = arith.constant 0 : index
      %22 = vector.load %arg6[%c0_16, %c0_17] : memref<32x8xbf16, #tpu.memory_space<vmem>>, vector<32x8xbf16>
      tpu.vector_store %arg6[%c0_16, %c0_17], %21 {strides = array<i32>} : memref<32x8xbf16, #tpu.memory_space<vmem>>, vector<32x8xbf16>,
    } else {
    }
    return
  }
  func.func @transform_0(%arg0: i32, %arg1: i32, %arg2: i32) -> (i32, i32) {
    %c0_i32 = arith.constant 0 : i32
    return %arg0, %arg2 : i32, i32
  }
  func.func @transform_1(%arg0: i32, %arg1: i32, %arg2: i32) -> (i32, i32) {
    %c0_i32 = arith.constant 0 : i32
    return %arg2, %arg1 : i32, i32
  }
  func.func @transform_2(%arg0: i32, %arg1: i32, %arg2: i32) -> (i32, i32) {
    %c0_i32 = arith.constant 0 : i32
    %c0_i32_0 = arith.constant 0 : i32
    return %c0_i32, %arg1 : i32, i32
  }
  func.func @transform_3(%arg0: i32, %arg1: i32, %arg2: i32) -> (i32, i32) {
    %c0_i32 = arith.constant 0 : i32
    return %arg0, %arg1 : i32, i32
  }
}

module attributes {stable_mosaic.version = 11 : i64} {
  func.func @kernel(%arg0: i32, %arg1: i32, %arg2: i32, %arg3: memref<32x16xbf16, #tpu.memory_space<vmem>>, %arg4: memref<16x4xbf16, #tpu.memory_space<vmem>>, %arg5: memref<2x4xf32, #tpu.memory_space<vmem>>, %arg6: memref<32x4xbf16, #tpu.memory_space<vmem>>, %arg7: memref<32x4xf32, #tpu.memory_space<vmem>>) attributes {dimension_semantics = [#tpu.dimension_semantics<parallel>, #tpu.dimension_semantics<parallel>, #tpu.dimension_semantics<arbitrary>], iteration_bounds = array<i64: 1, 1, 1>, scalar_prefetch = 0 : i64, scratch_operands = 1 : i64, tpu.core_type = #tpu.core_type<tc>, window_params = [{transform_indices = @transform_0, window_bounds = array<i64: 32, 16>}, {transform_indices = @transform_1, window_bounds = array<i64: 16, 4>}, {transform_indices = @transform_2, window_bounds = array<i64: 2, 4>}, {transform_indices = @transform_3, window_bounds = array<i64: 32, 4>}]} {
    %c0_i32 = arith.constant 0 : i32
    %0 = arith.cmpi eq, %arg2, %c0_i32 : i32
    %1 = arith.extui %0 : i1 to i32
    %c0_i32_0 = arith.constant 0 : i32
    %2 = arith.cmpi ne, %1, %c0_i32_0 : i32
    scf.if %2 {
      %cst_10 = arith.constant 0.000000e+00 : f32
      %12 = vector.broadcast %cst_10 : f32 to vector<32x4xf32>
      %c0_11 = arith.constant 0 : index
      %c0_12 = arith.constant 0 : index
      %13 = vector.load %arg7[%c0_11, %c0_12] : memref<32x4xf32, #tpu.memory_space<vmem>>, vector<32x4xf32>
      tpu.vector_store %arg7[%c0_11, %c0_12], %12 {strides = array<i32>} : memref<32x4xf32, #tpu.memory_space<vmem>>, vector<32x4xf32>,
    } else {
    }
    %c0 = arith.constant 0 : index
    %c0_1 = arith.constant 0 : index
    %3 = vector.load %arg7[%c0, %c0_1] : memref<32x4xf32, #tpu.memory_space<vmem>>, vector<32x4xf32>
    %c0_2 = arith.constant 0 : index
    %c0_3 = arith.constant 0 : index
    %4 = vector.load %arg3[%c0_2, %c0_3] : memref<32x16xbf16, #tpu.memory_space<vmem>>, vector<32x16xbf16>
    %c0_4 = arith.constant 0 : index
    %c0_5 = arith.constant 0 : index
    %5 = vector.load %arg4[%c0_4, %c0_5] : memref<16x4xbf16, #tpu.memory_space<vmem>>, vector<16x4xbf16>
    %cst = arith.constant dense<0.000000e+00> : vector<32x4xf32>
    %6 = tpu.matmul %4, %5, %cst {dimension_numbers = #tpu.dot_dimension_numbers<[1], [0], [0], [1], [0, 0, 1, 1], [], []>} : vector<32x16xbf16>, vector<16x4xbf16>, vector<32x4xf32> -> vector<32x4xf32>
    %7 = arith.addf %3, %6 : vector<32x4xf32>
    %c0_6 = arith.constant 0 : index
    %c0_7 = arith.constant 0 : index
    %8 = vector.load %arg7[%c0_6, %c0_7] : memref<32x4xf32, #tpu.memory_space<vmem>>, vector<32x4xf32>
    tpu.vector_store %arg7[%c0_6, %c0_7], %7 {strides = array<i32>} : memref<32x4xf32, #tpu.memory_space<vmem>>, vector<32x4xf32>,
    %c0_i32_8 = arith.constant 0 : i32
    %9 = arith.cmpi eq, %arg2, %c0_i32_8 : i32
    %10 = arith.extui %9 : i1 to i32
    %c0_i32_9 = arith.constant 0 : i32
    %11 = arith.cmpi ne, %10, %c0_i32_9 : i32
    scf.if %11 {
      %c0_10 = arith.constant 0 : index
      %c0_11 = arith.constant 0 : index
      %12 = vector.load %arg7[%c0_10, %c0_11] : memref<32x4xf32, #tpu.memory_space<vmem>>, vector<32x4xf32>
      %c0_12 = arith.constant 0 : index
      %c0_13 = arith.constant 0 : index
      %13 = vector.load %arg5[%c0_12, %c0_13] : memref<2x4xf32, #tpu.memory_space<vmem>>, vector<1x4xf32>
      %14 = vector.broadcast %13 : vector<1x4xf32> to vector<32x4xf32>
      %15 = arith.mulf %12, %14 : vector<32x4xf32>
      %c1 = arith.constant 1 : index
      %c0_14 = arith.constant 0 : index
      %16 = vector.load %arg5[%c1, %c0_14] : memref<2x4xf32, #tpu.memory_space<vmem>>, vector<1x4xf32>
      %17 = vector.broadcast %16 : vector<1x4xf32> to vector<32x4xf32>
      %18 = arith.addf %15, %17 : vector<32x4xf32>
      %cst_15 = arith.constant 0.000000e+00 : f32
      %19 = vector.broadcast %cst_15 : f32 to vector<32x4xf32>
      %20 = arith.maximumf %18, %19 : vector<32x4xf32>
      %21 = arith.truncf %20 : vector<32x4xf32> to vector<32x4xbf16>
      %c0_16 = arith.constant 0 : index
      %c0_17 = arith.constant 0 : index
      %22 = vector.load %arg6[%c0_16, %c0_17] : memref<32x4xbf16, #tpu.memory_space<vmem>>, vector<32x4xbf16>
      tpu.vector_store %arg6[%c0_16, %c0_17], %21 {strides = array<i32>} : memref<32x4xbf16, #tpu.memory_space<vmem>>, vector<32x4xbf16>,
    } else {
    }
    return
  }
  func.func @transform_0(%arg0: i32, %arg1: i32, %arg2: i32) -> (i32, i32) {
    %c0_i32 = arith.constant 0 : i32
    return %arg0, %arg2 : i32, i32
  }
  func.func @transform_1(%arg0: i32, %arg1: i32, %arg2: i32) -> (i32, i32) {
    %c0_i32 = arith.constant 0 : i32
    return %arg2, %arg1 : i32, i32
  }
  func.func @transform_2(%arg0: i32, %arg1: i32, %arg2: i32) -> (i32, i32) {
    %c0_i32 = arith.constant 0 : i32
    %c0_i32_0 = arith.constant 0 : i32
    return %c0_i32, %arg1 : i32, i32
  }
  func.func @transform_3(%arg0: i32, %arg1: i32, %arg2: i32) -> (i32, i32) {
    %c0_i32 = arith.constant 0 : i32
    return %arg0, %arg1 : i32, i32
  }
}

module attributes {stable_mosaic.version = 11 : i64} {
  func.func @kernel(%arg0: i32, %arg1: i32, %arg2: i32, %arg3: memref<16x36xbf16, #tpu.memory_space<vmem>>, %arg4: memref<36x4xbf16, #tpu.memory_space<vmem>>, %arg5: memref<2x4xf32, #tpu.memory_space<vmem>>, %arg6: memref<16x4xbf16, #tpu.memory_space<vmem>>, %arg7: memref<16x4xf32, #tpu.memory_space<vmem>>) attributes {dimension_semantics = [#tpu.dimension_semantics<parallel>, #tpu.dimension_semantics<parallel>, #tpu.dimension_semantics<arbitrary>], iteration_bounds = array<i64: 1, 1, 1>, scalar_prefetch = 0 : i64, scratch_operands = 1 : i64, tpu.core_type = #tpu.core_type<tc>, window_params = [{transform_indices = @transform_0, window_bounds = array<i64: 16, 36>}, {transform_indices = @transform_1, window_bounds = array<i64: 36, 4>}, {transform_indices = @transform_2, window_bounds = array<i64: 2, 4>}, {transform_indices = @transform_3, window_bounds = array<i64: 16, 4>}]} {
    %c0_i32 = arith.constant 0 : i32
    %0 = arith.cmpi eq, %arg2, %c0_i32 : i32
    %1 = arith.extui %0 : i1 to i32
    %c0_i32_0 = arith.constant 0 : i32
    %2 = arith.cmpi ne, %1, %c0_i32_0 : i32
    scf.if %2 {
      %cst_10 = arith.constant 0.000000e+00 : f32
      %12 = vector.broadcast %cst_10 : f32 to vector<16x4xf32>
      %c0_11 = arith.constant 0 : index
      %c0_12 = arith.constant 0 : index
      %13 = vector.load %arg7[%c0_11, %c0_12] : memref<16x4xf32, #tpu.memory_space<vmem>>, vector<16x4xf32>
      tpu.vector_store %arg7[%c0_11, %c0_12], %12 {strides = array<i32>} : memref<16x4xf32, #tpu.memory_space<vmem>>, vector<16x4xf32>,
    } else {
    }
    %c0 = arith.constant 0 : index
    %c0_1 = arith.constant 0 : index
    %3 = vector.load %arg7[%c0, %c0_1] : memref<16x4xf32, #tpu.memory_space<vmem>>, vector<16x4xf32>
    %c0_2 = arith.constant 0 : index
    %c0_3 = arith.constant 0 : index
    %4 = vector.load %arg3[%c0_2, %c0_3] : memref<16x36xbf16, #tpu.memory_space<vmem>>, vector<16x36xbf16>
    %c0_4 = arith.constant 0 : index
    %c0_5 = arith.constant 0 : index
    %5 = vector.load %arg4[%c0_4, %c0_5] : memref<36x4xbf16, #tpu.memory_space<vmem>>, vector<36x4xbf16>
    %cst = arith.constant dense<0.000000e+00> : vector<16x4xf32>
    %6 = tpu.matmul %4, %5, %cst {dimension_numbers = #tpu.dot_dimension_numbers<[1], [0], [0], [1], [0, 0, 1, 1], [], []>} : vector<16x36xbf16>, vector<36x4xbf16>, vector<16x4xf32> -> vector<16x4xf32>
    %7 = arith.addf %3, %6 : vector<16x4xf32>
    %c0_6 = arith.constant 0 : index
    %c0_7 = arith.constant 0 : index
    %8 = vector.load %arg7[%c0_6, %c0_7] : memref<16x4xf32, #tpu.memory_space<vmem>>, vector<16x4xf32>
    tpu.vector_store %arg7[%c0_6, %c0_7], %7 {strides = array<i32>} : memref<16x4xf32, #tpu.memory_space<vmem>>, vector<16x4xf32>,
    %c0_i32_8 = arith.constant 0 : i32
    %9 = arith.cmpi eq, %arg2, %c0_i32_8 : i32
    %10 = arith.extui %9 : i1 to i32
    %c0_i32_9 = arith.constant 0 : i32
    %11 = arith.cmpi ne, %10, %c0_i32_9 : i32
    scf.if %11 {
      %c0_10 = arith.constant 0 : index
      %c0_11 = arith.constant 0 : index
      %12 = vector.load %arg7[%c0_10, %c0_11] : memref<16x4xf32, #tpu.memory_space<vmem>>, vector<16x4xf32>
      %c0_12 = arith.constant 0 : index
      %c0_13 = arith.constant 0 : index
      %13 = vector.load %arg5[%c0_12, %c0_13] : memref<2x4xf32, #tpu.memory_space<vmem>>, vector<1x4xf32>
      %14 = vector.broadcast %13 : vector<1x4xf32> to vector<16x4xf32>
      %15 = arith.mulf %12, %14 : vector<16x4xf32>
      %c1 = arith.constant 1 : index
      %c0_14 = arith.constant 0 : index
      %16 = vector.load %arg5[%c1, %c0_14] : memref<2x4xf32, #tpu.memory_space<vmem>>, vector<1x4xf32>
      %17 = vector.broadcast %16 : vector<1x4xf32> to vector<16x4xf32>
      %18 = arith.addf %15, %17 : vector<16x4xf32>
      %cst_15 = arith.constant 0.000000e+00 : f32
      %19 = vector.broadcast %cst_15 : f32 to vector<16x4xf32>
      %20 = arith.maximumf %18, %19 : vector<16x4xf32>
      %21 = arith.truncf %20 : vector<16x4xf32> to vector<16x4xbf16>
      %c0_16 = arith.constant 0 : index
      %c0_17 = arith.constant 0 : index
      %22 = vector.load %arg6[%c0_16, %c0_17] : memref<16x4xbf16, #tpu.memory_space<vmem>>, vector<16x4xbf16>
      tpu.vector_store %arg6[%c0_16, %c0_17], %21 {strides = array<i32>} : memref<16x4xbf16, #tpu.memory_space<vmem>>, vector<16x4xbf16>,
    } else {
    }
    return
  }
  func.func @transform_0(%arg0: i32, %arg1: i32, %arg2: i32) -> (i32, i32) {
    %c0_i32 = arith.constant 0 : i32
    return %arg0, %arg2 : i32, i32
  }
  func.func @transform_1(%arg0: i32, %arg1: i32, %arg2: i32) -> (i32, i32) {
    %c0_i32 = arith.constant 0 : i32
    return %arg2, %arg1 : i32, i32
  }
  func.func @transform_2(%arg0: i32, %arg1: i32, %arg2: i32) -> (i32, i32) {
    %c0_i32 = arith.constant 0 : i32
    %c0_i32_0 = arith.constant 0 : i32
    return %c0_i32, %arg1 : i32, i32
  }
  func.func @transform_3(%arg0: i32, %arg1: i32, %arg2: i32) -> (i32, i32) {
    %c0_i32 = arith.constant 0 : i32
    return %arg0, %arg1 : i32, i32
  }
}

module attributes {stable_mosaic.version = 11 : i64} {
  func.func @kernel(%arg0: i32, %arg1: i32, %arg2: i32, %arg3: memref<16x4xbf16, #tpu.memory_space<vmem>>, %arg4: memref<4x16xbf16, #tpu.memory_space<vmem>>, %arg5: memref<2x16xf32, #tpu.memory_space<vmem>>, %arg6: memref<16x16xbf16, #tpu.memory_space<vmem>>, %arg7: memref<16x16xbf16, #tpu.memory_space<vmem>>, %arg8: memref<16x16xf32, #tpu.memory_space<vmem>>) attributes {dimension_semantics = [#tpu.dimension_semantics<parallel>, #tpu.dimension_semantics<parallel>, #tpu.dimension_semantics<arbitrary>], iteration_bounds = array<i64: 1, 1, 1>, scalar_prefetch = 0 : i64, scratch_operands = 1 : i64, tpu.core_type = #tpu.core_type<tc>, window_params = [{transform_indices = @transform_0, window_bounds = array<i64: 16, 4>}, {transform_indices = @transform_1, window_bounds = array<i64: 4, 16>}, {transform_indices = @transform_2, window_bounds = array<i64: 2, 16>}, {transform_indices = @transform_3, window_bounds = array<i64: 16, 16>}, {transform_indices = @transform_4, window_bounds = array<i64: 16, 16>}]} {
    %c0_i32 = arith.constant 0 : i32
    %0 = arith.cmpi eq, %arg2, %c0_i32 : i32
    %1 = arith.extui %0 : i1 to i32
    %c0_i32_0 = arith.constant 0 : i32
    %2 = arith.cmpi ne, %1, %c0_i32_0 : i32
    scf.if %2 {
      %cst_10 = arith.constant 0.000000e+00 : f32
      %12 = vector.broadcast %cst_10 : f32 to vector<16x16xf32>
      %c0_11 = arith.constant 0 : index
      %c0_12 = arith.constant 0 : index
      %13 = vector.load %arg8[%c0_11, %c0_12] : memref<16x16xf32, #tpu.memory_space<vmem>>, vector<16x16xf32>
      tpu.vector_store %arg8[%c0_11, %c0_12], %12 {strides = array<i32>} : memref<16x16xf32, #tpu.memory_space<vmem>>, vector<16x16xf32>,
    } else {
    }
    %c0 = arith.constant 0 : index
    %c0_1 = arith.constant 0 : index
    %3 = vector.load %arg8[%c0, %c0_1] : memref<16x16xf32, #tpu.memory_space<vmem>>, vector<16x16xf32>
    %c0_2 = arith.constant 0 : index
    %c0_3 = arith.constant 0 : index
    %4 = vector.load %arg3[%c0_2, %c0_3] : memref<16x4xbf16, #tpu.memory_space<vmem>>, vector<16x4xbf16>
    %c0_4 = arith.constant 0 : index
    %c0_5 = arith.constant 0 : index
    %5 = vector.load %arg4[%c0_4, %c0_5] : memref<4x16xbf16, #tpu.memory_space<vmem>>, vector<4x16xbf16>
    %cst = arith.constant dense<0.000000e+00> : vector<16x16xf32>
    %6 = tpu.matmul %4, %5, %cst {dimension_numbers = #tpu.dot_dimension_numbers<[1], [0], [0], [1], [0, 0, 1, 1], [], []>} : vector<16x4xbf16>, vector<4x16xbf16>, vector<16x16xf32> -> vector<16x16xf32>
    %7 = arith.addf %3, %6 : vector<16x16xf32>
    %c0_6 = arith.constant 0 : index
    %c0_7 = arith.constant 0 : index
    %8 = vector.load %arg8[%c0_6, %c0_7] : memref<16x16xf32, #tpu.memory_space<vmem>>, vector<16x16xf32>
    tpu.vector_store %arg8[%c0_6, %c0_7], %7 {strides = array<i32>} : memref<16x16xf32, #tpu.memory_space<vmem>>, vector<16x16xf32>,
    %c0_i32_8 = arith.constant 0 : i32
    %9 = arith.cmpi eq, %arg2, %c0_i32_8 : i32
    %10 = arith.extui %9 : i1 to i32
    %c0_i32_9 = arith.constant 0 : i32
    %11 = arith.cmpi ne, %10, %c0_i32_9 : i32
    scf.if %11 {
      %c0_10 = arith.constant 0 : index
      %c0_11 = arith.constant 0 : index
      %12 = vector.load %arg8[%c0_10, %c0_11] : memref<16x16xf32, #tpu.memory_space<vmem>>, vector<16x16xf32>
      %c0_12 = arith.constant 0 : index
      %c0_13 = arith.constant 0 : index
      %13 = vector.load %arg5[%c0_12, %c0_13] : memref<2x16xf32, #tpu.memory_space<vmem>>, vector<1x16xf32>
      %14 = vector.broadcast %13 : vector<1x16xf32> to vector<16x16xf32>
      %15 = arith.mulf %12, %14 : vector<16x16xf32>
      %c1 = arith.constant 1 : index
      %c0_14 = arith.constant 0 : index
      %16 = vector.load %arg5[%c1, %c0_14] : memref<2x16xf32, #tpu.memory_space<vmem>>, vector<1x16xf32>
      %17 = vector.broadcast %16 : vector<1x16xf32> to vector<16x16xf32>
      %18 = arith.addf %15, %17 : vector<16x16xf32>
      %c0_15 = arith.constant 0 : index
      %c0_16 = arith.constant 0 : index
      %19 = vector.load %arg6[%c0_15, %c0_16] : memref<16x16xbf16, #tpu.memory_space<vmem>>, vector<16x16xbf16>
      %20 = arith.extf %19 : vector<16x16xbf16> to vector<16x16xf32>
      %21 = arith.addf %18, %20 : vector<16x16xf32>
      %cst_17 = arith.constant 0.000000e+00 : f32
      %22 = vector.broadcast %cst_17 : f32 to vector<16x16xf32>
      %23 = arith.maximumf %21, %22 : vector<16x16xf32>
      %24 = arith.truncf %23 : vector<16x16xf32> to vector<16x16xbf16>
      %c0_18 = arith.constant 0 : index
      %c0_19 = arith.constant 0 : index
      %25 = vector.load %arg7[%c0_18, %c0_19] : memref<16x16xbf16, #tpu.memory_space<vmem>>, vector<16x16xbf16>
      tpu.vector_store %arg7[%c0_18, %c0_19], %24 {strides = array<i32>} : memref<16x16xbf16, #tpu.memory_space<vmem>>, vector<16x16xbf16>,
    } else {
    }
    return
  }
  func.func @transform_0(%arg0: i32, %arg1: i32, %arg2: i32) -> (i32, i32) {
    %c0_i32 = arith.constant 0 : i32
    return %arg0, %arg2 : i32, i32
  }
  func.func @transform_1(%arg0: i32, %arg1: i32, %arg2: i32) -> (i32, i32) {
    %c0_i32 = arith.constant 0 : i32
    return %arg2, %arg1 : i32, i32
  }
  func.func @transform_2(%arg0: i32, %arg1: i32, %arg2: i32) -> (i32, i32) {
    %c0_i32 = arith.constant 0 : i32
    %c0_i32_0 = arith.constant 0 : i32
    return %c0_i32, %arg1 : i32, i32
  }
  func.func @transform_3(%arg0: i32, %arg1: i32, %arg2: i32) -> (i32, i32) {
    %c0_i32 = arith.constant 0 : i32
    return %arg0, %arg1 : i32, i32
  }
  func.func @transform_4(%arg0: i32, %arg1: i32, %arg2: i32) -> (i32, i32) {
    %c0_i32 = arith.constant 0 : i32
    return %arg0, %arg1 : i32, i32
  }
}

module attributes {stable_mosaic.version = 11 : i64} {
  func.func @kernel(%arg0: i32, %arg1: i32, %arg2: i32, %arg3: memref<32x16xbf16, #tpu.memory_space<vmem>>, %arg4: memref<16x16xbf16, #tpu.memory_space<vmem>>, %arg5: memref<2x16xf32, #tpu.memory_space<vmem>>, %arg6: memref<32x16xbf16, #tpu.memory_space<vmem>>, %arg7: memref<32x16xf32, #tpu.memory_space<vmem>>) attributes {dimension_semantics = [#tpu.dimension_semantics<parallel>, #tpu.dimension_semantics<parallel>, #tpu.dimension_semantics<arbitrary>], iteration_bounds = array<i64: 1, 1, 1>, scalar_prefetch = 0 : i64, scratch_operands = 1 : i64, tpu.core_type = #tpu.core_type<tc>, window_params = [{transform_indices = @transform_0, window_bounds = array<i64: 32, 16>}, {transform_indices = @transform_1, window_bounds = array<i64: 16, 16>}, {transform_indices = @transform_2, window_bounds = array<i64: 2, 16>}, {transform_indices = @transform_3, window_bounds = array<i64: 32, 16>}]} {
    %c0_i32 = arith.constant 0 : i32
    %0 = arith.cmpi eq, %arg2, %c0_i32 : i32
    %1 = arith.extui %0 : i1 to i32
    %c0_i32_0 = arith.constant 0 : i32
    %2 = arith.cmpi ne, %1, %c0_i32_0 : i32
    scf.if %2 {
      %cst_10 = arith.constant 0.000000e+00 : f32
      %12 = vector.broadcast %cst_10 : f32 to vector<32x16xf32>
      %c0_11 = arith.constant 0 : index
      %c0_12 = arith.constant 0 : index
      %13 = vector.load %arg7[%c0_11, %c0_12] : memref<32x16xf32, #tpu.memory_space<vmem>>, vector<32x16xf32>
      tpu.vector_store %arg7[%c0_11, %c0_12], %12 {strides = array<i32>} : memref<32x16xf32, #tpu.memory_space<vmem>>, vector<32x16xf32>,
    } else {
    }
    %c0 = arith.constant 0 : index
    %c0_1 = arith.constant 0 : index
    %3 = vector.load %arg7[%c0, %c0_1] : memref<32x16xf32, #tpu.memory_space<vmem>>, vector<32x16xf32>
    %c0_2 = arith.constant 0 : index
    %c0_3 = arith.constant 0 : index
    %4 = vector.load %arg3[%c0_2, %c0_3] : memref<32x16xbf16, #tpu.memory_space<vmem>>, vector<32x16xbf16>
    %c0_4 = arith.constant 0 : index
    %c0_5 = arith.constant 0 : index
    %5 = vector.load %arg4[%c0_4, %c0_5] : memref<16x16xbf16, #tpu.memory_space<vmem>>, vector<16x16xbf16>
    %cst = arith.constant dense<0.000000e+00> : vector<32x16xf32>
    %6 = tpu.matmul %4, %5, %cst {dimension_numbers = #tpu.dot_dimension_numbers<[1], [0], [0], [1], [0, 0, 1, 1], [], []>} : vector<32x16xbf16>, vector<16x16xbf16>, vector<32x16xf32> -> vector<32x16xf32>
    %7 = arith.addf %3, %6 : vector<32x16xf32>
    %c0_6 = arith.constant 0 : index
    %c0_7 = arith.constant 0 : index
    %8 = vector.load %arg7[%c0_6, %c0_7] : memref<32x16xf32, #tpu.memory_space<vmem>>, vector<32x16xf32>
    tpu.vector_store %arg7[%c0_6, %c0_7], %7 {strides = array<i32>} : memref<32x16xf32, #tpu.memory_space<vmem>>, vector<32x16xf32>,
    %c0_i32_8 = arith.constant 0 : i32
    %9 = arith.cmpi eq, %arg2, %c0_i32_8 : i32
    %10 = arith.extui %9 : i1 to i32
    %c0_i32_9 = arith.constant 0 : i32
    %11 = arith.cmpi ne, %10, %c0_i32_9 : i32
    scf.if %11 {
      %c0_10 = arith.constant 0 : index
      %c0_11 = arith.constant 0 : index
      %12 = vector.load %arg7[%c0_10, %c0_11] : memref<32x16xf32, #tpu.memory_space<vmem>>, vector<32x16xf32>
      %c0_12 = arith.constant 0 : index
      %c0_13 = arith.constant 0 : index
      %13 = vector.load %arg5[%c0_12, %c0_13] : memref<2x16xf32, #tpu.memory_space<vmem>>, vector<1x16xf32>
      %14 = vector.broadcast %13 : vector<1x16xf32> to vector<32x16xf32>
      %15 = arith.mulf %12, %14 : vector<32x16xf32>
      %c1 = arith.constant 1 : index
      %c0_14 = arith.constant 0 : index
      %16 = vector.load %arg5[%c1, %c0_14] : memref<2x16xf32, #tpu.memory_space<vmem>>, vector<1x16xf32>
      %17 = vector.broadcast %16 : vector<1x16xf32> to vector<32x16xf32>
      %18 = arith.addf %15, %17 : vector<32x16xf32>
      %19 = arith.truncf %18 : vector<32x16xf32> to vector<32x16xbf16>
      %c0_15 = arith.constant 0 : index
      %c0_16 = arith.constant 0 : index
      %20 = vector.load %arg6[%c0_15, %c0_16] : memref<32x16xbf16, #tpu.memory_space<vmem>>, vector<32x16xbf16>
      tpu.vector_store %arg6[%c0_15, %c0_16], %19 {strides = array<i32>} : memref<32x16xbf16, #tpu.memory_space<vmem>>, vector<32x16xbf16>,
    } else {
    }
    return
  }
  func.func @transform_0(%arg0: i32, %arg1: i32, %arg2: i32) -> (i32, i32) {
    %c0_i32 = arith.constant 0 : i32
    return %arg0, %arg2 : i32, i32
  }
  func.func @transform_1(%arg0: i32, %arg1: i32, %arg2: i32) -> (i32, i32) {
    %c0_i32 = arith.constant 0 : i32
    return %arg2, %arg1 : i32, i32
  }
  func.func @transform_2(%arg0: i32, %arg1: i32, %arg2: i32) -> (i32, i32) {
    %c0_i32 = arith.constant 0 : i32
    %c0_i32_0 = arith.constant 0 : i32
    return %c0_i32, %arg1 : i32, i32
  }
  func.func @transform_3(%arg0: i32, %arg1: i32, %arg2: i32) -> (i32, i32) {
    %c0_i32 = arith.constant 0 : i32
    return %arg0, %arg1 : i32, i32
  }
}

module attributes {stable_mosaic.version = 11 : i64} {
  func.func @kernel(%arg0: i32, %arg1: i32, %arg2: i32, %arg3: memref<16x72xbf16, #tpu.memory_space<vmem>>, %arg4: memref<72x8xbf16, #tpu.memory_space<vmem>>, %arg5: memref<2x8xf32, #tpu.memory_space<vmem>>, %arg6: memref<16x8xbf16, #tpu.memory_space<vmem>>, %arg7: memref<16x8xf32, #tpu.memory_space<vmem>>) attributes {dimension_semantics = [#tpu.dimension_semantics<parallel>, #tpu.dimension_semantics<parallel>, #tpu.dimension_semantics<arbitrary>], iteration_bounds = array<i64: 1, 1, 1>, scalar_prefetch = 0 : i64, scratch_operands = 1 : i64, tpu.core_type = #tpu.core_type<tc>, window_params = [{transform_indices = @transform_0, window_bounds = array<i64: 16, 72>}, {transform_indices = @transform_1, window_bounds = array<i64: 72, 8>}, {transform_indices = @transform_2, window_bounds = array<i64: 2, 8>}, {transform_indices = @transform_3, window_bounds = array<i64: 16, 8>}]} {
    %c0_i32 = arith.constant 0 : i32
    %0 = arith.cmpi eq, %arg2, %c0_i32 : i32
    %1 = arith.extui %0 : i1 to i32
    %c0_i32_0 = arith.constant 0 : i32
    %2 = arith.cmpi ne, %1, %c0_i32_0 : i32
    scf.if %2 {
      %cst_10 = arith.constant 0.000000e+00 : f32
      %12 = vector.broadcast %cst_10 : f32 to vector<16x8xf32>
      %c0_11 = arith.constant 0 : index
      %c0_12 = arith.constant 0 : index
      %13 = vector.load %arg7[%c0_11, %c0_12] : memref<16x8xf32, #tpu.memory_space<vmem>>, vector<16x8xf32>
      tpu.vector_store %arg7[%c0_11, %c0_12], %12 {strides = array<i32>} : memref<16x8xf32, #tpu.memory_space<vmem>>, vector<16x8xf32>,
    } else {
    }
    %c0 = arith.constant 0 : index
    %c0_1 = arith.constant 0 : index
    %3 = vector.load %arg7[%c0, %c0_1] : memref<16x8xf32, #tpu.memory_space<vmem>>, vector<16x8xf32>
    %c0_2 = arith.constant 0 : index
    %c0_3 = arith.constant 0 : index
    %4 = vector.load %arg3[%c0_2, %c0_3] : memref<16x72xbf16, #tpu.memory_space<vmem>>, vector<16x72xbf16>
    %c0_4 = arith.constant 0 : index
    %c0_5 = arith.constant 0 : index
    %5 = vector.load %arg4[%c0_4, %c0_5] : memref<72x8xbf16, #tpu.memory_space<vmem>>, vector<72x8xbf16>
    %cst = arith.constant dense<0.000000e+00> : vector<16x8xf32>
    %6 = tpu.matmul %4, %5, %cst {dimension_numbers = #tpu.dot_dimension_numbers<[1], [0], [0], [1], [0, 0, 1, 1], [], []>} : vector<16x72xbf16>, vector<72x8xbf16>, vector<16x8xf32> -> vector<16x8xf32>
    %7 = arith.addf %3, %6 : vector<16x8xf32>
    %c0_6 = arith.constant 0 : index
    %c0_7 = arith.constant 0 : index
    %8 = vector.load %arg7[%c0_6, %c0_7] : memref<16x8xf32, #tpu.memory_space<vmem>>, vector<16x8xf32>
    tpu.vector_store %arg7[%c0_6, %c0_7], %7 {strides = array<i32>} : memref<16x8xf32, #tpu.memory_space<vmem>>, vector<16x8xf32>,
    %c0_i32_8 = arith.constant 0 : i32
    %9 = arith.cmpi eq, %arg2, %c0_i32_8 : i32
    %10 = arith.extui %9 : i1 to i32
    %c0_i32_9 = arith.constant 0 : i32
    %11 = arith.cmpi ne, %10, %c0_i32_9 : i32
    scf.if %11 {
      %c0_10 = arith.constant 0 : index
      %c0_11 = arith.constant 0 : index
      %12 = vector.load %arg7[%c0_10, %c0_11] : memref<16x8xf32, #tpu.memory_space<vmem>>, vector<16x8xf32>
      %c0_12 = arith.constant 0 : index
      %c0_13 = arith.constant 0 : index
      %13 = vector.load %arg5[%c0_12, %c0_13] : memref<2x8xf32, #tpu.memory_space<vmem>>, vector<1x8xf32>
      %14 = vector.broadcast %13 : vector<1x8xf32> to vector<16x8xf32>
      %15 = arith.mulf %12, %14 : vector<16x8xf32>
      %c1 = arith.constant 1 : index
      %c0_14 = arith.constant 0 : index
      %16 = vector.load %arg5[%c1, %c0_14] : memref<2x8xf32, #tpu.memory_space<vmem>>, vector<1x8xf32>
      %17 = vector.broadcast %16 : vector<1x8xf32> to vector<16x8xf32>
      %18 = arith.addf %15, %17 : vector<16x8xf32>
      %cst_15 = arith.constant 0.000000e+00 : f32
      %19 = vector.broadcast %cst_15 : f32 to vector<16x8xf32>
      %20 = arith.maximumf %18, %19 : vector<16x8xf32>
      %21 = arith.truncf %20 : vector<16x8xf32> to vector<16x8xbf16>
      %c0_16 = arith.constant 0 : index
      %c0_17 = arith.constant 0 : index
      %22 = vector.load %arg6[%c0_16, %c0_17] : memref<16x8xbf16, #tpu.memory_space<vmem>>, vector<16x8xbf16>
      tpu.vector_store %arg6[%c0_16, %c0_17], %21 {strides = array<i32>} : memref<16x8xbf16, #tpu.memory_space<vmem>>, vector<16x8xbf16>,
    } else {
    }
    return
  }
  func.func @transform_0(%arg0: i32, %arg1: i32, %arg2: i32) -> (i32, i32) {
    %c0_i32 = arith.constant 0 : i32
    return %arg0, %arg2 : i32, i32
  }
  func.func @transform_1(%arg0: i32, %arg1: i32, %arg2: i32) -> (i32, i32) {
    %c0_i32 = arith.constant 0 : i32
    return %arg2, %arg1 : i32, i32
  }
  func.func @transform_2(%arg0: i32, %arg1: i32, %arg2: i32) -> (i32, i32) {
    %c0_i32 = arith.constant 0 : i32
    %c0_i32_0 = arith.constant 0 : i32
    return %c0_i32, %arg1 : i32, i32
  }
  func.func @transform_3(%arg0: i32, %arg1: i32, %arg2: i32) -> (i32, i32) {
    %c0_i32 = arith.constant 0 : i32
    return %arg0, %arg1 : i32, i32
  }
}

module attributes {stable_mosaic.version = 11 : i64} {
  func.func @kernel(%arg0: i32, %arg1: i32, %arg2: i32, %arg3: memref<16x8xbf16, #tpu.memory_space<vmem>>, %arg4: memref<8x32xbf16, #tpu.memory_space<vmem>>, %arg5: memref<2x32xf32, #tpu.memory_space<vmem>>, %arg6: memref<16x32xbf16, #tpu.memory_space<vmem>>, %arg7: memref<16x32xbf16, #tpu.memory_space<vmem>>, %arg8: memref<16x32xf32, #tpu.memory_space<vmem>>) attributes {dimension_semantics = [#tpu.dimension_semantics<parallel>, #tpu.dimension_semantics<parallel>, #tpu.dimension_semantics<arbitrary>], iteration_bounds = array<i64: 1, 1, 1>, scalar_prefetch = 0 : i64, scratch_operands = 1 : i64, tpu.core_type = #tpu.core_type<tc>, window_params = [{transform_indices = @transform_0, window_bounds = array<i64: 16, 8>}, {transform_indices = @transform_1, window_bounds = array<i64: 8, 32>}, {transform_indices = @transform_2, window_bounds = array<i64: 2, 32>}, {transform_indices = @transform_3, window_bounds = array<i64: 16, 32>}, {transform_indices = @transform_4, window_bounds = array<i64: 16, 32>}]} {
    %c0_i32 = arith.constant 0 : i32
    %0 = arith.cmpi eq, %arg2, %c0_i32 : i32
    %1 = arith.extui %0 : i1 to i32
    %c0_i32_0 = arith.constant 0 : i32
    %2 = arith.cmpi ne, %1, %c0_i32_0 : i32
    scf.if %2 {
      %cst_10 = arith.constant 0.000000e+00 : f32
      %12 = vector.broadcast %cst_10 : f32 to vector<16x32xf32>
      %c0_11 = arith.constant 0 : index
      %c0_12 = arith.constant 0 : index
      %13 = vector.load %arg8[%c0_11, %c0_12] : memref<16x32xf32, #tpu.memory_space<vmem>>, vector<16x32xf32>
      tpu.vector_store %arg8[%c0_11, %c0_12], %12 {strides = array<i32>} : memref<16x32xf32, #tpu.memory_space<vmem>>, vector<16x32xf32>,
    } else {
    }
    %c0 = arith.constant 0 : index
    %c0_1 = arith.constant 0 : index
    %3 = vector.load %arg8[%c0, %c0_1] : memref<16x32xf32, #tpu.memory_space<vmem>>, vector<16x32xf32>
    %c0_2 = arith.constant 0 : index
    %c0_3 = arith.constant 0 : index
    %4 = vector.load %arg3[%c0_2, %c0_3] : memref<16x8xbf16, #tpu.memory_space<vmem>>, vector<16x8xbf16>
    %c0_4 = arith.constant 0 : index
    %c0_5 = arith.constant 0 : index
    %5 = vector.load %arg4[%c0_4, %c0_5] : memref<8x32xbf16, #tpu.memory_space<vmem>>, vector<8x32xbf16>
    %cst = arith.constant dense<0.000000e+00> : vector<16x32xf32>
    %6 = tpu.matmul %4, %5, %cst {dimension_numbers = #tpu.dot_dimension_numbers<[1], [0], [0], [1], [0, 0, 1, 1], [], []>} : vector<16x8xbf16>, vector<8x32xbf16>, vector<16x32xf32> -> vector<16x32xf32>
    %7 = arith.addf %3, %6 : vector<16x32xf32>
    %c0_6 = arith.constant 0 : index
    %c0_7 = arith.constant 0 : index
    %8 = vector.load %arg8[%c0_6, %c0_7] : memref<16x32xf32, #tpu.memory_space<vmem>>, vector<16x32xf32>
    tpu.vector_store %arg8[%c0_6, %c0_7], %7 {strides = array<i32>} : memref<16x32xf32, #tpu.memory_space<vmem>>, vector<16x32xf32>,
    %c0_i32_8 = arith.constant 0 : i32
    %9 = arith.cmpi eq, %arg2, %c0_i32_8 : i32
    %10 = arith.extui %9 : i1 to i32
    %c0_i32_9 = arith.constant 0 : i32
    %11 = arith.cmpi ne, %10, %c0_i32_9 : i32
    scf.if %11 {
      %c0_10 = arith.constant 0 : index
      %c0_11 = arith.constant 0 : index
      %12 = vector.load %arg8[%c0_10, %c0_11] : memref<16x32xf32, #tpu.memory_space<vmem>>, vector<16x32xf32>
      %c0_12 = arith.constant 0 : index
      %c0_13 = arith.constant 0 : index
      %13 = vector.load %arg5[%c0_12, %c0_13] : memref<2x32xf32, #tpu.memory_space<vmem>>, vector<1x32xf32>
      %14 = vector.broadcast %13 : vector<1x32xf32> to vector<16x32xf32>
      %15 = arith.mulf %12, %14 : vector<16x32xf32>
      %c1 = arith.constant 1 : index
      %c0_14 = arith.constant 0 : index
      %16 = vector.load %arg5[%c1, %c0_14] : memref<2x32xf32, #tpu.memory_space<vmem>>, vector<1x32xf32>
      %17 = vector.broadcast %16 : vector<1x32xf32> to vector<16x32xf32>
      %18 = arith.addf %15, %17 : vector<16x32xf32>
      %c0_15 = arith.constant 0 : index
      %c0_16 = arith.constant 0 : index
      %19 = vector.load %arg6[%c0_15, %c0_16] : memref<16x32xbf16, #tpu.memory_space<vmem>>, vector<16x32xbf16>
      %20 = arith.extf %19 : vector<16x32xbf16> to vector<16x32xf32>
      %21 = arith.addf %18, %20 : vector<16x32xf32>
      %cst_17 = arith.constant 0.000000e+00 : f32
      %22 = vector.broadcast %cst_17 : f32 to vector<16x32xf32>
      %23 = arith.maximumf %21, %22 : vector<16x32xf32>
      %24 = arith.truncf %23 : vector<16x32xf32> to vector<16x32xbf16>
      %c0_18 = arith.constant 0 : index
      %c0_19 = arith.constant 0 : index
      %25 = vector.load %arg7[%c0_18, %c0_19] : memref<16x32xbf16, #tpu.memory_space<vmem>>, vector<16x32xbf16>
      tpu.vector_store %arg7[%c0_18, %c0_19], %24 {strides = array<i32>} : memref<16x32xbf16, #tpu.memory_space<vmem>>, vector<16x32xbf16>,
    } else {
    }
    return
  }
  func.func @transform_0(%arg0: i32, %arg1: i32, %arg2: i32) -> (i32, i32) {
    %c0_i32 = arith.constant 0 : i32
    return %arg0, %arg2 : i32, i32
  }
  func.func @transform_1(%arg0: i32, %arg1: i32, %arg2: i32) -> (i32, i32) {
    %c0_i32 = arith.constant 0 : i32
    return %arg2, %arg1 : i32, i32
  }
  func.func @transform_2(%arg0: i32, %arg1: i32, %arg2: i32) -> (i32, i32) {
    %c0_i32 = arith.constant 0 : i32
    %c0_i32_0 = arith.constant 0 : i32
    return %c0_i32, %arg1 : i32, i32
  }
  func.func @transform_3(%arg0: i32, %arg1: i32, %arg2: i32) -> (i32, i32) {
    %c0_i32 = arith.constant 0 : i32
    return %arg0, %arg1 : i32, i32
  }
  func.func @transform_4(%arg0: i32, %arg1: i32, %arg2: i32) -> (i32, i32) {
    %c0_i32 = arith.constant 0 : i32
    return %arg0, %arg1 : i32, i32
  }
}

module attributes {stable_mosaic.version = 11 : i64} {
  func.func @kernel(%arg0: i32, %arg1: i32, %arg2: i32, %arg3: memref<16x32xbf16, #tpu.memory_space<vmem>>, %arg4: memref<32x10xbf16, #tpu.memory_space<vmem>>, %arg5: memref<2x10xf32, #tpu.memory_space<vmem>>, %arg6: memref<16x10xf32, #tpu.memory_space<vmem>>, %arg7: memref<16x10xf32, #tpu.memory_space<vmem>>) attributes {dimension_semantics = [#tpu.dimension_semantics<parallel>, #tpu.dimension_semantics<parallel>, #tpu.dimension_semantics<arbitrary>], iteration_bounds = array<i64: 1, 1, 1>, scalar_prefetch = 0 : i64, scratch_operands = 1 : i64, tpu.core_type = #tpu.core_type<tc>, window_params = [{transform_indices = @transform_0, window_bounds = array<i64: 16, 32>}, {transform_indices = @transform_1, window_bounds = array<i64: 32, 10>}, {transform_indices = @transform_2, window_bounds = array<i64: 2, 10>}, {transform_indices = @transform_3, window_bounds = array<i64: 16, 10>}]} {
    %c0_i32 = arith.constant 0 : i32
    %0 = arith.cmpi eq, %arg2, %c0_i32 : i32
    %1 = arith.extui %0 : i1 to i32
    %c0_i32_0 = arith.constant 0 : i32
    %2 = arith.cmpi ne, %1, %c0_i32_0 : i32
    scf.if %2 {
      %cst_10 = arith.constant 0.000000e+00 : f32
      %12 = vector.broadcast %cst_10 : f32 to vector<16x10xf32>
      %c0_11 = arith.constant 0 : index
      %c0_12 = arith.constant 0 : index
      %13 = vector.load %arg7[%c0_11, %c0_12] : memref<16x10xf32, #tpu.memory_space<vmem>>, vector<16x10xf32>
      tpu.vector_store %arg7[%c0_11, %c0_12], %12 {strides = array<i32>} : memref<16x10xf32, #tpu.memory_space<vmem>>, vector<16x10xf32>,
    } else {
    }
    %c0 = arith.constant 0 : index
    %c0_1 = arith.constant 0 : index
    %3 = vector.load %arg7[%c0, %c0_1] : memref<16x10xf32, #tpu.memory_space<vmem>>, vector<16x10xf32>
    %c0_2 = arith.constant 0 : index
    %c0_3 = arith.constant 0 : index
    %4 = vector.load %arg3[%c0_2, %c0_3] : memref<16x32xbf16, #tpu.memory_space<vmem>>, vector<16x32xbf16>
    %c0_4 = arith.constant 0 : index
    %c0_5 = arith.constant 0 : index
    %5 = vector.load %arg4[%c0_4, %c0_5] : memref<32x10xbf16, #tpu.memory_space<vmem>>, vector<32x10xbf16>
    %cst = arith.constant dense<0.000000e+00> : vector<16x10xf32>
    %6 = tpu.matmul %4, %5, %cst {dimension_numbers = #tpu.dot_dimension_numbers<[1], [0], [0], [1], [0, 0, 1, 1], [], []>} : vector<16x32xbf16>, vector<32x10xbf16>, vector<16x10xf32> -> vector<16x10xf32>
    %7 = arith.addf %3, %6 : vector<16x10xf32>
    %c0_6 = arith.constant 0 : index
    %c0_7 = arith.constant 0 : index
    %8 = vector.load %arg7[%c0_6, %c0_7] : memref<16x10xf32, #tpu.memory_space<vmem>>, vector<16x10xf32>
    tpu.vector_store %arg7[%c0_6, %c0_7], %7 {strides = array<i32>} : memref<16x10xf32, #tpu.memory_space<vmem>>, vector<16x10xf32>,
    %c0_i32_8 = arith.constant 0 : i32
    %9 = arith.cmpi eq, %arg2, %c0_i32_8 : i32
    %10 = arith.extui %9 : i1 to i32
    %c0_i32_9 = arith.constant 0 : i32
    %11 = arith.cmpi ne, %10, %c0_i32_9 : i32
    scf.if %11 {
      %c0_10 = arith.constant 0 : index
      %c0_11 = arith.constant 0 : index
      %12 = vector.load %arg7[%c0_10, %c0_11] : memref<16x10xf32, #tpu.memory_space<vmem>>, vector<16x10xf32>
      %c0_12 = arith.constant 0 : index
      %c0_13 = arith.constant 0 : index
      %13 = vector.load %arg5[%c0_12, %c0_13] : memref<2x10xf32, #tpu.memory_space<vmem>>, vector<1x10xf32>
      %14 = vector.broadcast %13 : vector<1x10xf32> to vector<16x10xf32>
      %15 = arith.mulf %12, %14 : vector<16x10xf32>
      %c1 = arith.constant 1 : index
      %c0_14 = arith.constant 0 : index
      %16 = vector.load %arg5[%c1, %c0_14] : memref<2x10xf32, #tpu.memory_space<vmem>>, vector<1x10xf32>
      %17 = vector.broadcast %16 : vector<1x10xf32> to vector<16x10xf32>
      %18 = arith.addf %15, %17 : vector<16x10xf32>
      %c0_15 = arith.constant 0 : index
      %c0_16 = arith.constant 0 : index
      %19 = vector.load %arg6[%c0_15, %c0_16] : memref<16x10xf32, #tpu.memory_space<vmem>>, vector<16x10xf32>
      tpu.vector_store %arg6[%c0_15, %c0_16], %18 {strides = array<i32>} : memref<16x10xf32, #tpu.memory_space<vmem>>, vector<16x10xf32>,
    } else {
    }
    return
  }
  func.func @transform_0(%arg0: i32, %arg1: i32, %arg2: i32) -> (i32, i32) {
    %c0_i32 = arith.constant 0 : i32
    return %arg0, %arg2 : i32, i32
  }
  func.func @transform_1(%arg0: i32, %arg1: i32, %arg2: i32) -> (i32, i32) {
    %c0_i32 = arith.constant 0 : i32
    return %arg2, %arg1 : i32, i32
  }
  func.func @transform_2(%arg0: i32, %arg1: i32, %arg2: i32) -> (i32, i32) {
    %c0_i32 = arith.constant 0 : i32
    %c0_i32_0 = arith.constant 0 : i32
    return %c0_i32, %arg1 : i32, i32
  }
  func.func @transform_3(%arg0: i32, %arg1: i32, %arg2: i32) -> (i32, i32) {
    %c0_i32 = arith.constant 0 : i32
    return %arg0, %arg1 : i32, i32
  }
}

module attributes {stable_mosaic.version = 11 : i64} {
  func.func @kernel(%arg0: i32, %arg1: i32, %arg2: memref<80x4xbf16, #tpu.memory_space<vmem>>, %arg3: memref<16x4xbf16, #tpu.memory_space<vmem>>, %arg4: memref<9x4x4xbf16, #tpu.memory_space<vmem>>, %arg5: memref<2x4xf32, #tpu.memory_space<vmem>>, %arg6: memref<80x1xf32, #tpu.memory_space<vmem>>, %arg7: memref<80x4xbf16, #tpu.memory_space<vmem>>, %arg8: memref<96x4xbf16, #tpu.memory_space<vmem>>) attributes {dimension_semantics = [#tpu.dimension_semantics<parallel>, #tpu.dimension_semantics<parallel>], iteration_bounds = array<i64: 1, 1>, scalar_prefetch = 0 : i64, scratch_operands = 1 : i64, tpu.core_type = #tpu.core_type<tc>, window_params = [{transform_indices = @transform_0, window_bounds = array<i64: 80, 4>}, {transform_indices = @transform_1, window_bounds = array<i64: 16, 4>}, {transform_indices = @transform_2, window_bounds = array<i64: 9, 4, 4>}, {transform_indices = @transform_3, window_bounds = array<i64: 2, 4>}, {transform_indices = @transform_4, window_bounds = array<i64: 80, 1>}, {transform_indices = @transform_5, window_bounds = array<i64: 80, 4>}]} {
    %c0 = arith.constant 0 : index
    %c0_0 = arith.constant 0 : index
    %0 = vector.load %arg2[%c0, %c0_0] : memref<80x4xbf16, #tpu.memory_space<vmem>>, vector<80x4xbf16>
    %c0_1 = arith.constant 0 : index
    %c0_2 = arith.constant 0 : index
    %1 = vector.load %arg8[%c0_1, %c0_2] : memref<96x4xbf16, #tpu.memory_space<vmem>>, vector<80x4xbf16>
    tpu.vector_store %arg8[%c0_1, %c0_2], %0 {strides = array<i32>} : memref<96x4xbf16, #tpu.memory_space<vmem>>, vector<80x4xbf16>,
    %c0_3 = arith.constant 0 : index
    %c0_4 = arith.constant 0 : index
    %2 = vector.load %arg3[%c0_3, %c0_4] : memref<16x4xbf16, #tpu.memory_space<vmem>>, vector<16x4xbf16>
    %c80 = arith.constant 80 : index
    %c0_5 = arith.constant 0 : index
    %3 = vector.load %arg8[%c80, %c0_5] : memref<96x4xbf16, #tpu.memory_space<vmem>>, vector<16x4xbf16>
    tpu.vector_store %arg8[%c80, %c0_5], %2 {strides = array<i32>} : memref<96x4xbf16, #tpu.memory_space<vmem>>, vector<16x4xbf16>,
    %cst = arith.constant 0.000000e+00 : f32
    %4 = vector.broadcast %cst : f32 to vector<80x4xf32>
    %c0_6 = arith.constant 0 : index
    %c0_7 = arith.constant 0 : index
    %5 = vector.load %arg8[%c0_6, %c0_7] : memref<96x4xbf16, #tpu.memory_space<vmem>>, vector<80x4xbf16>
    %c0_8 = arith.constant 0 : index
    %c0_9 = arith.constant 0 : index
    %c0_10 = arith.constant 0 : index
    %6 = vector.load %arg4[%c0_8, %c0_9, %c0_10] : memref<9x4x4xbf16, #tpu.memory_space<vmem>>, vector<1x4x4xbf16>
    %7 = vector.shape_cast %6 : vector<1x4x4xbf16> to vector<4x4xbf16>
    %cst_11 = arith.constant dense<0.000000e+00> : vector<80x4xf32>
    %8 = tpu.matmul %5, %7, %cst_11 {dimension_numbers = #tpu.dot_dimension_numbers<[1], [0], [0], [1], [0, 0, 1, 1], [], []>} : vector<80x4xbf16>, vector<4x4xbf16>, vector<80x4xf32> -> vector<80x4xf32>
    %9 = arith.addf %4, %8 : vector<80x4xf32>
    %c1 = arith.constant 1 : index
    %c0_12 = arith.constant 0 : index
    %10 = vector.load %arg8[%c1, %c0_12] : memref<96x4xbf16, #tpu.memory_space<vmem>>, vector<80x4xbf16>
    %c1_13 = arith.constant 1 : index
    %c0_14 = arith.constant 0 : index
    %c0_15 = arith.constant 0 : index
    %11 = vector.load %arg4[%c1_13, %c0_14, %c0_15] : memref<9x4x4xbf16, #tpu.memory_space<vmem>>, vector<1x4x4xbf16>
    %12 = vector.shape_cast %11 : vector<1x4x4xbf16> to vector<4x4xbf16>
    %cst_16 = arith.constant dense<0.000000e+00> : vector<80x4xf32>
    %13 = tpu.matmul %10, %12, %cst_16 {dimension_numbers = #tpu.dot_dimension_numbers<[1], [0], [0], [1], [0, 0, 1, 1], [], []>} : vector<80x4xbf16>, vector<4x4xbf16>, vector<80x4xf32> -> vector<80x4xf32>
    %14 = arith.addf %9, %13 : vector<80x4xf32>
    %c2 = arith.constant 2 : index
    %c0_17 = arith.constant 0 : index
    %15 = vector.load %arg8[%c2, %c0_17] : memref<96x4xbf16, #tpu.memory_space<vmem>>, vector<80x4xbf16>
    %c2_18 = arith.constant 2 : index
    %c0_19 = arith.constant 0 : index
    %c0_20 = arith.constant 0 : index
    %16 = vector.load %arg4[%c2_18, %c0_19, %c0_20] : memref<9x4x4xbf16, #tpu.memory_space<vmem>>, vector<1x4x4xbf16>
    %17 = vector.shape_cast %16 : vector<1x4x4xbf16> to vector<4x4xbf16>
    %cst_21 = arith.constant dense<0.000000e+00> : vector<80x4xf32>
    %18 = tpu.matmul %15, %17, %cst_21 {dimension_numbers = #tpu.dot_dimension_numbers<[1], [0], [0], [1], [0, 0, 1, 1], [], []>} : vector<80x4xbf16>, vector<4x4xbf16>, vector<80x4xf32> -> vector<80x4xf32>
    %19 = arith.addf %14, %18 : vector<80x4xf32>
    %c6 = arith.constant 6 : index
    %c0_22 = arith.constant 0 : index
    %20 = vector.load %arg8[%c6, %c0_22] : memref<96x4xbf16, #tpu.memory_space<vmem>>, vector<80x4xbf16>
    %c3 = arith.constant 3 : index
    %c0_23 = arith.constant 0 : index
    %c0_24 = arith.constant 0 : index
    %21 = vector.load %arg4[%c3, %c0_23, %c0_24] : memref<9x4x4xbf16, #tpu.memory_space<vmem>>, vector<1x4x4xbf16>
    %22 = vector.shape_cast %21 : vector<1x4x4xbf16> to vector<4x4xbf16>
    %cst_25 = arith.constant dense<0.000000e+00> : vector<80x4xf32>
    %23 = tpu.matmul %20, %22, %cst_25 {dimension_numbers = #tpu.dot_dimension_numbers<[1], [0], [0], [1], [0, 0, 1, 1], [], []>} : vector<80x4xbf16>, vector<4x4xbf16>, vector<80x4xf32> -> vector<80x4xf32>
    %24 = arith.addf %19, %23 : vector<80x4xf32>
    %c7 = arith.constant 7 : index
    %c0_26 = arith.constant 0 : index
    %25 = vector.load %arg8[%c7, %c0_26] : memref<96x4xbf16, #tpu.memory_space<vmem>>, vector<80x4xbf16>
    %c4 = arith.constant 4 : index
    %c0_27 = arith.constant 0 : index
    %c0_28 = arith.constant 0 : index
    %26 = vector.load %arg4[%c4, %c0_27, %c0_28] : memref<9x4x4xbf16, #tpu.memory_space<vmem>>, vector<1x4x4xbf16>
    %27 = vector.shape_cast %26 : vector<1x4x4xbf16> to vector<4x4xbf16>
    %cst_29 = arith.constant dense<0.000000e+00> : vector<80x4xf32>
    %28 = tpu.matmul %25, %27, %cst_29 {dimension_numbers = #tpu.dot_dimension_numbers<[1], [0], [0], [1], [0, 0, 1, 1], [], []>} : vector<80x4xbf16>, vector<4x4xbf16>, vector<80x4xf32> -> vector<80x4xf32>
    %29 = arith.addf %24, %28 : vector<80x4xf32>
    %c8 = arith.constant 8 : index
    %c0_30 = arith.constant 0 : index
    %30 = vector.load %arg8[%c8, %c0_30] : memref<96x4xbf16, #tpu.memory_space<vmem>>, vector<80x4xbf16>
    %c5 = arith.constant 5 : index
    %c0_31 = arith.constant 0 : index
    %c0_32 = arith.constant 0 : index
    %31 = vector.load %arg4[%c5, %c0_31, %c0_32] : memref<9x4x4xbf16, #tpu.memory_space<vmem>>, vector<1x4x4xbf16>
    %32 = vector.shape_cast %31 : vector<1x4x4xbf16> to vector<4x4xbf16>
    %cst_33 = arith.constant dense<0.000000e+00> : vector<80x4xf32>
    %33 = tpu.matmul %30, %32, %cst_33 {dimension_numbers = #tpu.dot_dimension_numbers<[1], [0], [0], [1], [0, 0, 1, 1], [], []>} : vector<80x4xbf16>, vector<4x4xbf16>, vector<80x4xf32> -> vector<80x4xf32>
    %34 = arith.addf %29, %33 : vector<80x4xf32>
    %c12 = arith.constant 12 : index
    %c0_34 = arith.constant 0 : index
    %35 = vector.load %arg8[%c12, %c0_34] : memref<96x4xbf16, #tpu.memory_space<vmem>>, vector<80x4xbf16>
    %c6_35 = arith.constant 6 : index
    %c0_36 = arith.constant 0 : index
    %c0_37 = arith.constant 0 : index
    %36 = vector.load %arg4[%c6_35, %c0_36, %c0_37] : memref<9x4x4xbf16, #tpu.memory_space<vmem>>, vector<1x4x4xbf16>
    %37 = vector.shape_cast %36 : vector<1x4x4xbf16> to vector<4x4xbf16>
    %cst_38 = arith.constant dense<0.000000e+00> : vector<80x4xf32>
    %38 = tpu.matmul %35, %37, %cst_38 {dimension_numbers = #tpu.dot_dimension_numbers<[1], [0], [0], [1], [0, 0, 1, 1], [], []>} : vector<80x4xbf16>, vector<4x4xbf16>, vector<80x4xf32> -> vector<80x4xf32>
    %39 = arith.addf %34, %38 : vector<80x4xf32>
    %c13 = arith.constant 13 : index
    %c0_39 = arith.constant 0 : index
    %40 = vector.load %arg8[%c13, %c0_39] : memref<96x4xbf16, #tpu.memory_space<vmem>>, vector<80x4xbf16>
    %c7_40 = arith.constant 7 : index
    %c0_41 = arith.constant 0 : index
    %c0_42 = arith.constant 0 : index
    %41 = vector.load %arg4[%c7_40, %c0_41, %c0_42] : memref<9x4x4xbf16, #tpu.memory_space<vmem>>, vector<1x4x4xbf16>
    %42 = vector.shape_cast %41 : vector<1x4x4xbf16> to vector<4x4xbf16>
    %cst_43 = arith.constant dense<0.000000e+00> : vector<80x4xf32>
    %43 = tpu.matmul %40, %42, %cst_43 {dimension_numbers = #tpu.dot_dimension_numbers<[1], [0], [0], [1], [0, 0, 1, 1], [], []>} : vector<80x4xbf16>, vector<4x4xbf16>, vector<80x4xf32> -> vector<80x4xf32>
    %44 = arith.addf %39, %43 : vector<80x4xf32>
    %c14 = arith.constant 14 : index
    %c0_44 = arith.constant 0 : index
    %45 = vector.load %arg8[%c14, %c0_44] : memref<96x4xbf16, #tpu.memory_space<vmem>>, vector<80x4xbf16>
    %c8_45 = arith.constant 8 : index
    %c0_46 = arith.constant 0 : index
    %c0_47 = arith.constant 0 : index
    %46 = vector.load %arg4[%c8_45, %c0_46, %c0_47] : memref<9x4x4xbf16, #tpu.memory_space<vmem>>, vector<1x4x4xbf16>
    %47 = vector.shape_cast %46 : vector<1x4x4xbf16> to vector<4x4xbf16>
    %cst_48 = arith.constant dense<0.000000e+00> : vector<80x4xf32>
    %48 = tpu.matmul %45, %47, %cst_48 {dimension_numbers = #tpu.dot_dimension_numbers<[1], [0], [0], [1], [0, 0, 1, 1], [], []>} : vector<80x4xbf16>, vector<4x4xbf16>, vector<80x4xf32> -> vector<80x4xf32>
    %49 = arith.addf %44, %48 : vector<80x4xf32>
    %c0_49 = arith.constant 0 : index
    %c0_50 = arith.constant 0 : index
    %50 = vector.load %arg5[%c0_49, %c0_50] : memref<2x4xf32, #tpu.memory_space<vmem>>, vector<1x4xf32>
    %51 = vector.broadcast %50 : vector<1x4xf32> to vector<80x4xf32>
    %52 = arith.mulf %49, %51 : vector<80x4xf32>
    %c1_51 = arith.constant 1 : index
    %c0_52 = arith.constant 0 : index
    %53 = vector.load %arg5[%c1_51, %c0_52] : memref<2x4xf32, #tpu.memory_space<vmem>>, vector<1x4xf32>
    %54 = vector.broadcast %53 : vector<1x4xf32> to vector<80x4xf32>
    %55 = arith.addf %52, %54 : vector<80x4xf32>
    %cst_53 = arith.constant 0.000000e+00 : f32
    %56 = vector.broadcast %cst_53 : f32 to vector<80x4xf32>
    %57 = arith.maximumf %55, %56 : vector<80x4xf32>
    %c0_54 = arith.constant 0 : index
    %c0_55 = arith.constant 0 : index
    %58 = vector.load %arg6[%c0_54, %c0_55] : memref<80x1xf32, #tpu.memory_space<vmem>>, vector<80x1xf32>
    %59 = vector.broadcast %58 : vector<80x1xf32> to vector<80x4xf32>
    %60 = arith.mulf %57, %59 : vector<80x4xf32>
    %61 = arith.truncf %60 : vector<80x4xf32> to vector<80x4xbf16>
    %c0_56 = arith.constant 0 : index
    %c0_57 = arith.constant 0 : index
    %62 = vector.load %arg7[%c0_56, %c0_57] : memref<80x4xbf16, #tpu.memory_space<vmem>>, vector<80x4xbf16>
    tpu.vector_store %arg7[%c0_56, %c0_57], %61 {strides = array<i32>} : memref<80x4xbf16, #tpu.memory_space<vmem>>, vector<80x4xbf16>,
    return
  }
  func.func @transform_0(%arg0: i32, %arg1: i32) -> (i32, i32) {
    %c0_i32 = arith.constant 0 : i32
    %c0_i32_0 = arith.constant 0 : i32
    return %arg0, %c0_i32 : i32, i32
  }
  func.func @transform_1(%arg0: i32, %arg1: i32) -> (i32, i32) {
    %c1_i32 = arith.constant 1 : i32
    %0 = arith.addi %arg0, %c1_i32 : i32
    %c5_i32 = arith.constant 5 : i32
    %1 = arith.muli %0, %c5_i32 : i32
    %c0_i32 = arith.constant 0 : i32
    %c0_i32_0 = arith.constant 0 : i32
    return %1, %c0_i32 : i32, i32
  }
  func.func @transform_2(%arg0: i32, %arg1: i32) -> (i32, i32, i32) {
    %c0_i32 = arith.constant 0 : i32
    %c0_i32_0 = arith.constant 0 : i32
    %c0_i32_1 = arith.constant 0 : i32
    return %c0_i32, %c0_i32_0, %arg1 : i32, i32, i32
  }
  func.func @transform_3(%arg0: i32, %arg1: i32) -> (i32, i32) {
    %c0_i32 = arith.constant 0 : i32
    %c0_i32_0 = arith.constant 0 : i32
    return %c0_i32, %arg1 : i32, i32
  }
  func.func @transform_4(%arg0: i32, %arg1: i32) -> (i32, i32) {
    %c0_i32 = arith.constant 0 : i32
    %c0_i32_0 = arith.constant 0 : i32
    return %arg0, %c0_i32 : i32, i32
  }
  func.func @transform_5(%arg0: i32, %arg1: i32) -> (i32, i32) {
    %c0_i32 = arith.constant 0 : i32
    return %arg0, %arg1 : i32, i32
  }
}

module attributes {stable_mosaic.version = 11 : i64} {
  func.func @kernel(%arg0: i32, %arg1: i32, %arg2: i32, %arg3: memref<32x4xbf16, #tpu.memory_space<vmem>>, %arg4: memref<4x16xbf16, #tpu.memory_space<vmem>>, %arg5: memref<2x16xf32, #tpu.memory_space<vmem>>, %arg6: memref<32x16xbf16, #tpu.memory_space<vmem>>, %arg7: memref<32x16xbf16, #tpu.memory_space<vmem>>, %arg8: memref<32x16xf32, #tpu.memory_space<vmem>>) attributes {dimension_semantics = [#tpu.dimension_semantics<parallel>, #tpu.dimension_semantics<parallel>, #tpu.dimension_semantics<arbitrary>], iteration_bounds = array<i64: 1, 1, 1>, scalar_prefetch = 0 : i64, scratch_operands = 1 : i64, tpu.core_type = #tpu.core_type<tc>, window_params = [{transform_indices = @transform_0, window_bounds = array<i64: 32, 4>}, {transform_indices = @transform_1, window_bounds = array<i64: 4, 16>}, {transform_indices = @transform_2, window_bounds = array<i64: 2, 16>}, {transform_indices = @transform_3, window_bounds = array<i64: 32, 16>}, {transform_indices = @transform_4, window_bounds = array<i64: 32, 16>}]} {
    %c0_i32 = arith.constant 0 : i32
    %0 = arith.cmpi eq, %arg2, %c0_i32 : i32
    %1 = arith.extui %0 : i1 to i32
    %c0_i32_0 = arith.constant 0 : i32
    %2 = arith.cmpi ne, %1, %c0_i32_0 : i32
    scf.if %2 {
      %cst_10 = arith.constant 0.000000e+00 : f32
      %12 = vector.broadcast %cst_10 : f32 to vector<32x16xf32>
      %c0_11 = arith.constant 0 : index
      %c0_12 = arith.constant 0 : index
      %13 = vector.load %arg8[%c0_11, %c0_12] : memref<32x16xf32, #tpu.memory_space<vmem>>, vector<32x16xf32>
      tpu.vector_store %arg8[%c0_11, %c0_12], %12 {strides = array<i32>} : memref<32x16xf32, #tpu.memory_space<vmem>>, vector<32x16xf32>,
    } else {
    }
    %c0 = arith.constant 0 : index
    %c0_1 = arith.constant 0 : index
    %3 = vector.load %arg8[%c0, %c0_1] : memref<32x16xf32, #tpu.memory_space<vmem>>, vector<32x16xf32>
    %c0_2 = arith.constant 0 : index
    %c0_3 = arith.constant 0 : index
    %4 = vector.load %arg3[%c0_2, %c0_3] : memref<32x4xbf16, #tpu.memory_space<vmem>>, vector<32x4xbf16>
    %c0_4 = arith.constant 0 : index
    %c0_5 = arith.constant 0 : index
    %5 = vector.load %arg4[%c0_4, %c0_5] : memref<4x16xbf16, #tpu.memory_space<vmem>>, vector<4x16xbf16>
    %cst = arith.constant dense<0.000000e+00> : vector<32x16xf32>
    %6 = tpu.matmul %4, %5, %cst {dimension_numbers = #tpu.dot_dimension_numbers<[1], [0], [0], [1], [0, 0, 1, 1], [], []>} : vector<32x4xbf16>, vector<4x16xbf16>, vector<32x16xf32> -> vector<32x16xf32>
    %7 = arith.addf %3, %6 : vector<32x16xf32>
    %c0_6 = arith.constant 0 : index
    %c0_7 = arith.constant 0 : index
    %8 = vector.load %arg8[%c0_6, %c0_7] : memref<32x16xf32, #tpu.memory_space<vmem>>, vector<32x16xf32>
    tpu.vector_store %arg8[%c0_6, %c0_7], %7 {strides = array<i32>} : memref<32x16xf32, #tpu.memory_space<vmem>>, vector<32x16xf32>,
    %c0_i32_8 = arith.constant 0 : i32
    %9 = arith.cmpi eq, %arg2, %c0_i32_8 : i32
    %10 = arith.extui %9 : i1 to i32
    %c0_i32_9 = arith.constant 0 : i32
    %11 = arith.cmpi ne, %10, %c0_i32_9 : i32
    scf.if %11 {
      %c0_10 = arith.constant 0 : index
      %c0_11 = arith.constant 0 : index
      %12 = vector.load %arg8[%c0_10, %c0_11] : memref<32x16xf32, #tpu.memory_space<vmem>>, vector<32x16xf32>
      %c0_12 = arith.constant 0 : index
      %c0_13 = arith.constant 0 : index
      %13 = vector.load %arg5[%c0_12, %c0_13] : memref<2x16xf32, #tpu.memory_space<vmem>>, vector<1x16xf32>
      %14 = vector.broadcast %13 : vector<1x16xf32> to vector<32x16xf32>
      %15 = arith.mulf %12, %14 : vector<32x16xf32>
      %c1 = arith.constant 1 : index
      %c0_14 = arith.constant 0 : index
      %16 = vector.load %arg5[%c1, %c0_14] : memref<2x16xf32, #tpu.memory_space<vmem>>, vector<1x16xf32>
      %17 = vector.broadcast %16 : vector<1x16xf32> to vector<32x16xf32>
      %18 = arith.addf %15, %17 : vector<32x16xf32>
      %c0_15 = arith.constant 0 : index
      %c0_16 = arith.constant 0 : index
      %19 = vector.load %arg6[%c0_15, %c0_16] : memref<32x16xbf16, #tpu.memory_space<vmem>>, vector<32x16xbf16>
      %20 = arith.extf %19 : vector<32x16xbf16> to vector<32x16xf32>
      %21 = arith.addf %18, %20 : vector<32x16xf32>
      %cst_17 = arith.constant 0.000000e+00 : f32
      %22 = vector.broadcast %cst_17 : f32 to vector<32x16xf32>
      %23 = arith.maximumf %21, %22 : vector<32x16xf32>
      %24 = arith.truncf %23 : vector<32x16xf32> to vector<32x16xbf16>
      %c0_18 = arith.constant 0 : index
      %c0_19 = arith.constant 0 : index
      %25 = vector.load %arg7[%c0_18, %c0_19] : memref<32x16xbf16, #tpu.memory_space<vmem>>, vector<32x16xbf16>
      tpu.vector_store %arg7[%c0_18, %c0_19], %24 {strides = array<i32>} : memref<32x16xbf16, #tpu.memory_space<vmem>>, vector<32x16xbf16>,
    } else {
    }
    return
  }
  func.func @transform_0(%arg0: i32, %arg1: i32, %arg2: i32) -> (i32, i32) {
    %c0_i32 = arith.constant 0 : i32
    return %arg0, %arg2 : i32, i32
  }
  func.func @transform_1(%arg0: i32, %arg1: i32, %arg2: i32) -> (i32, i32) {
    %c0_i32 = arith.constant 0 : i32
    return %arg2, %arg1 : i32, i32
  }
  func.func @transform_2(%arg0: i32, %arg1: i32, %arg2: i32) -> (i32, i32) {
    %c0_i32 = arith.constant 0 : i32
    %c0_i32_0 = arith.constant 0 : i32
    return %c0_i32, %arg1 : i32, i32
  }
  func.func @transform_3(%arg0: i32, %arg1: i32, %arg2: i32) -> (i32, i32) {
    %c0_i32 = arith.constant 0 : i32
    return %arg0, %arg1 : i32, i32
  }
  func.func @transform_4(%arg0: i32, %arg1: i32, %arg2: i32) -> (i32, i32) {
    %c0_i32 = arith.constant 0 : i32
    return %arg0, %arg1 : i32, i32
  }
}

</mosaic_0001>

<bundles_post_ra>
// kernel: _lambda_.22
= control target key start
LH: loop header
LB: loop body
LE: loop exit
PB: predicated region body
PF: predicated region fallthrough
CT: control target
= control target key end

     0   :  { %vm19_vm0 = vcmask 130048   ;;  %v697_v0 = vmov 0   ;;  %v698_v2 = vmov 0.0   ;;  %vm240_vm1 = vcmask 556032   ;;  %s978_s1 = inlined_call_operand.vmem [shape: bf16[196,16], index: 1, kind: input, shape index: {}]   ;;  %s979_s0 = inlined_call_operand.vmem [shape: bf16[128,196], index: 0, kind: input, shape index: {}]   ;;  %s980_s2 = inlined_call_operand.vmem [shape: f32[2,16], index: 2, kind: input, shape index: {}]   ;;  %s981_s3 = inlined_call_operand.vmem [shape: bf16[128,16], index: 3, kind: output, shape index: {}]  }
   0x1   :  { %269 = vmatprep.subr.bf16.mxu0 %v697_v0  ;;  %632 = vmatprep.subr.bf16.mxu1 %v697_v0  ;;  %v660_v1 = vld [vmem:[%s978_s1] sm:$0xff]   ;;  %20 = vst.msk [vmem:[#allocation2] sm:$0xff] %vm19_vm0, %v698_v2  ;;  %21 = vst.msk [vmem:[#allocation2 + $0x8] sm:$0xff] %vm19_vm0, %v698_v2  ;;  %v661_v3 = vld [vmem:[%s978_s1 + $0x8] sm:$0xff]   ;;  %vm265_vm2 = vcmask 1041408   ;;  %vm540_vm3 = vcmask 125952  }
   0x2   :  { %22 = vst.msk [vmem:[#allocation2 + $0x10] sm:$0xff] %vm19_vm0, %v698_v2  ;;  %23 = vst.msk [vmem:[#allocation2 + $0x18] sm:$0xff] %vm19_vm0, %v698_v2  ;;  %270 = vmatpush1.bf16.msra.mxu0 %v660_v1  ;;  %645 = vmatpush1.bf16.msra.mxu1 %v660_v1  ;;  %v662_v4 = vld [vmem:[%s978_s1 + $0x10] sm:$0xff]   ;;  %v663_v5 = vld [vmem:[%s978_s1 + $0x18] sm:$0xff]  }
   0x3   :  { %24 = vst.msk [vmem:[#allocation2 + $0x20] sm:$0xff] %vm19_vm0, %v698_v2  ;;  %25 = vst.msk [vmem:[#allocation2 + $0x28] sm:$0xff] %vm19_vm0, %v698_v2  ;;  %271 = vmatprep.subr.bf16.mxu0 %v697_v0  ;;  %633 = vmatprep.subr.bf16.mxu1 %v697_v0  ;;  %v675_v6 = vld [vmem:[%s979_s0 + $0x4] ss:$8 sps:$4 sm:$0xff]   ;;  %v666_v10 = vld [vmem:[%s978_s1 + $0x30] sm:$0xff]  }
   0x4   :  { %26 = vst.msk [vmem:[#allocation2 + $0x30] sm:$0xff] %vm19_vm0, %v698_v2  ;;  %27 = vst.msk [vmem:[#allocation2 + $0x38] sm:$0xff] %vm19_vm0, %v698_v2  ;;  %v664_v7 = vld [vmem:[%s978_s1 + $0x20] sm:$0xff]   ;;  %590 = vmatprep.mubr.msk.bf16.mxu0 %vm240_vm1, %v675_v6  ;;  %v665_v9 = vld [vmem:[%s978_s1 + $0x28] sm:$0xff]  }
   0x5   :  { %28 = vst.msk [vmem:[#allocation2 + $0x40] sm:$0xff] %vm19_vm0, %v698_v2  ;;  %29 = vst.msk [vmem:[#allocation2 + $0x48] sm:$0xff] %vm19_vm0, %v698_v2  ;;  %v678_v8 = vld [vmem:[%s979_s0 + $0x44] ss:$8 sps:$4 sm:$0xff]   ;;  %v667_v11 = vld [vmem:[%s978_s1 + $0x38] sm:$0xff]  }
   0x6   :  { %30 = vst.msk [vmem:[#allocation2 + $0x50] sm:$0xff] %vm19_vm0, %v698_v2  ;;  %31 = vst.msk [vmem:[#allocation2 + $0x58] sm:$0xff] %vm19_vm0, %v698_v2  ;;  %272 = vmatpush1.bf16.msra.mxu0 %v661_v3  ;;  %646 = vmatpush1.bf16.msra.mxu1 %v661_v3  ;;  %v668_v12 = vld [vmem:[%s978_s1 + $0x40] sm:$0xff]   ;;  %v669_v13 = vld [vmem:[%s978_s1 + $0x48] sm:$0xff]  }
   0x7   :  { %32 = vst.msk [vmem:[#allocation2 + $0x60] sm:$0xff] %vm19_vm0, %v698_v2  ;;  %33 = vst.msk [vmem:[#allocation2 + $0x68] sm:$0xff] %vm19_vm0, %v698_v2  ;;  %273 = vmatprep.subr.bf16.mxu0 %v697_v0  ;;  %634 = vmatprep.subr.bf16.mxu1 %v697_v0  ;;  %v670_v14 = vld [vmem:[%s978_s1 + $0x50] sm:$0xff]   ;;  %v671_v15 = vld [vmem:[%s978_s1 + $0x58] sm:$0xff]  }
   0x8   :  { %34 = vst.msk [vmem:[#allocation2 + $0x70] sm:$0xff] %vm19_vm0, %v698_v2  ;;  %35 = vst.msk [vmem:[#allocation2 + $0x78] sm:$0xff] %vm19_vm0, %v698_v2  ;;  %594 = vmatprep.mubr.msk.bf16.mxu1 %vm240_vm1, %v678_v8  ;;  %v672_v16 = vld [vmem:[%s978_s1 + $0x60] ss:$0 sps:$4 sm:$0x33]   ;;  %v37_v36 = vld [vmem:[#allocation2 + $0x8] sm:$0xff] }
   0x9   :  { %v267_v17 = vsel %vm265_vm2, %v672_v16, 0  ;;  %v673_v18 = vld [vmem:[%s979_s0] ss:$8 sps:$4 sm:$0xff]   ;;  %v679_v20 = vld [vmem:[%s979_s0 + $0x14] ss:$8 sps:$4 sm:$0xff]  }
   0xa   :  { %274 = vmatpush1.bf16.msra.mxu0 %v662_v4  ;;  %647 = vmatpush1.bf16.msra.mxu1 %v662_v4  ;;  %v676_v19 = vld [vmem:[%s979_s0 + $0x40] ss:$8 sps:$4 sm:$0xff]   ;;  %v681_v21 = vld [vmem:[%s979_s0 + $0x54] ss:$8 sps:$4 sm:$0xff]   ;;  %v683_v22 = vld [vmem:[%s979_s0 + $0x10] ss:$8 sps:$4 sm:$0xff]  }
   0xb   :  { %275 = vmatprep.subr.bf16.mxu0 %v697_v0  ;;  %635 = vmatprep.subr.bf16.mxu1 %v697_v0  ;;  %v684_v23 = vld [vmem:[%s979_s0 + $0x50] ss:$8 sps:$4 sm:$0xff]   ;;  %v685_v24 = vld [vmem:[%s979_s0 + $0x24] ss:$8 sps:$4 sm:$0xff]   ;;  %v689_v26 = vld [vmem:[%s979_s0 + $0x20] ss:$8 sps:$4 sm:$0xff]  }
   0xc   :  { %v687_v25 = vld [vmem:[%s979_s0 + $0x64] ss:$8 sps:$4 sm:$0xff]   ;;  %v690_v27 = vld [vmem:[%s979_s0 + $0x60] ss:$8 sps:$4 sm:$0xff]   ;;  %v691_v28 = vld [vmem:[%s979_s0 + $0x34] ss:$8 sps:$4 sm:$0xff]  }
   0xd   :  { %v693_v29 = vld [vmem:[%s979_s0 + $0x74] ss:$8 sps:$4 sm:$0xff]   ;;  %v695_v30 = vld [vmem:[%s979_s0 + $0x30] ss:$8 sps:$4 sm:$0xff]   ;;  %v36_v32 = vld [vmem:[#allocation2] sm:$0xff] }
   0xe   :  { %276 = vmatpush1.bf16.msra.mxu0 %v663_v5  ;;  %648 = vmatpush1.bf16.msra.mxu1 %v663_v5  ;;  %v696_v31 = vld [vmem:[%s979_s0 + $0x70] ss:$8 sps:$4 sm:$0xff]   ;;  %v44_v33 = vld [vmem:[#allocation2 + $0x40] sm:$0xff]  ;;  %v45_v37 = vld [vmem:[#allocation2 + $0x48] sm:$0xff] }
   0xf   :  { %277 = vmatprep.subr.bf16.mxu0 %v697_v0  ;;  %636 = vmatprep.subr.bf16.mxu1 %v697_v0  ;;  %v38_v48 = vld [vmem:[#allocation2 + $0x10] sm:$0xff]  ;;  %v863_v50 = vld [vmem:[%s980_s2] ss:$0 sm:$0xff]  ;;  %v39_v53 = vld [vmem:[#allocation2 + $0x18] sm:$0xff] }
  0x10   :  { %v46_v49 = vld [vmem:[#allocation2 + $0x50] sm:$0xff]  ;;  %v47_v54 = vld [vmem:[#allocation2 + $0x58] sm:$0xff]  ;;  %v868_v60 = vld [vmem:[%s980_s2 + $0x1] ss:$0 sm:$0xff] }
  0x11   :  { %v40_v16 = vld [vmem:[#allocation2 + $0x20] sm:$0xff] }
  0x12   :  { %278 = vmatpush1.bf16.msra.mxu0 %v664_v7  ;;  %649 = vmatpush1.bf16.msra.mxu1 %v664_v7 }
  0x13   :  { %279 = vmatprep.subr.bf16.mxu0 %v697_v0  ;;  %637 = vmatprep.subr.bf16.mxu1 %v697_v0 }
  0x16   :  { %280 = vmatpush1.bf16.msra.mxu0 %v665_v9  ;;  %650 = vmatpush1.bf16.msra.mxu1 %v665_v9 }
  0x17   :  { %281 = vmatprep.subr.bf16.mxu0 %v697_v0  ;;  %638 = vmatprep.subr.bf16.mxu1 %v697_v0 }
  0x1a   :  { %282 = vmatpush1.bf16.msra.mxu0 %v666_v10  ;;  %651 = vmatpush1.bf16.msra.mxu1 %v666_v10 }
  0x1b   :  { %283 = vmatprep.subr.bf16.mxu0 %v697_v0  ;;  %639 = vmatprep.subr.bf16.mxu1 %v697_v0 }
  0x1e   :  { %284 = vmatpush1.bf16.msra.mxu0 %v667_v11  ;;  %652 = vmatpush1.bf16.msra.mxu1 %v667_v11 }
  0x1f   :  { %285 = vmatprep.subr.bf16.mxu0 %v697_v0  ;;  %640 = vmatprep.subr.bf16.mxu1 %v697_v0 }
  0x22   :  { %286 = vmatpush1.bf16.msra.mxu0 %v668_v12  ;;  %653 = vmatpush1.bf16.msra.mxu1 %v668_v12 }
  0x23   :  { %287 = vmatprep.subr.bf16.mxu0 %v697_v0  ;;  %641 = vmatprep.subr.bf16.mxu1 %v697_v0 }
  0x26   :  { %288 = vmatpush1.bf16.msra.mxu0 %v669_v13  ;;  %654 = vmatpush1.bf16.msra.mxu1 %v669_v13 }
  0x27   :  { %289 = vmatprep.subr.bf16.mxu0 %v697_v0  ;;  %642 = vmatprep.subr.bf16.mxu1 %v697_v0 }
  0x2a   :  { %290 = vmatpush1.bf16.msra.mxu0 %v670_v14  ;;  %655 = vmatpush1.bf16.msra.mxu1 %v670_v14 }
  0x2b   :  { %291 = vmatprep.subr.bf16.mxu0 %v697_v0  ;;  %643 = vmatprep.subr.bf16.mxu1 %v697_v0 }
  0x2e   :  { %292 = vmatpush1.bf16.msra.mxu0 %v671_v15  ;;  %656 = vmatpush1.bf16.msra.mxu1 %v671_v15 }
  0x2f   :  { %293 = vmatprep.subr.bf16.mxu0 %v697_v0  ;;  %644 = vmatprep.subr.bf16.mxu1 %v697_v0 }
  0x32   :  { %294 = vmatpush1.bf16.msra.mxu0 %v267_v17  ;;  %657 = vmatpush1.bf16.msra.mxu1 %v267_v17  ;;  %v48_v17 = vld [vmem:[#allocation2 + $0x60] sm:$0xff] }
  0x35   :  { %302 = vmatmul.mubr.bf16.vlgmr.msra.gmra.mrb[0].mxu0 %v673_v18  ;;  %334 = vmatmul.mubr.bf16.vlgmr.msra.gmra.mrb[0].mxu1 %v676_v19 }
  0x36   :  { %591 = vmatprep.mubr.msk.bf16.mxu0 %vm240_vm1, %v679_v20  ;;  %595 = vmatprep.mubr.msk.bf16.mxu1 %vm240_vm1, %v681_v21 }
  0x3d   :  { %310 = vmatmul.mubr.bf16.gmra.mrb[4].mxu0 %v683_v22  ;;  %342 = vmatmul.mubr.bf16.gmra.mrb[4].mxu1 %v684_v23 }
  0x3e   :  { %592 = vmatprep.mubr.msk.bf16.mxu0 %vm240_vm1, %v685_v24  ;;  %596 = vmatprep.mubr.msk.bf16.mxu1 %vm240_vm1, %v687_v25 }
  0x45   :  { %318 = vmatmul.mubr.bf16.gmra.mrb[8].mxu0 %v689_v26  ;;  %350 = vmatmul.mubr.bf16.gmra.mrb[8].mxu1 %v690_v27  ;;  %v41_v26 = vld [vmem:[#allocation2 + $0x28] sm:$0xff] }
  0x46   :  { %593 = vmatprep.mubr.msk.bf16.mxu0 %vm240_vm1, %v691_v28  ;;  %597 = vmatprep.mubr.msk.bf16.mxu1 %vm240_vm1, %v693_v29  ;;  %v49_v27 = vld [vmem:[#allocation2 + $0x68] sm:$0xff] }
  0x4d   :  { %326 = vmatmul.mubr.bf16.gmra.mrb[12].mxu0 %v695_v30  ;;  %358 = vmatmul.mubr.bf16.gmra.mrb[12].mxu1 %v696_v31 }
 0x108   :  { %v303_v34 = vpop.f32.mrb[0].mxu0  ;;  %v335_v35 = vpop.f32.mrb[0].mxu1 }
 0x109   :  { %v366_v38 = vadd.f32 %v303_v34, %v36_v32  ;;  %v374_v39 = vadd.f32 %v335_v35, %v44_v33  ;;  %v305_v40 = vpop.f32.mrb[1].mxu0  ;;  %v337_v41 = vpop.f32.mrb[1].mxu1 }
 0x10a   :  { %v306_v42 = vpop.f32.mrb[2].mxu0  ;;  %v338_v43 = vpop.f32.mrb[2].mxu1 }
 0x10b   :  { %383 = vst.msk [vmem:[#allocation2] sm:$0xff] %vm19_vm0, %v366_v38  ;;  %391 = vst.msk [vmem:[#allocation2 + $0x40] sm:$0xff] %vm19_vm0, %v374_v39  ;;  %v367_v44 = vadd.f32 %v306_v42, %v37_v36  ;;  %v375_v45 = vadd.f32 %v338_v43, %v45_v37  ;;  %v308_v46 = vpop.f32.mrb[3].mxu0  ;;  %v340_v47 = vpop.f32.mrb[3].mxu1 }
 0x10d   :  { %384 = vst.msk [vmem:[#allocation2 + $0x8] sm:$0xff] %vm19_vm0, %v367_v44  ;;  %392 = vst.msk [vmem:[#allocation2 + $0x48] sm:$0xff] %vm19_vm0, %v375_v45 }
 0x110   :  { %v311_v51 = vpop.f32.mrb[4].mxu0  ;;  %v343_v52 = vpop.f32.mrb[4].mxu1 }
 0x111   :  { %v368_v55 = vadd.f32 %v311_v51, %v38_v48  ;;  %v376_v56 = vadd.f32 %v343_v52, %v46_v49  ;;  %v313_v57 = vpop.f32.mrb[5].mxu0  ;;  %v345_v58 = vpop.f32.mrb[5].mxu1 }
 0x112   :  { %v402_v59 = vld [vmem:[#allocation2] sm:$0xff]  ;;  %v314_v62 = vpop.f32.mrb[6].mxu0  ;;  %v346_v63 = vpop.f32.mrb[6].mxu1  ;;  %v43_v57 = vld [vmem:[#allocation2 + $0x38] sm:$0xff] }
 0x113   :  { %v410_v61 = vld [vmem:[#allocation2 + $0x40] sm:$0xff]  ;;  %v423_v0 = vmul.f32 %v863_v50, %v402_v59  ;;  %385 = vst.msk [vmem:[#allocation2 + $0x10] sm:$0xff] %vm19_vm0, %v368_v55  ;;  %393 = vst.msk [vmem:[#allocation2 + $0x50] sm:$0xff] %vm19_vm0, %v376_v56  ;;  %v369_v2 = vadd.f32 %v314_v62, %v39_v53  ;;  %v377_v3 = vadd.f32 %v346_v63, %v47_v54  ;;  %v316_v4 = vpop.f32.mrb[7].mxu0  ;;  %v348_v5 = vpop.f32.mrb[7].mxu1  ;;  %v42_v53 = vld [vmem:[#allocation2 + $0x30] sm:$0xff] }
 0x114   :  { %v431_v1 = vmul.f32 %v863_v50, %v410_v61  ;;  %v403_v6 = vld [vmem:[#allocation2 + $0x8] sm:$0xff]  ;;  %v50_v54 = vld [vmem:[#allocation2 + $0x70] sm:$0xff]  ;;  %v51_v58 = vld [vmem:[#allocation2 + $0x78] sm:$0xff] }
 0x115   :  { %v411_v7 = vld [vmem:[#allocation2 + $0x48] sm:$0xff]  ;;  %v444_v8 = vadd.f32 %v868_v60, %v423_v0  ;;  %v424_v10 = vmul.f32 %v863_v50, %v403_v6  ;;  %386 = vst.msk [vmem:[#allocation2 + $0x18] sm:$0xff] %vm19_vm0, %v369_v2  ;;  %394 = vst.msk [vmem:[#allocation2 + $0x58] sm:$0xff] %vm19_vm0, %v377_v3 }
 0x116   :  { %v452_v9 = vadd.f32 %v868_v60, %v431_v1  ;;  %v432_v11 = vmul.f32 %v863_v50, %v411_v7 }
 0x117   :  { %v460_v12 = vmax.f32 %v444_v8, 0.0  ;;  %v445_v14 = vadd.f32 %v868_v60, %v424_v10 }
 0x118   :  { %v468_v13 = vmax.f32 %v452_v9, 0.0  ;;  %v453_v15 = vadd.f32 %v868_v60, %v432_v11  ;;  %v319_v18 = vpop.f32.mrb[8].mxu0  ;;  %v351_v19 = vpop.f32.mrb[8].mxu1 }
 0x119   :  { %v616_v20 = vpack.c.bf16 %v460_v12, %v460_v12  ;;  %v461_v22 = vmax.f32 %v445_v14, 0.0  ;;  %v321_v24 = vpop.f32.mrb[9].mxu0  ;;  %v353_v25 = vpop.f32.mrb[9].mxu1  ;;  %v370_v30 = vadd.f32 %v319_v18, %v40_v16  ;;  %v378_v31 = vadd.f32 %v351_v19, %v48_v17 }
 0x11a   :  { %v624_v21 = vpack.c.bf16 %v468_v13, %v468_v13  ;;  %v469_v23 = vmax.f32 %v453_v15, 0.0  ;;  %v404_v28 = vld [vmem:[#allocation2 + $0x10] sm:$0xff]  ;;  %v322_v32 = vpop.f32.mrb[10].mxu0  ;;  %v354_v33 = vpop.f32.mrb[10].mxu1 }
 0x11b   :  { %v412_v29 = vld [vmem:[#allocation2 + $0x50] sm:$0xff]  ;;  %541 = vst.msk [vmem:[%s981_s3] sm:$0xf] %vm540_vm3, %v616_v20  ;;  %v617_v34 = vpack.c.bf16 %v461_v22, %v461_v22  ;;  %v425_v36 = vmul.f32 %v863_v50, %v404_v28  ;;  %v324_v38 = vpop.f32.mrb[11].mxu0  ;;  %v356_v39 = vpop.f32.mrb[11].mxu1  ;;  %v371_v42 = vadd.f32 %v322_v32, %v41_v26  ;;  %v379_v43 = vadd.f32 %v354_v33, %v49_v27 }
 0x11c   :  { %549 = vst.msk [vmem:[%s981_s3 + $0x20] sm:$0xf] %vm540_vm3, %v624_v21  ;;  %v625_v35 = vpack.c.bf16 %v469_v23, %v469_v23  ;;  %v433_v37 = vmul.f32 %v863_v50, %v412_v29  ;;  %v405_v40 = vld [vmem:[#allocation2 + $0x18] sm:$0xff] }
 0x11d   :  { %v413_v41 = vld [vmem:[#allocation2 + $0x58] sm:$0xff]  ;;  %387 = vst.msk [vmem:[#allocation2 + $0x20] sm:$0xff] %vm19_vm0, %v370_v30  ;;  %395 = vst.msk [vmem:[#allocation2 + $0x60] sm:$0xff] %vm19_vm0, %v378_v31  ;;  %v446_v44 = vadd.f32 %v868_v60, %v425_v36  ;;  %v426_v46 = vmul.f32 %v863_v50, %v405_v40 }
 0x11e   :  { %542 = vst.msk [vmem:[%s981_s3 + $0x4] sm:$0xf] %vm540_vm3, %v617_v34  ;;  %550 = vst.msk [vmem:[%s981_s3 + $0x24] sm:$0xf] %vm540_vm3, %v625_v35  ;;  %v454_v45 = vadd.f32 %v868_v60, %v433_v37  ;;  %v434_v47 = vmul.f32 %v863_v50, %v413_v41 }
 0x11f   :  { %388 = vst.msk [vmem:[#allocation2 + $0x28] sm:$0xff] %vm19_vm0, %v371_v42  ;;  %396 = vst.msk [vmem:[#allocation2 + $0x68] sm:$0xff] %vm19_vm0, %v379_v43  ;;  %v462_v48 = vmax.f32 %v446_v44, 0.0  ;;  %v447_v51 = vadd.f32 %v868_v60, %v426_v46 }
 0x120   :  { %v470_v49 = vmax.f32 %v454_v45, 0.0  ;;  %v455_v52 = vadd.f32 %v868_v60, %v434_v47  ;;  %v327_v55 = vpop.f32.mrb[12].mxu0  ;;  %v359_v56 = vpop.f32.mrb[12].mxu1 }
 0x121   :  { %v618_v59 = vpack.c.bf16 %v462_v48, %v462_v48  ;;  %v463_v62 = vmax.f32 %v447_v51, 0.0  ;;  %v329_v0 = vpop.f32.mrb[13].mxu0  ;;  %v361_v1 = vpop.f32.mrb[13].mxu1  ;;  %v372_v2 = vadd.f32 %v327_v55, %v42_v53  ;;  %v380_v3 = vadd.f32 %v359_v56, %v50_v54 }
 0x122   :  { %v626_v61 = vpack.c.bf16 %v470_v49, %v470_v49  ;;  %v471_v63 = vmax.f32 %v455_v52, 0.0  ;;  %v330_v4 = vpop.f32.mrb[14].mxu0  ;;  %v362_v5 = vpop.f32.mrb[14].mxu1 }
 0x123   :  { %543 = vst.msk [vmem:[%s981_s3 + $0x8] sm:$0xf] %vm540_vm3, %v618_v59  ;;  %v619_v6 = vpack.c.bf16 %v463_v62, %v463_v62  ;;  %v373_v10 = vadd.f32 %v330_v4, %v43_v57  ;;  %v381_v11 = vadd.f32 %v362_v5, %v51_v58  ;;  %v332_v12 = vpop.f32.mrb[15].mxu0  ;;  %v364_v13 = vpop.f32.mrb[15].mxu1 }
 0x124   :  { %551 = vst.msk [vmem:[%s981_s3 + $0x28] sm:$0xf] %vm540_vm3, %v626_v61  ;;  %v627_v7 = vpack.c.bf16 %v471_v63, %v471_v63  ;;  %v406_v8 = vld [vmem:[#allocation2 + $0x20] sm:$0xff] }
 0x125   :  { %v414_v9 = vld [vmem:[#allocation2 + $0x60] sm:$0xff]  ;;  %v427_v14 = vmul.f32 %v863_v50, %v406_v8  ;;  %389 = vst.msk [vmem:[#allocation2 + $0x30] sm:$0xff] %vm19_vm0, %v372_v2  ;;  %397 = vst.msk [vmem:[#allocation2 + $0x70] sm:$0xff] %vm19_vm0, %v380_v3 }
 0x126   :  { %v435_v15 = vmul.f32 %v863_v50, %v414_v9  ;;  %544 = vst.msk [vmem:[%s981_s3 + $0xc] sm:$0xf] %vm540_vm3, %v619_v6  ;;  %552 = vst.msk [vmem:[%s981_s3 + $0x2c] sm:$0xf] %vm540_vm3, %v627_v7  ;;  %v407_v16 = vld [vmem:[#allocation2 + $0x28] sm:$0xff] }
 0x127   :  { %v415_v17 = vld [vmem:[#allocation2 + $0x68] sm:$0xff]  ;;  %390 = vst.msk [vmem:[#allocation2 + $0x38] sm:$0xff] %vm19_vm0, %v373_v10  ;;  %398 = vst.msk [vmem:[#allocation2 + $0x78] sm:$0xff] %vm19_vm0, %v381_v11  ;;  %v448_v18 = vadd.f32 %v868_v60, %v427_v14  ;;  %v428_v20 = vmul.f32 %v863_v50, %v407_v16 }
 0x128   :  { %v456_v19 = vadd.f32 %v868_v60, %v435_v15  ;;  %v436_v21 = vmul.f32 %v863_v50, %v415_v17 }
 0x129   :  { %v464_v22 = vmax.f32 %v448_v18, 0.0  ;;  %v449_v24 = vadd.f32 %v868_v60, %v428_v20 }
 0x12a   :  { %v472_v23 = vmax.f32 %v456_v19, 0.0  ;;  %v457_v25 = vadd.f32 %v868_v60, %v436_v21 }
 0x12b   :  { %v620_v26 = vpack.c.bf16 %v464_v22, %v464_v22  ;;  %v465_v28 = vmax.f32 %v449_v24, 0.0 }
 0x12c   :  { %v628_v27 = vpack.c.bf16 %v472_v23, %v472_v23  ;;  %v473_v29 = vmax.f32 %v457_v25, 0.0  ;;  %v408_v30 = vld [vmem:[#allocation2 + $0x30] sm:$0xff] }
 0x12d   :  { %v416_v31 = vld [vmem:[#allocation2 + $0x70] sm:$0xff]  ;;  %545 = vst.msk [vmem:[%s981_s3 + $0x10] sm:$0xf] %vm540_vm3, %v620_v26  ;;  %v621_v32 = vpack.c.bf16 %v465_v28, %v465_v28  ;;  %v429_v34 = vmul.f32 %v863_v50, %v408_v30 }
 0x12e   :  { %553 = vst.msk [vmem:[%s981_s3 + $0x30] sm:$0xf] %vm540_vm3, %v628_v27  ;;  %v629_v33 = vpack.c.bf16 %v473_v29, %v473_v29  ;;  %v437_v35 = vmul.f32 %v863_v50, %v416_v31  ;;  %v409_v36 = vld [vmem:[#allocation2 + $0x38] sm:$0xff] }
 0x12f   :  { %v417_v37 = vld [vmem:[#allocation2 + $0x78] sm:$0xff]  ;;  %v430_v38 = vmul.f32 %v863_v50, %v409_v36  ;;  %546 = vst.msk [vmem:[%s981_s3 + $0x14] sm:$0xf] %vm540_vm3, %v621_v32  ;;  %v450_v40 = vadd.f32 %v868_v60, %v429_v34 }
 0x130   :  { %v438_v39 = vmul.f32 %v863_v50, %v417_v37  ;;  %554 = vst.msk [vmem:[%s981_s3 + $0x34] sm:$0xf] %vm540_vm3, %v629_v33  ;;  %v458_v41 = vadd.f32 %v868_v60, %v437_v35 }
 0x131   :  { %v451_v42 = vadd.f32 %v868_v60, %v430_v38  ;;  %v466_v44 = vmax.f32 %v450_v40, 0.0 }
 0x132   :  { %v459_v43 = vadd.f32 %v868_v60, %v438_v39  ;;  %v474_v50 = vmax.f32 %v458_v41, 0.0 }
 0x133   :  { %v467_v45 = vmax.f32 %v451_v42, 0.0  ;;  %v622_v47 = vpack.c.bf16 %v466_v44, %v466_v44 }
 0x134   :  { %v475_v46 = vmax.f32 %v459_v43, 0.0  ;;  %v630_v48 = vpack.c.bf16 %v474_v50, %v474_v50 }
 0x135   :  { %v623_v49 = vpack.c.bf16 %v467_v45, %v467_v45  ;;  %547 = vst.msk [vmem:[%s981_s3 + $0x18] sm:$0xf] %vm540_vm3, %v622_v47 }
 0x136   :  { %v631_v51 = vpack.c.bf16 %v475_v46, %v475_v46  ;;  %555 = vst.msk [vmem:[%s981_s3 + $0x38] sm:$0xf] %vm540_vm3, %v630_v48 }
 0x137   :  { %548 = vst.msk [vmem:[%s981_s3 + $0x1c] sm:$0xf] %vm540_vm3, %v623_v49 }
 0x138   :  { %556 = vst.msk [vmem:[%s981_s3 + $0x3c] sm:$0xf] %vm540_vm3, %v631_v51 }

// kernel: _lambda_.23
= control target key start
LH: loop header
LB: loop body
LE: loop exit
PB: predicated region body
PF: predicated region fallthrough
CT: control target
= control target key end

     0   :  { %s690_s15 = smov 0   ;;  %s845_s0 = inlined_call_operand.vmem [shape: bf16[2,5,5,16], index: 0, kind: input, shape index: {}]   ;;  %s846_s1 = inlined_call_operand.vmem [shape: bf16[2,5,4,16], index: 1, kind: input, shape index: {}]   ;;  %s847_s2 = inlined_call_operand.vmem [shape: bf16[2,4,5,16], index: 2, kind: input, shape index: {}]   ;;  %s848_s3 = inlined_call_operand.vmem [shape: bf16[2,4,4,16], index: 3, kind: input, shape index: {}]   ;;  %s849_s4 = inlined_call_operand.vmem [shape: bf16[2,4,4,16], index: 4, kind: output, shape index: {}]  }
   0x1 LB: > { %s627_s16 = sadd.s32 4294967295, %s662_s15   ;;  %p631_p0 = scmp.ge.s32.totalorder %s662_s15, 1  ;;  %s662_s15 = sphi %s690_s15, %s14_s15  }
   0x2   : > { %p192_p1 = scmp.lt.s32.totalorder %s662_s15, 3 }
   0x4   : > { %p193_p2 = pnand %p631_p0, %p192_p1 }
   0x5   : > { %p233_p3 = scmp.lt.s32.totalorder (!%p193_p2), %s627_s16, 1  ;;  %v287_v0 = vlaneseq (!%p193_p2)  ;;  %v664_v1 = vmov (!%p193_p2), 1983009808   ;;  %vm316_vm0 = vsmask.f32 (!%p193_p2), 1280  ;;  %vm531_vm7 = vcmask (!%p193_p2), 123904  }
   0x6   : > { %196 = sbr.rel (%p193_p2) target bundleno = 62 (0x3e), region = 36  ;;  %v285_v2 = vunpack.c.l.s4 (!%p193_p2), %v664_v1  ;;  %vm317_vm1 = vsmask.f32 (!%p193_p2), 3336  ;;  %vm319_vm2 = vsmask.f32 (!%p193_p2), 5392 }
   0x7   : > { %v288_v3 = vshrl.u32 (!%p193_p2), %v287_v0, 7  ;;  %vm321_vm3 = vsmask.f32 (!%p193_p2), 7448  ;;  %vm318_vm4 = vmor (!%p193_p2), %vm316_vm0, %vm317_vm1 }
   0x8   : > { %v286_v4 = vunpack.c.0.s8 (!%p193_p2), %v285_v2  ;;  %vm320_vm5 = vmor (!%p193_p2), %vm318_vm4, %vm319_vm2 }
   0x9   : > { %vm770_vm6 = vmor (!%p193_p2), %vm320_vm5, %vm321_vm3 }
   0xa   : > { %v707_v5 = vsub.s32 (!%p193_p2), %v286_v4, %v288_v3 }
   0xd   : > { %s853_s16 = smov (!%p233_p3, %s627_s16), 1 }
   0xe   : > { %s645_s17 = smul.u32 20, %s853_s16  ;;  %s642_s18 = sshll.u32 %s853_s16, 4 }
   0xf   : > { %s705_s21 = scalar_lea.vmem %s847_s2, %s642_s18  ;;  %s643_s25 = sshll.u32 %s853_s16, 3 }
  0x10   : > { %s712_s24 = scalar_lea.vmem %s845_s0, %s645_s17  ;;  %v716_v6 = vld [vmem:[%s705_s21] sm:$0x7]  ;;  %v719_v7 = vld [vmem:[%s705_s21 + $0x4] sm:$0x7]  ;;  %s252_s28 = scalar_lea.vmem %s848_s3, %s643_s25 }
  0x11   : > { %v727_v8 = vld [vmem:[%s712_s24] sm:$0x7]  ;;  %v730_v9 = vld [vmem:[%s712_s24 + $0x4] sm:$0x7]  ;;  %v733_v10 = vld [vmem:[%s712_s24 + $0x8] sm:$0x7]  ;;  %v737_v11 = vrot.slane %v716_v6, %v707_v5  ;;  %v741_v12 = vrot.slane %v719_v7, %v707_v5  ;;  %s822_s9 = scalar_lea.vmem %s849_s4, %s643_s25 }
  0x12   : > { %v744_v13 = vld [vmem:[%s712_s24 + $0xc] sm:$0x7]  ;;  %v290_v14 = vrot.slane %v727_v8, %v707_v5  ;;  %v298_v15 = vrot.slane %v730_v9, %v707_v5  ;;  %v272_v16 = vld [vmem:[%s252_s28] sm:$0x3]  ;;  %v273_v17 = vld [vmem:[%s252_s28 + $0x2] sm:$0x3]  ;;  %v306_v19 = vrot.slane %v733_v10, %v707_v5 }
  0x13   : > { %v274_v18 = vld [vmem:[%s252_s28 + $0x4] sm:$0x3]  ;;  %v314_v20 = vrot.slane %v744_v13, %v707_v5  ;;  %v442_v21 = vcombine.high %v737_v11, %v737_v11  ;;  %v450_v22 = vcombine.high %v741_v12, %v741_v12  ;;  %v758_v23 = vld [vmem:[%s252_s28 + $0x6] sm:$0x3]  ;;  %v276_v24 = vmax.bf16 %v272_v16, %v727_v8  ;;  %s646_s29 = smul.u32 10, %s853_s16 }
  0x14   : > { %v277_v25 = vmax.bf16 %v273_v17, %v730_v9  ;;  %v278_v26 = vmax.bf16 %v274_v18, %v733_v10  ;;  %v291_v27 = vcombine.high %v290_v14, %v290_v14  ;;  %v279_v28 = vmax.bf16 %v758_v23, %v744_v13 }
  0x15   : > { %v299_v29 = vcombine.high %v298_v15, %v298_v15  ;;  %v307_v30 = vcombine.high %v306_v19, %v306_v19  ;;  %v315_v31 = vcombine.high %v314_v20, %v314_v20  ;;  %v324_v32 = vshrl.u32 %v290_v14, 16  ;;  %s781_s6 = scalar_lea.vmem %s846_s1, %s646_s29 }
  0x16   : > { %v327_v33 = vshll.u32 %v290_v14, 16  ;;  %v333_v34 = vshll.u32 %v291_v27, 16  ;;  %v338_v35 = vshrl.u32 %v298_v15, 16  ;;  %v341_v36 = vshll.u32 %v298_v15, 16 }
  0x17   : > { %v347_v37 = vshll.u32 %v299_v29, 16  ;;  %v352_v38 = vshrl.u32 %v306_v19, 16  ;;  %v355_v39 = vshll.u32 %v306_v19, 16  ;;  %v326_v40 = vrot.slane %v324_v32, 6 }
  0x18   : > { %v329_v41 = vrot.slane %v327_v33, 7  ;;  %v335_v42 = vrot.slane %v333_v34, 7  ;;  %v340_v43 = vrot.slane %v338_v35, 6  ;;  %v343_v44 = vrot.slane %v341_v36, 7 }
  0x19   : > { %v349_v45 = vrot.slane %v347_v37, 7  ;;  %v354_v46 = vrot.slane %v352_v38, 6  ;;  %v357_v47 = vrot.slane %v355_v39, 7  ;;  %v361_v49 = vshll.u32 %v307_v30, 16  ;;  %v791_v30 = vld [vmem:[%s705_s21 + $0x8] sm:$0x7] }
  0x1a   : > { %v330_v48 = vor.u32 %v329_v41, %v326_v40  ;;  %v366_v50 = vshrl.u32 %v314_v20, 16  ;;  %v369_v51 = vshll.u32 %v314_v20, 16  ;;  %v344_v53 = vor.u32 %v343_v44, %v340_v43  ;;  %v265_v38 = vld [vmem:[%s781_s6 + $0x4] sm:$0x3] }
  0x1b   : > { %v358_v54 = vor.u32 %v357_v47, %v354_v46  ;;  %v375_v55 = vshll.u32 %v315_v31, 16  ;;  %v468_v56 = vshrl.u32 %v737_v11, 16  ;;  %v363_v58 = vrot.slane %v361_v49, 7  ;;  %v263_v31 = vld [vmem:[%s781_s6] sm:$0x3] }
  0x1c   : > { %v331_v57 = vrot.slane %v330_v48, 2  ;;  %v368_v59 = vrot.slane %v366_v50, 6  ;;  %v371_v60 = vrot.slane %v369_v51, 7  ;;  %v345_v61 = vrot.slane %v344_v53, 2  ;;  %v266_v49 = vld [vmem:[%s781_s6 + $0x6] sm:$0x3] }
  0x1d   : > { %v359_v62 = vrot.slane %v358_v54, 2  ;;  %v377_v63 = vrot.slane %v375_v55, 7  ;;  %v470_v0 = vrot.slane %v468_v56, 6  ;;  %v471_v3 = vshll.u32 %v737_v11, 16 }
  0x1e   : > { %v336_v1 = vsel %vm770_vm6, %v331_v57, %v335_v42  ;;  %v372_v2 = vor.u32 %v371_v60, %v368_v59  ;;  %v477_v4 = vshll.u32 %v442_v21, 16  ;;  %v350_v8 = vsel %vm770_vm6, %v345_v61, %v349_v45  ;;  %v262_v42 = vld [vmem:[%s712_s24 + $0x10] sm:$0x7] }
  0x1f   : > { %v364_v14 = vsel %vm770_vm6, %v359_v62, %v363_v58  ;;  %v383_v15 = vmax.bf16 %v336_v1, %v276_v24  ;;  %v482_v16 = vshrl.u32 %v741_v12, 16  ;;  %v384_v18 = vmax.bf16 %v350_v8, %v277_v25  ;;  %v271_v58 = vld [vmem:[%s705_s21 + $0xc] sm:$0x7] }
  0x20   : > { %v373_v17 = vrot.slane %v372_v2, 2  ;;  %v385_v11 = vmax.bf16 %v364_v14, %v278_v26  ;;  %v473_v19 = vrot.slane %v471_v3, 7  ;;  %v479_v21 = vrot.slane %v477_v4, 7 }
  0x21   : > { %v387_v20 = vmax.bf16 %v383_v15, %v730_v9  ;;  %v484_v27 = vrot.slane %v482_v16, 6  ;;  %v485_v29 = vshll.u32 %v741_v12, 16  ;;  %v388_v33 = vmax.bf16 %v384_v18, %v733_v10  ;;  %v264_v9 = vld [vmem:[%s781_s6 + $0x2] sm:$0x3] }
  0x22   : > { %v378_v24 = vsel %vm770_vm6, %v373_v17, %v377_v63  ;;  %v474_v32 = vor.u32 %v473_v19, %v470_v0  ;;  %v491_v25 = vshll.u32 %v450_v22, 16  ;;  %v389_v35 = vmax.bf16 %v385_v11, %v744_v13 }
  0x23   : > { %v415_v26 = vmax.bf16 %v387_v20, %v350_v8  ;;  %v487_v34 = vrot.slane %v485_v29, 7  ;;  %v386_v36 = vmax.bf16 %v378_v24, %v279_v28  ;;  %v416_v39 = vmax.bf16 %v388_v33, %v364_v14  ;;  %v267_v33 = vld [vmem:[%s781_s6 + $0x8] sm:$0x3] }
  0x24   : > { %v475_v37 = vrot.slane %v474_v32, 2  ;;  %v457_v10 = vrot.slane %v791_v30, %v707_v5  ;;  %v493_v22 = vrot.slane %v491_v25, 7  ;;  %v417_v41 = vmax.bf16 %v389_v35, %v378_v24 }
  0x25   : > { %v419_v12 = vmax.bf16 %v415_v26, %v263_v31  ;;  %v488_v40 = vor.u32 %v487_v34, %v484_v27  ;;  %v420_v44 = vmax.bf16 %v416_v39, %v264_v9  ;;  %v398_v53 = vrot.slane %v262_v42, %v707_v5 }
  0x26   : > { %v480_v43 = vsel %vm770_vm6, %v475_v37, %v479_v21  ;;  %v458_v45 = vcombine.high %v457_v10, %v457_v10  ;;  %v496_v13 = vshrl.u32 %v457_v10, 16  ;;  %v421_v46 = vmax.bf16 %v417_v41, %v265_v38 }
  0x27   : > { %v423_v23 = vmax.bf16 %v419_v12, %v264_v9  ;;  %v489_v28 = vrot.slane %v488_v40, 2  ;;  %v499_v47 = vshll.u32 %v457_v10, 16  ;;  %v424_v48 = vmax.bf16 %v420_v44, %v265_v38 }
  0x28   : > { %v498_v50 = vrot.slane %v496_v13, 6  ;;  %v505_v51 = vshll.u32 %v458_v45, 16  ;;  %v425_v56 = vmax.bf16 %v421_v46, %v266_v49  ;;  %v399_v61 = vcombine.high %v398_v53, %v398_v53 }
  0x29   : > { %v427_v54 = vmax.bf16 %v423_v23, %v716_v6  ;;  %v494_v55 = vsel %vm770_vm6, %v489_v28, %v493_v22  ;;  %v501_v57 = vrot.slane %v499_v47, 7  ;;  %v428_v59 = vmax.bf16 %v424_v48, %v719_v7 }
  0x2a   : > { %v507_v60 = vrot.slane %v505_v51, 7  ;;  %v401_v62 = vshrl.u32 %v398_v53, 16  ;;  %v429_v63 = vmax.bf16 %v425_v56, %v791_v30  ;;  %v404_v1 = vshll.u32 %v398_v53, 16 }
  0x2b   : > { %v527_v6 = vmax.bf16 %v480_v43, %v427_v54  ;;  %v502_v0 = vor.u32 %v501_v57, %v498_v50  ;;  %v528_v2 = vmax.bf16 %v494_v55, %v428_v59  ;;  %v410_v4 = vshll.u32 %v399_v61, 16 }
  0x2c   : > { %v403_v3 = vrot.slane %v401_v62, 6  ;;  %v465_v8 = vrot.slane %v271_v58, %v707_v5  ;;  %v406_v15 = vrot.slane %v404_v1, 7  ;;  %v390_v21 = vmax.bf16 %v386_v36, %v262_v42 }
  0x2d   : > { %532 = vst.msk [vmem:[%s822_s9] sm:$0x3] %vm531_vm7, %v527_v6  ;;  %v503_v14 = vrot.slane %v502_v0, 2  ;;  %533 = vst.msk [vmem:[%s822_s9 + $0x2] sm:$0x3] %vm531_vm7, %v528_v2  ;;  %v412_v19 = vrot.slane %v410_v4, 7 }
  0x2e   : > { %v466_v7 = vcombine.high %v465_v8, %v465_v8  ;;  %v510_v16 = vshrl.u32 %v465_v8, 16  ;;  %v513_v17 = vshll.u32 %v465_v8, 16  ;;  %v407_v11 = vor.u32 %v406_v15, %v403_v3 }
  0x2f   : > { %v508_v18 = vsel %vm770_vm6, %v503_v14, %v507_v60 }
  0x30   : > { %v529_v20 = vmax.bf16 %v508_v18, %v429_v63  ;;  %v512_v27 = vrot.slane %v510_v16, 6  ;;  %v515_v5 = vrot.slane %v513_v17, 7  ;;  %v408_v29 = vrot.slane %v407_v11, 2 }
  0x31   : > { %v519_v30 = vshll.u32 %v466_v7, 16 }
  0x32   : > { %534 = vst.msk [vmem:[%s822_s9 + $0x4] sm:$0x3] %vm531_vm7, %v529_v20  ;;  %v516_v31 = vor.u32 %v515_v5, %v512_v27  ;;  %v413_v24 = vsel %vm770_vm6, %v408_v29, %v412_v19 }
  0x33   : > { %v418_v32 = vmax.bf16 %v413_v24, %v390_v21  ;;  %v521_v9 = vrot.slane %v519_v30, 7 }
  0x34   : > { %v517_v25 = vrot.slane %v516_v31, 2 }
  0x35   : > { %v422_v26 = vmax.bf16 %v418_v32, %v266_v49 }
  0x36   : > { %v522_v35 = vsel %vm770_vm6, %v517_v25, %v521_v9 }
  0x37   : > { %v426_v34 = vmax.bf16 %v422_v26, %v267_v33 }
  0x39   : > { %v430_v36 = vmax.bf16 %v426_v34, %v271_v58 }
  0x3b   : > { %v530_v37 = vmax.bf16 %v522_v35, %v430_v36 }
  0x3d   : > { %535 = vst.msk [vmem:[%s822_s9 + $0x6] sm:$0x3] %vm531_vm7, %v530_v37 }
  0x3e PF: > { %s14_s15 = sadd.s32 1, %s662_s15  }
  0x3f   : > { %p11_p4 = scmp.ge.s32.totalorder %s14_s15, 4  }
  0x41   :  { %13 = sbr.rel (!%p11_p4) target bundleno = 1 (0x1), region = 75 }

// kernel: _lambda_.37
= control target key start
LH: loop header
LB: loop body
LE: loop exit
PB: predicated region body
PF: predicated region fallthrough
CT: control target
= control target key end

     0   :  { %vm19_vm0 = vcmask 130048   ;;  %v143_v0 = vmov 0.0   ;;  %vm144_vm1 = vmmov 0   ;;  %vm115_vm2 = vcmask 125952   ;;  %s188_s1 = inlined_call_operand.vmem [shape: bf16[16,16], index: 1, kind: input, shape index: {}]   ;;  %s189_s0 = inlined_call_operand.vmem [shape: bf16[16,16], index: 0, kind: input, shape index: {}]   ;;  %s190_s2 = inlined_call_operand.vmem [shape: f32[2,16], index: 2, kind: input, shape index: {}]   ;;  %s191_s3 = inlined_call_operand.vmem [shape: bf16[16,16], index: 3, kind: output, shape index: {}]  }
   0x1   :  { %133 = vmatprep.subr.bf16.mxu0 %v143_v0  ;;  %v141_v1 = vld [vmem:[%s188_s1] sm:$0xff]   ;;  %135 = vmatprep.mubr.msk.bf16.mxu0 %vm144_vm1, %v143_v0  ;;  %20 = vst.msk [vmem:[#allocation2] sm:$0xff] %vm19_vm0, %v143_v0  ;;  %21 = vst.msk [vmem:[#allocation2 + $0x8] sm:$0xff] %vm19_vm0, %v143_v0 }
   0x2   :  { %v142_v2 = vld [vmem:[%s189_s0] sm:$0xff]   ;;  %134 = vmatpush3.bf16.msra.mxu0 %v141_v1 }
   0x3   :  { %v125_v11 = vld [vmem:[%s190_s2] ss:$0 sm:$0xff]  ;;  %v126_v13 = vld [vmem:[%s190_s2 + $0x1] ss:$0 sm:$0xff] }
   0x5   :  { %136 = vmatmul.mubr.msk.bf16.vlgmr.msra.gmra.mrb[0].mxu0 %vm19_vm0, %v142_v2 }
   0x8   :  { %v22_v3 = vld [vmem:[#allocation2] sm:$0xff]  ;;  %v23_v5 = vld [vmem:[#allocation2 + $0x8] sm:$0xff] }
  0xd8   :  { %v77_v4 = vpop.f32.mrb[0].mxu0 }
  0xd9   :  { %v84_v6 = vadd.f32 %v77_v4, %v22_v3  ;;  %v137_v7 = vpop.f32.mrb[1].mxu0 }
  0xda   :  { %v80_v8 = vpop.f32.mrb[2].mxu0 }
  0xdb   :  { %86 = vst.msk [vmem:[#allocation2] sm:$0xff] %vm19_vm0, %v84_v6  ;;  %v85_v9 = vadd.f32 %v80_v8, %v23_v5  ;;  %v138_v10 = vpop.f32.mrb[3].mxu0 }
  0xdd   :  { %87 = vst.msk [vmem:[#allocation2 + $0x8] sm:$0xff] %vm19_vm0, %v85_v9 }
  0xe2   :  { %v91_v12 = vld [vmem:[#allocation2] sm:$0xff] }
  0xe3   :  { %v98_v14 = vmul.f32 %v125_v11, %v91_v12 }
  0xe4   :  { %v92_v15 = vld [vmem:[#allocation2 + $0x8] sm:$0xff] }
  0xe5   :  { %v105_v16 = vadd.f32 %v126_v13, %v98_v14  ;;  %v99_v17 = vmul.f32 %v125_v11, %v92_v15 }
  0xe7   :  { %v129_v18 = vpack.c.bf16 %v105_v16, %v105_v16  ;;  %v106_v19 = vadd.f32 %v126_v13, %v99_v17 }
  0xe9   :  { %116 = vst.msk [vmem:[%s191_s3] sm:$0xf] %vm115_vm2, %v129_v18  ;;  %v130_v20 = vpack.c.bf16 %v106_v19, %v106_v19 }
  0xeb   :  { %117 = vst.msk [vmem:[%s191_s3 + $0x4] sm:$0xf] %vm115_vm2, %v130_v20 }

// kernel: _lambda_.41
= control target key start
LH: loop header
LB: loop body
LE: loop exit
PB: predicated region body
PF: predicated region fallthrough
CT: control target
= control target key end

     0   :  { %vm19_vm0 = vcmask 261120   ;;  %v144_v0 = vmov 0.0   ;;  %vm145_vm1 = vmmov 0   ;;  %vm39_vm2 = vcmask 130048   ;;  %s188_s1 = inlined_call_operand.vmem [shape: bf16[16,32], index: 1, kind: input, shape index: {}]   ;;  %s189_s0 = inlined_call_operand.vmem [shape: bf16[16,16], index: 0, kind: input, shape index: {}]   ;;  %s190_s2 = inlined_call_operand.vmem [shape: f32[2,32], index: 2, kind: input, shape index: {}]   ;;  %s191_s3 = inlined_call_operand.vmem [shape: bf16[16,32], index: 3, kind: output, shape index: {}]  }
   0x1   :  { %20 = vst.msk [vmem:[#allocation2] sm:$0xff] %vm19_vm0, %v144_v0  ;;  %21 = vst.msk [vmem:[#allocation2 + $0x8] sm:$0xff] %vm19_vm0, %v144_v0  ;;  %134 = vmatprep.subr.bf16.mxu0 %v144_v0  ;;  %v142_v1 = vld [vmem:[%s188_s1] sm:$0xff]   ;;  %136 = vmatprep.mubr.msk.bf16.mxu0 %vm145_vm1, %v144_v0  ;;  %vm116_vm3 = vcmask 257024  }
   0x2   :  { %v143_v2 = vld [vmem:[%s189_s0] sm:$0xff]   ;;  %135 = vmatpush3.bf16.msra.mxu0 %v142_v1 }
   0x3   :  { %v126_v11 = vld [vmem:[%s190_s2] ss:$0 sm:$0xff]  ;;  %v127_v13 = vld [vmem:[%s190_s2 + $0x1] ss:$0 sm:$0xff] }
   0x5   :  { %137 = vmatmul.mubr.msk.bf16.vlgmr.msra.gmra.mrb[0].mxu0 %vm39_vm2, %v143_v2 }
   0x8   :  { %v22_v3 = vld [vmem:[#allocation2] sm:$0xff]  ;;  %v23_v5 = vld [vmem:[#allocation2 + $0x8] sm:$0xff] }
  0xd8   :  { %v77_v4 = vpop.f32.mrb[0].mxu0 }
  0xd9   :  { %v84_v6 = vadd.f32 %v77_v4, %v22_v3  ;;  %v138_v7 = vpop.f32.mrb[1].mxu0 }
  0xda   :  { %v80_v8 = vpop.f32.mrb[2].mxu0 }
  0xdb   :  { %87 = vst.msk [vmem:[#allocation2] sm:$0xff] %vm19_vm0, %v84_v6  ;;  %v85_v9 = vadd.f32 %v80_v8, %v23_v5  ;;  %v139_v10 = vpop.f32.mrb[3].mxu0 }
  0xdd   :  { %88 = vst.msk [vmem:[#allocation2 + $0x8] sm:$0xff] %vm19_vm0, %v85_v9 }
  0xe2   :  { %v92_v12 = vld [vmem:[#allocation2] sm:$0xff] }
  0xe3   :  { %v99_v14 = vmul.f32 %v126_v11, %v92_v12 }
  0xe4   :  { %v93_v15 = vld [vmem:[#allocation2 + $0x8] sm:$0xff] }
  0xe5   :  { %v106_v16 = vadd.f32 %v127_v13, %v99_v14  ;;  %v100_v17 = vmul.f32 %v126_v11, %v93_v15 }
  0xe7   :  { %v130_v18 = vpack.c.bf16 %v106_v16, %v106_v16  ;;  %v107_v19 = vadd.f32 %v127_v13, %v100_v17 }
  0xe9   :  { %117 = vst.msk [vmem:[%s191_s3] sm:$0xf] %vm116_vm3, %v130_v18  ;;  %v131_v20 = vpack.c.bf16 %v107_v19, %v107_v19 }
  0xeb   :  { %118 = vst.msk [vmem:[%s191_s3 + $0x4] sm:$0xf] %vm116_vm3, %v131_v20 }

// kernel: _lambda_.39
= control target key start
LH: loop header
LB: loop body
LE: loop exit
PB: predicated region body
PF: predicated region fallthrough
CT: control target
= control target key end

     0   :  { %vm19_vm0 = vcmask 64512   ;;  %vm50_vm1 = vcmask 130048   ;;  %v197_v1 = vmov 0.0   ;;  %vm160_vm2 = vcmask 60416   ;;  %s253_s1 = inlined_call_operand.vmem [shape: bf16[16,8], index: 1, kind: input, shape index: {}]   ;;  %s254_s0 = inlined_call_operand.vmem [shape: bf16[32,16], index: 0, kind: input, shape index: {}]   ;;  %s255_s2 = inlined_call_operand.vmem [shape: f32[2,8], index: 2, kind: input, shape index: {}]   ;;  %s256_s3 = inlined_call_operand.vmem [shape: bf16[32,8], index: 3, kind: output, shape index: {}]  }
   0x1   :  { %v194_v0 = vld [vmem:[%s253_s1] sm:$0xff]   ;;  %22 = vst.msk [vmem:[#allocation2 + $0x10] sm:$0xff] %vm19_vm0, %v197_v1  ;;  %20 = vst.msk [vmem:[#allocation2] sm:$0xff] %vm19_vm0, %v197_v1  ;;  %v196_v3 = vld [vmem:[%s254_s0 + $0x8] sm:$0xff]  }
   0x2   :  { %21 = vst.msk [vmem:[#allocation2 + $0x8] sm:$0xff] %vm19_vm0, %v197_v1  ;;  %23 = vst.msk [vmem:[#allocation2 + $0x18] sm:$0xff] %vm19_vm0, %v197_v1  ;;  %v195_v2 = vld [vmem:[%s254_s0] sm:$0xff]   ;;  %187 = vmatprep.subr.bf16.mxu0 %v194_v0 }
   0x3   :  { %188 = vmatpush3.bf16.msra.mxu0 %v194_v0  ;;  %189 = vmatprep.mubr.msk.bf16.mxu0 %vm50_vm1, %v195_v2  ;;  %v174_v16 = vld [vmem:[%s255_s2] ss:$0 sm:$0xff]  ;;  %v175_v18 = vld [vmem:[%s255_s2 + $0x1] ss:$0 sm:$0xff] }
   0x6   :  { %190 = vmatmul.mubr.msk.bf16.vlgmr.msra.gmra.mrb[0].mxu0 %vm50_vm1, %v196_v3 }
   0x8   :  { %v26_v4 = vld [vmem:[#allocation2 + $0x10] sm:$0xff]  ;;  %v24_v5 = vld [vmem:[#allocation2] sm:$0xff] }
   0x9   :  { %v27_v7 = vld [vmem:[#allocation2 + $0x18] sm:$0xff]  ;;  %v25_v10 = vld [vmem:[#allocation2 + $0x8] sm:$0xff] }
  0xd9   :  { %v191_v6 = vpop.f32.mrb[0].mxu0 }
  0xda   :  { %v108_v8 = vadd.f32 %v191_v6, %v26_v4  ;;  %v91_v9 = vpop.f32.mrb[1].mxu0 }
  0xdb   :  { %v106_v11 = vadd.f32 %v91_v9, %v24_v5  ;;  %v192_v12 = vpop.f32.mrb[2].mxu0 }
  0xdc   :  { %113 = vst.msk [vmem:[#allocation2 + $0x10] sm:$0xff] %vm19_vm0, %v108_v8  ;;  %v109_v13 = vadd.f32 %v192_v12, %v27_v7  ;;  %v94_v14 = vpop.f32.mrb[3].mxu0 }
  0xdd   :  { %111 = vst.msk [vmem:[#allocation2] sm:$0xff] %vm19_vm0, %v106_v11  ;;  %v107_v15 = vadd.f32 %v94_v14, %v25_v10 }
  0xde   :  { %114 = vst.msk [vmem:[#allocation2 + $0x18] sm:$0xff] %vm19_vm0, %v109_v13 }
  0xdf   :  { %112 = vst.msk [vmem:[#allocation2 + $0x8] sm:$0xff] %vm19_vm0, %v107_v15 }
  0xe3   :  { %v120_v17 = vld [vmem:[#allocation2 + $0x10] sm:$0xff] }
  0xe4   :  { %v129_v19 = vmul.f32 %v174_v16, %v120_v17  ;;  %v118_v20 = vld [vmem:[#allocation2] sm:$0xff] }
  0xe5   :  { %v127_v21 = vmul.f32 %v174_v16, %v118_v20  ;;  %v121_v22 = vld [vmem:[#allocation2 + $0x18] sm:$0xff] }
  0xe6   :  { %v138_v23 = vadd.f32 %v175_v18, %v129_v19  ;;  %v130_v24 = vmul.f32 %v174_v16, %v121_v22  ;;  %v119_v25 = vld [vmem:[#allocation2 + $0x8] sm:$0xff] }
  0xe7   :  { %v136_v26 = vadd.f32 %v175_v18, %v127_v21  ;;  %v128_v27 = vmul.f32 %v174_v16, %v119_v25 }
  0xe8   :  { %v142_v28 = vmax.f32 %v138_v23, 0.0  ;;  %v139_v29 = vadd.f32 %v175_v18, %v130_v24 }
  0xe9   :  { %v140_v30 = vmax.f32 %v136_v26, 0.0  ;;  %v137_v31 = vadd.f32 %v175_v18, %v128_v27 }
  0xea   :  { %v182_v32 = vpack.c.bf16 %v142_v28, %v142_v28  ;;  %v143_v33 = vmax.f32 %v139_v29, 0.0 }
  0xeb   :  { %v180_v34 = vpack.c.bf16 %v140_v30, %v140_v30  ;;  %v141_v35 = vmax.f32 %v137_v31, 0.0 }
  0xec   :  { %163 = vst.msk [vmem:[%s256_s3 + $0x8] sm:$0xf] %vm160_vm2, %v182_v32  ;;  %v183_v36 = vpack.c.bf16 %v143_v33, %v143_v33 }
  0xed   :  { %161 = vst.msk [vmem:[%s256_s3] sm:$0xf] %vm160_vm2, %v180_v34  ;;  %v181_v37 = vpack.c.bf16 %v141_v35, %v141_v35 }
  0xee   :  { %164 = vst.msk [vmem:[%s256_s3 + $0xc] sm:$0xf] %vm160_vm2, %v183_v36 }
  0xef   :  { %162 = vst.msk [vmem:[%s256_s3 + $0x4] sm:$0xf] %vm160_vm2, %v181_v37 }

// kernel: _lambda_.35
= control target key start
LH: loop header
LB: loop body
LE: loop exit
PB: predicated region body
PF: predicated region fallthrough
CT: control target
= control target key end

     0   :  { %vm19_vm0 = vcmask 31744   ;;  %vm50_vm1 = vcmask 130048   ;;  %v197_v1 = vmov 0.0   ;;  %vm160_vm2 = vcmask 27648   ;;  %s253_s1 = inlined_call_operand.vmem [shape: bf16[16,4], index: 1, kind: input, shape index: {}]   ;;  %s254_s0 = inlined_call_operand.vmem [shape: bf16[32,16], index: 0, kind: input, shape index: {}]   ;;  %s255_s2 = inlined_call_operand.vmem [shape: f32[2,4], index: 2, kind: input, shape index: {}]   ;;  %s256_s3 = inlined_call_operand.vmem [shape: bf16[32,4], index: 3, kind: output, shape index: {}]  }
   0x1   :  { %v194_v0 = vld [vmem:[%s253_s1] sm:$0xff]   ;;  %22 = vst.msk [vmem:[#allocation2 + $0x10] sm:$0xff] %vm19_vm0, %v197_v1  ;;  %20 = vst.msk [vmem:[#allocation2] sm:$0xff] %vm19_vm0, %v197_v1  ;;  %v196_v3 = vld [vmem:[%s254_s0 + $0x8] sm:$0xff]  }
   0x2   :  { %21 = vst.msk [vmem:[#allocation2 + $0x8] sm:$0xff] %vm19_vm0, %v197_v1  ;;  %23 = vst.msk [vmem:[#allocation2 + $0x18] sm:$0xff] %vm19_vm0, %v197_v1  ;;  %v195_v2 = vld [vmem:[%s254_s0] sm:$0xff]   ;;  %187 = vmatprep.subr.bf16.mxu0 %v194_v0 }
   0x3   :  { %188 = vmatpush3.bf16.msra.mxu0 %v194_v0  ;;  %189 = vmatprep.mubr.msk.bf16.mxu0 %vm50_vm1, %v195_v2  ;;  %v174_v16 = vld [vmem:[%s255_s2] ss:$0 sm:$0xff]  ;;  %v175_v18 = vld [vmem:[%s255_s2 + $0x1] ss:$0 sm:$0xff] }
   0x6   :  { %190 = vmatmul.mubr.msk.bf16.vlgmr.msra.gmra.mrb[0].mxu0 %vm50_vm1, %v196_v3 }
   0x8   :  { %v26_v4 = vld [vmem:[#allocation2 + $0x10] sm:$0xff]  ;;  %v24_v5 = vld [vmem:[#allocation2] sm:$0xff] }
   0x9   :  { %v27_v7 = vld [vmem:[#allocation2 + $0x18] sm:$0xff]  ;;  %v25_v10 = vld [vmem:[#allocation2 + $0x8] sm:$0xff] }
  0xd9   :  { %v191_v6 = vpop.f32.mrb[0].mxu0 }
  0xda   :  { %v108_v8 = vadd.f32 %v191_v6, %v26_v4  ;;  %v91_v9 = vpop.f32.mrb[1].mxu0 }
  0xdb   :  { %v106_v11 = vadd.f32 %v91_v9, %v24_v5  ;;  %v192_v12 = vpop.f32.mrb[2].mxu0 }
  0xdc   :  { %113 = vst.msk [vmem:[#allocation2 + $0x10] sm:$0xff] %vm19_vm0, %v108_v8  ;;  %v109_v13 = vadd.f32 %v192_v12, %v27_v7  ;;  %v94_v14 = vpop.f32.mrb[3].mxu0 }
  0xdd   :  { %111 = vst.msk [vmem:[#allocation2] sm:$0xff] %vm19_vm0, %v106_v11  ;;  %v107_v15 = vadd.f32 %v94_v14, %v25_v10 }
  0xde   :  { %114 = vst.msk [vmem:[#allocation2 + $0x18] sm:$0xff] %vm19_vm0, %v109_v13 }
  0xdf   :  { %112 = vst.msk [vmem:[#allocation2 + $0x8] sm:$0xff] %vm19_vm0, %v107_v15 }
  0xe3   :  { %v120_v17 = vld [vmem:[#allocation2 + $0x10] sm:$0xff] }
  0xe4   :  { %v129_v19 = vmul.f32 %v174_v16, %v120_v17  ;;  %v118_v20 = vld [vmem:[#allocation2] sm:$0xff] }
  0xe5   :  { %v127_v21 = vmul.f32 %v174_v16, %v118_v20  ;;  %v121_v22 = vld [vmem:[#allocation2 + $0x18] sm:$0xff] }
  0xe6   :  { %v138_v23 = vadd.f32 %v175_v18, %v129_v19  ;;  %v130_v24 = vmul.f32 %v174_v16, %v121_v22  ;;  %v119_v25 = vld [vmem:[#allocation2 + $0x8] sm:$0xff] }
  0xe7   :  { %v136_v26 = vadd.f32 %v175_v18, %v127_v21  ;;  %v128_v27 = vmul.f32 %v174_v16, %v119_v25 }
  0xe8   :  { %v142_v28 = vmax.f32 %v138_v23, 0.0  ;;  %v139_v29 = vadd.f32 %v175_v18, %v130_v24 }
  0xe9   :  { %v140_v30 = vmax.f32 %v136_v26, 0.0  ;;  %v137_v31 = vadd.f32 %v175_v18, %v128_v27 }
  0xea   :  { %v182_v32 = vpack.c.bf16 %v142_v28, %v142_v28  ;;  %v143_v33 = vmax.f32 %v139_v29, 0.0 }
  0xeb   :  { %v180_v34 = vpack.c.bf16 %v140_v30, %v140_v30  ;;  %v141_v35 = vmax.f32 %v137_v31, 0.0 }
  0xec   :  { %163 = vst.msk [vmem:[%s256_s3 + $0x8] sm:$0xf] %vm160_vm2, %v182_v32  ;;  %v183_v36 = vpack.c.bf16 %v143_v33, %v143_v33 }
  0xed   :  { %161 = vst.msk [vmem:[%s256_s3] sm:$0xf] %vm160_vm2, %v180_v34  ;;  %v181_v37 = vpack.c.bf16 %v141_v35, %v141_v35 }
  0xee   :  { %164 = vst.msk [vmem:[%s256_s3 + $0xc] sm:$0xf] %vm160_vm2, %v183_v36 }
  0xef   :  { %162 = vst.msk [vmem:[%s256_s3 + $0x4] sm:$0xf] %vm160_vm2, %v181_v37 }

// kernel: _lambda_.36
= control target key start
LH: loop header
LB: loop body
LE: loop exit
PB: predicated region body
PF: predicated region fallthrough
CT: control target
= control target key end

     0   :  { %v172_v0 = vmov 0.0   ;;  %vm173_vm0 = vmmov 0   ;;  %vm19_vm1 = vcmask 31744   ;;  %vm55_vm2 = vcmask 1041408   ;;  %s222_s1 = inlined_call_operand.vmem [shape: bf16[36,4], index: 1, kind: input, shape index: {}]   ;;  %s223_s0 = inlined_call_operand.vmem [shape: bf16[16,36], index: 0, kind: input, shape index: {}]   ;;  %s224_s2 = inlined_call_operand.vmem [shape: f32[2,4], index: 2, kind: input, shape index: {}]   ;;  %s225_s3 = inlined_call_operand.vmem [shape: bf16[16,4], index: 3, kind: output, shape index: {}]  }
   0x1   :  { %156 = vmatprep.subr.bf16.mxu0 %v172_v0  ;;  %v168_v1 = vld [vmem:[%s222_s1] sm:$0xff]   ;;  %162 = vmatprep.mubr.msk.bf16.mxu0 %vm173_vm0, %v172_v0  ;;  %20 = vst.msk [vmem:[#allocation2] sm:$0xff] %vm19_vm1, %v172_v0  ;;  %21 = vst.msk [vmem:[#allocation2 + $0x8] sm:$0xff] %vm19_vm1, %v172_v0  ;;  %v169_v2 = vld [vmem:[%s222_s1 + $0x8] sm:$0xff]   ;;  %vm51_vm3 = vcmask 293888   ;;  %vm134_vm4 = vcmask 27648  }
   0x2   :  { %157 = vmatpush3.bf16.msra.mxu0 %v168_v1  ;;  %v170_v3 = vld [vmem:[%s222_s1 + $0x10] ss:$0 sps:$4 sm:$0x33]   ;;  %v171_v5 = vld [vmem:[%s223_s0] sm:$0xff]  }
   0x3   :  { %158 = vmatprep.subr.bf16.mxu0 %v172_v0  ;;  %v57_v4 = vsel %vm55_vm2, %v170_v3, 0  ;;  %v146_v14 = vld [vmem:[%s224_s2] ss:$0 sm:$0xff]  ;;  %v147_v16 = vld [vmem:[%s224_s2 + $0x1] ss:$0 sm:$0xff] }
   0x6   :  { %159 = vmatpush3.bf16.msra.mxu0 %v169_v2 }
   0x7   :  { %160 = vmatprep.subr.bf16.mxu0 %v172_v0 }
   0x8   :  { %v22_v6 = vld [vmem:[#allocation2] sm:$0xff]  ;;  %v23_v8 = vld [vmem:[#allocation2 + $0x8] sm:$0xff] }
   0xa   :  { %161 = vmatpush3.bf16.msra.mxu0 %v57_v4 }
   0xd   :  { %163 = vmatmul.mubr.msk.bf16.vlgmr.msra.gmra.mrb[0].mxu0 %vm51_vm3, %v171_v5 }
  0xe0   :  { %v93_v7 = vpop.f32.mrb[0].mxu0 }
  0xe1   :  { %v100_v9 = vadd.f32 %v93_v7, %v22_v6  ;;  %v164_v10 = vpop.f32.mrb[1].mxu0 }
  0xe2   :  { %v96_v11 = vpop.f32.mrb[2].mxu0 }
  0xe3   :  { %103 = vst.msk [vmem:[#allocation2] sm:$0xff] %vm19_vm1, %v100_v9  ;;  %v101_v12 = vadd.f32 %v96_v11, %v23_v8  ;;  %v165_v13 = vpop.f32.mrb[3].mxu0 }
  0xe5   :  { %104 = vst.msk [vmem:[#allocation2 + $0x8] sm:$0xff] %vm19_vm1, %v101_v12 }
  0xea   :  { %v108_v15 = vld [vmem:[#allocation2] sm:$0xff] }
  0xeb   :  { %v115_v17 = vmul.f32 %v146_v14, %v108_v15 }
  0xec   :  { %v109_v18 = vld [vmem:[#allocation2 + $0x8] sm:$0xff] }
  0xed   :  { %v122_v19 = vadd.f32 %v147_v16, %v115_v17  ;;  %v116_v20 = vmul.f32 %v146_v14, %v109_v18 }
  0xef   :  { %v124_v21 = vmax.f32 %v122_v19, 0.0  ;;  %v123_v22 = vadd.f32 %v147_v16, %v116_v20 }
  0xf1   :  { %v150_v23 = vpack.c.bf16 %v124_v21, %v124_v21  ;;  %v125_v24 = vmax.f32 %v123_v22, 0.0 }
  0xf3   :  { %135 = vst.msk [vmem:[%s225_s3] sm:$0xf] %vm134_vm4, %v150_v23  ;;  %v151_v25 = vpack.c.bf16 %v125_v24, %v125_v24 }
  0xf5   :  { %136 = vst.msk [vmem:[%s225_s3 + $0x4] sm:$0xf] %vm134_vm4, %v151_v25 }

// kernel: _lambda_.38
= control target key start
LH: loop header
LB: loop body
LE: loop exit
PB: predicated region body
PF: predicated region fallthrough
CT: control target
= control target key end

     0   :  { %vm22_vm0 = vcmask 130048   ;;  %vm39_vm1 = vcmask 1041408   ;;  %v154_v0 = vmov 0.0   ;;  %vm155_vm2 = vmmov 0   ;;  %s206_s1 = inlined_call_operand.vmem [shape: bf16[4,16], index: 1, kind: input, shape index: {}]   ;;  %s207_s0 = inlined_call_operand.vmem [shape: bf16[16,4], index: 0, kind: input, shape index: {}]   ;;  %s208_s2 = inlined_call_operand.vmem [shape: f32[2,16], index: 2, kind: input, shape index: {}]   ;;  %s209_s3 = inlined_call_operand.vmem [shape: bf16[16,16], index: 3, kind: input, shape index: {}]   ;;  %s210_s4 = inlined_call_operand.vmem [shape: bf16[16,16], index: 4, kind: output, shape index: {}]  }
   0x1   :  { %23 = vst.msk [vmem:[#allocation2] sm:$0xff] %vm22_vm0, %v154_v0  ;;  %24 = vst.msk [vmem:[#allocation2 + $0x8] sm:$0xff] %vm22_vm0, %v154_v0  ;;  %145 = vmatprep.subr.bf16.mxu0 %v154_v0  ;;  %v29_v1 = vld [vmem:[%s206_s1] sm:$0x3]  ;;  %147 = vmatprep.mubr.msk.bf16.mxu0 %vm155_vm2, %v154_v0  ;;  %vm35_vm3 = vcmask 31744   ;;  %vm124_vm4 = vcmask 125952  }
   0x2   :  { %v41_v2 = vsel %vm39_vm1, %v29_v1, 0  ;;  %v153_v3 = vld [vmem:[%s207_s0] sm:$0xff]  }
   0x3   :  { %146 = vmatpush3.bf16.msra.mxu0 %v41_v2  ;;  %v133_v12 = vld [vmem:[%s208_s2] ss:$0 sm:$0xff]  ;;  %v134_v15 = vld [vmem:[%s208_s2 + $0x1] ss:$0 sm:$0xff] }
   0x4   :  { %v140_v13 = vld [vmem:[%s209_s3] sm:$0xff]  }
   0x5   :  { %v141_v17 = vunpack.c.l.bf16 %v140_v13  ;;  %v142_v21 = vunpack.c.h.bf16 %v140_v13 }
   0x6   :  { %148 = vmatmul.mubr.msk.bf16.vlgmr.msra.gmra.mrb[0].mxu0 %vm35_vm3, %v153_v3 }
   0x8   :  { %v25_v4 = vld [vmem:[#allocation2] sm:$0xff]  ;;  %v26_v6 = vld [vmem:[#allocation2 + $0x8] sm:$0xff] }
  0xd9   :  { %v77_v5 = vpop.f32.mrb[0].mxu0 }
  0xda   :  { %v84_v7 = vadd.f32 %v77_v5, %v25_v4  ;;  %v149_v8 = vpop.f32.mrb[1].mxu0 }
  0xdb   :  { %v80_v9 = vpop.f32.mrb[2].mxu0 }
  0xdc   :  { %87 = vst.msk [vmem:[#allocation2] sm:$0xff] %vm22_vm0, %v84_v7  ;;  %v85_v10 = vadd.f32 %v80_v9, %v26_v6  ;;  %v150_v11 = vpop.f32.mrb[3].mxu0 }
  0xde   :  { %88 = vst.msk [vmem:[#allocation2 + $0x8] sm:$0xff] %vm22_vm0, %v85_v10 }
  0xe3   :  { %v92_v14 = vld [vmem:[#allocation2] sm:$0xff] }
  0xe4   :  { %v99_v16 = vmul.f32 %v133_v12, %v92_v14 }
  0xe5   :  { %v93_v18 = vld [vmem:[#allocation2 + $0x8] sm:$0xff] }
  0xe6   :  { %v106_v19 = vadd.f32 %v134_v15, %v99_v16  ;;  %v100_v20 = vmul.f32 %v133_v12, %v93_v18 }
  0xe8   :  { %v112_v22 = vadd.f32 %v141_v17, %v106_v19  ;;  %v107_v23 = vadd.f32 %v134_v15, %v100_v20 }
  0xea   :  { %v114_v24 = vmax.f32 %v112_v22, 0.0  ;;  %v113_v25 = vadd.f32 %v142_v21, %v107_v23 }
  0xec   :  { %v137_v26 = vpack.c.bf16 %v114_v24, %v114_v24  ;;  %v115_v27 = vmax.f32 %v113_v25, 0.0 }
  0xee   :  { %125 = vst.msk [vmem:[%s210_s4] sm:$0xf] %vm124_vm4, %v137_v26  ;;  %v138_v28 = vpack.c.bf16 %v115_v27, %v115_v27 }
  0xf0   :  { %126 = vst.msk [vmem:[%s210_s4 + $0x4] sm:$0xf] %vm124_vm4, %v138_v28 }

// kernel: _lambda_.26
= control target key start
LH: loop header
LB: loop body
LE: loop exit
PB: predicated region body
PF: predicated region fallthrough
CT: control target
= control target key end

     0   :  { %vm19_vm0 = vcmask 130048   ;;  %v192_v1 = vmov 0.0   ;;  %vm155_vm1 = vcmask 125952   ;;  %s250_s1 = inlined_call_operand.vmem [shape: bf16[16,16], index: 1, kind: input, shape index: {}]   ;;  %s251_s0 = inlined_call_operand.vmem [shape: bf16[32,16], index: 0, kind: input, shape index: {}]   ;;  %s252_s2 = inlined_call_operand.vmem [shape: f32[2,16], index: 2, kind: input, shape index: {}]   ;;  %s253_s3 = inlined_call_operand.vmem [shape: bf16[32,16], index: 3, kind: output, shape index: {}]  }
   0x1   :  { %v189_v0 = vld [vmem:[%s250_s1] sm:$0xff]   ;;  %22 = vst.msk [vmem:[#allocation2 + $0x10] sm:$0xff] %vm19_vm0, %v192_v1  ;;  %20 = vst.msk [vmem:[#allocation2] sm:$0xff] %vm19_vm0, %v192_v1  ;;  %v191_v3 = vld [vmem:[%s251_s0 + $0x8] sm:$0xff]  }
   0x2   :  { %21 = vst.msk [vmem:[#allocation2 + $0x8] sm:$0xff] %vm19_vm0, %v192_v1  ;;  %23 = vst.msk [vmem:[#allocation2 + $0x18] sm:$0xff] %vm19_vm0, %v192_v1  ;;  %v190_v2 = vld [vmem:[%s251_s0] sm:$0xff]   ;;  %182 = vmatprep.subr.bf16.mxu0 %v189_v0 }
   0x3   :  { %183 = vmatpush3.bf16.msra.mxu0 %v189_v0  ;;  %184 = vmatprep.mubr.msk.bf16.mxu0 %vm19_vm0, %v190_v2  ;;  %v169_v16 = vld [vmem:[%s252_s2] ss:$0 sm:$0xff]  ;;  %v170_v18 = vld [vmem:[%s252_s2 + $0x1] ss:$0 sm:$0xff] }
   0x6   :  { %185 = vmatmul.mubr.msk.bf16.vlgmr.msra.gmra.mrb[0].mxu0 %vm19_vm0, %v191_v3 }
   0x8   :  { %v26_v4 = vld [vmem:[#allocation2 + $0x10] sm:$0xff]  ;;  %v24_v5 = vld [vmem:[#allocation2] sm:$0xff] }
   0x9   :  { %v27_v7 = vld [vmem:[#allocation2 + $0x18] sm:$0xff]  ;;  %v25_v10 = vld [vmem:[#allocation2 + $0x8] sm:$0xff] }
  0xd9   :  { %v186_v6 = vpop.f32.mrb[0].mxu0 }
  0xda   :  { %v108_v8 = vadd.f32 %v186_v6, %v26_v4  ;;  %v91_v9 = vpop.f32.mrb[1].mxu0 }
  0xdb   :  { %v106_v11 = vadd.f32 %v91_v9, %v24_v5  ;;  %v187_v12 = vpop.f32.mrb[2].mxu0 }
  0xdc   :  { %112 = vst.msk [vmem:[#allocation2 + $0x10] sm:$0xff] %vm19_vm0, %v108_v8  ;;  %v109_v13 = vadd.f32 %v187_v12, %v27_v7  ;;  %v94_v14 = vpop.f32.mrb[3].mxu0 }
  0xdd   :  { %110 = vst.msk [vmem:[#allocation2] sm:$0xff] %vm19_vm0, %v106_v11  ;;  %v107_v15 = vadd.f32 %v94_v14, %v25_v10 }
  0xde   :  { %113 = vst.msk [vmem:[#allocation2 + $0x18] sm:$0xff] %vm19_vm0, %v109_v13 }
  0xdf   :  { %111 = vst.msk [vmem:[#allocation2 + $0x8] sm:$0xff] %vm19_vm0, %v107_v15 }
  0xe3   :  { %v119_v17 = vld [vmem:[#allocation2 + $0x10] sm:$0xff] }
  0xe4   :  { %v128_v19 = vmul.f32 %v169_v16, %v119_v17  ;;  %v117_v20 = vld [vmem:[#allocation2] sm:$0xff] }
  0xe5   :  { %v126_v21 = vmul.f32 %v169_v16, %v117_v20  ;;  %v120_v22 = vld [vmem:[#allocation2 + $0x18] sm:$0xff] }
  0xe6   :  { %v137_v23 = vadd.f32 %v170_v18, %v128_v19  ;;  %v129_v24 = vmul.f32 %v169_v16, %v120_v22  ;;  %v118_v25 = vld [vmem:[#allocation2 + $0x8] sm:$0xff] }
  0xe7   :  { %v135_v26 = vadd.f32 %v170_v18, %v126_v21  ;;  %v127_v27 = vmul.f32 %v169_v16, %v118_v25 }
  0xe8   :  { %v177_v28 = vpack.c.bf16 %v137_v23, %v137_v23  ;;  %v138_v29 = vadd.f32 %v170_v18, %v129_v24 }
  0xe9   :  { %v175_v30 = vpack.c.bf16 %v135_v26, %v135_v26  ;;  %v136_v31 = vadd.f32 %v170_v18, %v127_v27 }
  0xea   :  { %158 = vst.msk [vmem:[%s253_s3 + $0x8] sm:$0xf] %vm155_vm1, %v177_v28  ;;  %v178_v32 = vpack.c.bf16 %v138_v29, %v138_v29 }
  0xeb   :  { %156 = vst.msk [vmem:[%s253_s3] sm:$0xf] %vm155_vm1, %v175_v30  ;;  %v176_v33 = vpack.c.bf16 %v136_v31, %v136_v31 }
  0xec   :  { %159 = vst.msk [vmem:[%s253_s3 + $0xc] sm:$0xf] %vm155_vm1, %v178_v32 }
  0xed   :  { %157 = vst.msk [vmem:[%s253_s3 + $0x4] sm:$0xf] %vm155_vm1, %v176_v33 }

// kernel: _lambda_.40
= control target key start
LH: loop header
LB: loop body
LE: loop exit
PB: predicated region body
PF: predicated region fallthrough
CT: control target
= control target key end

     0   :  { %v198_v0 = vmov 0.0   ;;  %vm199_vm0 = vmmov 0   ;;  %vm19_vm1 = vcmask 64512   ;;  %vm71_vm2 = vcmask 1043456   ;;  %s254_s1 = inlined_call_operand.vmem [shape: bf16[72,8], index: 1, kind: input, shape index: {}]   ;;  %s255_s0 = inlined_call_operand.vmem [shape: bf16[16,72], index: 0, kind: input, shape index: {}]   ;;  %s256_s2 = inlined_call_operand.vmem [shape: f32[2,8], index: 2, kind: input, shape index: {}]   ;;  %s257_s3 = inlined_call_operand.vmem [shape: bf16[16,8], index: 3, kind: output, shape index: {}]  }
   0x1   :  { %176 = vmatprep.subr.bf16.mxu0 %v198_v0  ;;  %v192_v1 = vld [vmem:[%s254_s1] sm:$0xff]   ;;  %186 = vmatprep.mubr.msk.bf16.mxu0 %vm199_vm0, %v198_v0  ;;  %20 = vst.msk [vmem:[#allocation2] sm:$0xff] %vm19_vm1, %v198_v0  ;;  %21 = vst.msk [vmem:[#allocation2 + $0x8] sm:$0xff] %vm19_vm1, %v198_v0  ;;  %v193_v2 = vld [vmem:[%s254_s1 + $0x8] sm:$0xff]   ;;  %vm67_vm3 = vcmask 588800   ;;  %vm150_vm4 = vcmask 60416  }
   0x2   :  { %177 = vmatpush3.bf16.msra.mxu0 %v192_v1  ;;  %v194_v3 = vld [vmem:[%s254_s1 + $0x10] sm:$0xff]   ;;  %v195_v4 = vld [vmem:[%s254_s1 + $0x18] sm:$0xff]   ;;  %v196_v5 = vld [vmem:[%s254_s1 + $0x20] ss:$0 sps:$4 sm:$0xff]  }
   0x3   :  { %178 = vmatprep.subr.bf16.mxu0 %v198_v0  ;;  %v73_v6 = vsel %vm71_vm2, %v196_v5, 0  ;;  %v197_v7 = vld [vmem:[%s255_s0] sm:$0xff]  }
   0x4   :  { %v164_v16 = vld [vmem:[%s256_s2] ss:$0 sm:$0xff]  ;;  %v165_v18 = vld [vmem:[%s256_s2 + $0x1] ss:$0 sm:$0xff] }
   0x6   :  { %179 = vmatpush3.bf16.msra.mxu0 %v193_v2 }
   0x7   :  { %180 = vmatprep.subr.bf16.mxu0 %v198_v0 }
   0x8   :  { %v22_v8 = vld [vmem:[#allocation2] sm:$0xff]  ;;  %v23_v10 = vld [vmem:[#allocation2 + $0x8] sm:$0xff] }
   0xa   :  { %181 = vmatpush3.bf16.msra.mxu0 %v194_v3 }
   0xb   :  { %182 = vmatprep.subr.bf16.mxu0 %v198_v0 }
   0xe   :  { %183 = vmatpush3.bf16.msra.mxu0 %v195_v4 }
   0xf   :  { %184 = vmatprep.subr.bf16.mxu0 %v198_v0 }
  0x12   :  { %185 = vmatpush3.bf16.msra.mxu0 %v73_v6 }
  0x15   :  { %187 = vmatmul.mubr.msk.bf16.vlgmr.msra.gmra.mrb[0].mxu0 %vm67_vm3, %v197_v7 }
  0xe8   :  { %v109_v9 = vpop.f32.mrb[0].mxu0 }
  0xe9   :  { %v116_v11 = vadd.f32 %v109_v9, %v22_v8  ;;  %v188_v12 = vpop.f32.mrb[1].mxu0 }
  0xea   :  { %v112_v13 = vpop.f32.mrb[2].mxu0 }
  0xeb   :  { %119 = vst.msk [vmem:[#allocation2] sm:$0xff] %vm19_vm1, %v116_v11  ;;  %v117_v14 = vadd.f32 %v112_v13, %v23_v10  ;;  %v189_v15 = vpop.f32.mrb[3].mxu0 }
  0xed   :  { %120 = vst.msk [vmem:[#allocation2 + $0x8] sm:$0xff] %vm19_vm1, %v117_v14 }
  0xf2   :  { %v124_v17 = vld [vmem:[#allocation2] sm:$0xff] }
  0xf3   :  { %v131_v19 = vmul.f32 %v164_v16, %v124_v17 }
  0xf4   :  { %v125_v20 = vld [vmem:[#allocation2 + $0x8] sm:$0xff] }
  0xf5   :  { %v138_v21 = vadd.f32 %v165_v18, %v131_v19  ;;  %v132_v22 = vmul.f32 %v164_v16, %v125_v20 }
  0xf7   :  { %v140_v23 = vmax.f32 %v138_v21, 0.0  ;;  %v139_v24 = vadd.f32 %v165_v18, %v132_v22 }
  0xf9   :  { %v168_v25 = vpack.c.bf16 %v140_v23, %v140_v23  ;;  %v141_v26 = vmax.f32 %v139_v24, 0.0 }
  0xfb   :  { %151 = vst.msk [vmem:[%s257_s3] sm:$0xf] %vm150_vm4, %v168_v25  ;;  %v169_v27 = vpack.c.bf16 %v141_v26, %v141_v26 }
  0xfd   :  { %152 = vst.msk [vmem:[%s257_s3 + $0x4] sm:$0xf] %vm150_vm4, %v169_v27 }

// kernel: _lambda_.42
= control target key start
LH: loop header
LB: loop body
LE: loop exit
PB: predicated region body
PF: predicated region fallthrough
CT: control target
= control target key end

     0   :  { %vm22_vm0 = vcmask 261120   ;;  %vm39_vm1 = vcmask 1043456   ;;  %v154_v0 = vmov 0.0   ;;  %vm155_vm2 = vmmov 0   ;;  %s206_s1 = inlined_call_operand.vmem [shape: bf16[8,32], index: 1, kind: input, shape index: {}]   ;;  %s207_s0 = inlined_call_operand.vmem [shape: bf16[16,8], index: 0, kind: input, shape index: {}]   ;;  %s208_s2 = inlined_call_operand.vmem [shape: f32[2,32], index: 2, kind: input, shape index: {}]   ;;  %s209_s3 = inlined_call_operand.vmem [shape: bf16[16,32], index: 3, kind: input, shape index: {}]   ;;  %s210_s4 = inlined_call_operand.vmem [shape: bf16[16,32], index: 4, kind: output, shape index: {}]  }
   0x1   :  { %23 = vst.msk [vmem:[#allocation2] sm:$0xff] %vm22_vm0, %v154_v0  ;;  %24 = vst.msk [vmem:[#allocation2 + $0x8] sm:$0xff] %vm22_vm0, %v154_v0  ;;  %145 = vmatprep.subr.bf16.mxu0 %v154_v0  ;;  %v29_v1 = vld [vmem:[%s206_s1] sm:$0xf]  ;;  %147 = vmatprep.mubr.msk.bf16.mxu0 %vm155_vm2, %v154_v0  ;;  %vm35_vm3 = vcmask 64512   ;;  %vm124_vm4 = vcmask 257024  }
   0x2   :  { %v41_v2 = vsel %vm39_vm1, %v29_v1, 0  ;;  %v153_v3 = vld [vmem:[%s207_s0] sm:$0xff]  }
   0x3   :  { %146 = vmatpush3.bf16.msra.mxu0 %v41_v2  ;;  %v133_v12 = vld [vmem:[%s208_s2] ss:$0 sm:$0xff]  ;;  %v134_v15 = vld [vmem:[%s208_s2 + $0x1] ss:$0 sm:$0xff] }
   0x4   :  { %v140_v13 = vld [vmem:[%s209_s3] sm:$0xff]  }
   0x5   :  { %v141_v17 = vunpack.c.l.bf16 %v140_v13  ;;  %v142_v21 = vunpack.c.h.bf16 %v140_v13 }
   0x6   :  { %148 = vmatmul.mubr.msk.bf16.vlgmr.msra.gmra.mrb[0].mxu0 %vm35_vm3, %v153_v3 }
   0x8   :  { %v25_v4 = vld [vmem:[#allocation2] sm:$0xff]  ;;  %v26_v6 = vld [vmem:[#allocation2 + $0x8] sm:$0xff] }
  0xd9   :  { %v77_v5 = vpop.f32.mrb[0].mxu0 }
  0xda   :  { %v84_v7 = vadd.f32 %v77_v5, %v25_v4  ;;  %v149_v8 = vpop.f32.mrb[1].mxu0 }
  0xdb   :  { %v80_v9 = vpop.f32.mrb[2].mxu0 }
  0xdc   :  { %87 = vst.msk [vmem:[#allocation2] sm:$0xff] %vm22_vm0, %v84_v7  ;;  %v85_v10 = vadd.f32 %v80_v9, %v26_v6  ;;  %v150_v11 = vpop.f32.mrb[3].mxu0 }
  0xde   :  { %88 = vst.msk [vmem:[#allocation2 + $0x8] sm:$0xff] %vm22_vm0, %v85_v10 }
  0xe3   :  { %v92_v14 = vld [vmem:[#allocation2] sm:$0xff] }
  0xe4   :  { %v99_v16 = vmul.f32 %v133_v12, %v92_v14 }
  0xe5   :  { %v93_v18 = vld [vmem:[#allocation2 + $0x8] sm:$0xff] }
  0xe6   :  { %v106_v19 = vadd.f32 %v134_v15, %v99_v16  ;;  %v100_v20 = vmul.f32 %v133_v12, %v93_v18 }
  0xe8   :  { %v112_v22 = vadd.f32 %v141_v17, %v106_v19  ;;  %v107_v23 = vadd.f32 %v134_v15, %v100_v20 }
  0xea   :  { %v114_v24 = vmax.f32 %v112_v22, 0.0  ;;  %v113_v25 = vadd.f32 %v142_v21, %v107_v23 }
  0xec   :  { %v137_v26 = vpack.c.bf16 %v114_v24, %v114_v24  ;;  %v115_v27 = vmax.f32 %v113_v25, 0.0 }
  0xee   :  { %125 = vst.msk [vmem:[%s210_s4] sm:$0xf] %vm124_vm4, %v137_v26  ;;  %v138_v28 = vpack.c.bf16 %v115_v27, %v115_v27 }
  0xf0   :  { %126 = vst.msk [vmem:[%s210_s4 + $0x4] sm:$0xf] %vm124_vm4, %v138_v28 }

// kernel: _lambda_.43
= control target key start
LH: loop header
LB: loop body
LE: loop exit
PB: predicated region body
PF: predicated region fallthrough
CT: control target
= control target key end

     0   :  { %vm19_vm0 = vcmask 80896   ;;  %v144_v0 = vmov 0.0   ;;  %vm145_vm1 = vmmov 0   ;;  %vm47_vm2 = vcmask 261120   ;;  %s193_s1 = inlined_call_operand.vmem [shape: bf16[32,10], index: 1, kind: input, shape index: {}]   ;;  %s194_s0 = inlined_call_operand.vmem [shape: bf16[16,32], index: 0, kind: input, shape index: {}]   ;;  %s195_s2 = inlined_call_operand.vmem [shape: f32[2,10], index: 2, kind: input, shape index: {}]   ;;  %s196_s3 = inlined_call_operand.vmem [shape: f32[16,10], index: 3, kind: output, shape index: {}]  }
   0x1   :  { %131 = vmatprep.subr.bf16.mxu0 %v144_v0  ;;  %v141_v1 = vld [vmem:[%s193_s1] sm:$0xff]   ;;  %135 = vmatprep.mubr.msk.bf16.mxu0 %vm145_vm1, %v144_v0  ;;  %20 = vst.msk [vmem:[#allocation2] sm:$0xff] %vm19_vm0, %v144_v0  ;;  %21 = vst.msk [vmem:[#allocation2 + $0x8] sm:$0xff] %vm19_vm0, %v144_v0  ;;  %v142_v2 = vld [vmem:[%s193_s1 + $0x8] sm:$0xff]  }
   0x2   :  { %132 = vmatpush3.bf16.msra.mxu0 %v141_v1  ;;  %v143_v3 = vld [vmem:[%s194_s0] sm:$0xff]  }
   0x3   :  { %133 = vmatprep.subr.bf16.mxu0 %v144_v0  ;;  %v126_v12 = vld [vmem:[%s195_s2] ss:$0 sm:$0xff]  ;;  %v127_v14 = vld [vmem:[%s195_s2 + $0x1] ss:$0 sm:$0xff] }
   0x6   :  { %134 = vmatpush3.bf16.msra.mxu0 %v142_v2 }
   0x8   :  { %v22_v4 = vld [vmem:[#allocation2] sm:$0xff]  ;;  %v23_v6 = vld [vmem:[#allocation2 + $0x8] sm:$0xff] }
   0x9   :  { %136 = vmatmul.mubr.msk.bf16.vlgmr.msra.gmra.mrb[0].mxu0 %vm47_vm2, %v143_v3 }
  0xdc   :  { %v85_v5 = vpop.f32.mrb[0].mxu0 }
  0xdd   :  { %v92_v7 = vadd.f32 %v85_v5, %v22_v4  ;;  %v137_v8 = vpop.f32.mrb[1].mxu0 }
  0xde   :  { %v88_v9 = vpop.f32.mrb[2].mxu0 }
  0xdf   :  { %95 = vst.msk [vmem:[#allocation2] sm:$0xff] %vm19_vm0, %v92_v7  ;;  %v93_v10 = vadd.f32 %v88_v9, %v23_v6  ;;  %v138_v11 = vpop.f32.mrb[3].mxu0 }
  0xe1   :  { %96 = vst.msk [vmem:[#allocation2 + $0x8] sm:$0xff] %vm19_vm0, %v93_v10 }
  0xe6   :  { %v100_v13 = vld [vmem:[#allocation2] sm:$0xff] }
  0xe7   :  { %v107_v15 = vmul.f32 %v126_v12, %v100_v13 }
  0xe8   :  { %v101_v16 = vld [vmem:[#allocation2 + $0x8] sm:$0xff] }
  0xe9   :  { %v114_v17 = vadd.f32 %v127_v14, %v107_v15  ;;  %v108_v18 = vmul.f32 %v126_v12, %v101_v16 }
  0xeb   :  { %116 = vst.msk [vmem:[%s196_s3] sm:$0xff] %vm19_vm0, %v114_v17  ;;  %v115_v19 = vadd.f32 %v127_v14, %v108_v18 }
  0xed   :  { %117 = vst.msk [vmem:[%s196_s3 + $0x8] sm:$0xff] %vm19_vm0, %v115_v19 }

// kernel: _lambda_.27
= control target key start
LH: loop header
LB: loop body
LE: loop exit
PB: predicated region body
PF: predicated region fallthrough
CT: control target
= control target key end

     0   :  { %vm53_vm0 = vcmask 1041408   ;;  %vm46_vm1 = vcmask 31744   ;;  %vm22_vm2 = vcmask 130048   ;;  %v217_v1 = vmov 0.0   ;;  %s284_s1 = inlined_call_operand.vmem [shape: bf16[4,16], index: 1, kind: input, shape index: {}]   ;;  %s285_s0 = inlined_call_operand.vmem [shape: bf16[32,4], index: 0, kind: input, shape index: {}]   ;;  %s286_s2 = inlined_call_operand.vmem [shape: f32[2,16], index: 2, kind: input, shape index: {}]   ;;  %s287_s3 = inlined_call_operand.vmem [shape: bf16[32,16], index: 3, kind: input, shape index: {}]   ;;  %s288_s4 = inlined_call_operand.vmem [shape: bf16[32,16], index: 4, kind: output, shape index: {}]  }
   0x1   :  { %v35_v0 = vld [vmem:[%s284_s1] sm:$0x3]  ;;  %25 = vst.msk [vmem:[#allocation2 + $0x10] sm:$0xff] %vm22_vm2, %v217_v1  ;;  %23 = vst.msk [vmem:[#allocation2] sm:$0xff] %vm22_vm2, %v217_v1  ;;  %v216_v4 = vld [vmem:[%s285_s0 + $0x8] sm:$0xff]   ;;  %vm172_vm3 = vcmask 125952  }
   0x2   :  { %24 = vst.msk [vmem:[#allocation2 + $0x8] sm:$0xff] %vm22_vm2, %v217_v1  ;;  %26 = vst.msk [vmem:[#allocation2 + $0x18] sm:$0xff] %vm22_vm2, %v217_v1  ;;  %213 = vmatprep.subr.msk.bf16.mxu0 %vm53_vm0, %v35_v0  ;;  %v55_v2 = vsel %vm53_vm0, %v35_v0, 0  ;;  %v215_v3 = vld [vmem:[%s285_s0] sm:$0xff]   ;;  %v203_v18 = vld [vmem:[%s287_s3 + $0x8] sm:$0xff]  }
   0x3   :  { %208 = vmatpush3.bf16.msra.mxu0 %v55_v2  ;;  %209 = vmatprep.mubr.msk.bf16.mxu0 %vm46_vm1, %v215_v3  ;;  %v185_v17 = vld [vmem:[%s286_s2] ss:$0 sm:$0xff]  ;;  %v186_v21 = vld [vmem:[%s286_s2 + $0x1] ss:$0 sm:$0xff]  ;;  %v201_v23 = vunpack.c.l.bf16 %v203_v18  ;;  %v202_v30 = vunpack.c.h.bf16 %v203_v18 }
   0x4   :  { %v196_v19 = vld [vmem:[%s287_s3] sm:$0xff]  }
   0x5   :  { %v197_v26 = vunpack.c.l.bf16 %v196_v19  ;;  %v198_v34 = vunpack.c.h.bf16 %v196_v19 }
   0x6   :  { %210 = vmatmul.mubr.msk.bf16.vlgmr.msra.gmra.mrb[0].mxu0 %vm46_vm1, %v216_v4 }
   0x8   :  { %v29_v5 = vld [vmem:[#allocation2 + $0x10] sm:$0xff]  ;;  %v27_v6 = vld [vmem:[#allocation2] sm:$0xff] }
   0x9   :  { %v30_v8 = vld [vmem:[#allocation2 + $0x18] sm:$0xff]  ;;  %v28_v11 = vld [vmem:[#allocation2 + $0x8] sm:$0xff] }
  0xd9   :  { %v211_v7 = vpop.f32.mrb[0].mxu0 }
  0xda   :  { %v108_v9 = vadd.f32 %v211_v7, %v29_v5  ;;  %v91_v10 = vpop.f32.mrb[1].mxu0 }
  0xdb   :  { %v106_v12 = vadd.f32 %v91_v10, %v27_v6  ;;  %v212_v13 = vpop.f32.mrb[2].mxu0 }
  0xdc   :  { %113 = vst.msk [vmem:[#allocation2 + $0x10] sm:$0xff] %vm22_vm2, %v108_v9  ;;  %v109_v14 = vadd.f32 %v212_v13, %v30_v8  ;;  %v94_v15 = vpop.f32.mrb[3].mxu0 }
  0xdd   :  { %111 = vst.msk [vmem:[#allocation2] sm:$0xff] %vm22_vm2, %v106_v12  ;;  %v107_v16 = vadd.f32 %v94_v15, %v28_v11 }
  0xde   :  { %114 = vst.msk [vmem:[#allocation2 + $0x18] sm:$0xff] %vm22_vm2, %v109_v14 }
  0xdf   :  { %112 = vst.msk [vmem:[#allocation2 + $0x8] sm:$0xff] %vm22_vm2, %v107_v16 }
  0xe3   :  { %v120_v20 = vld [vmem:[#allocation2 + $0x10] sm:$0xff] }
  0xe4   :  { %v129_v22 = vmul.f32 %v185_v17, %v120_v20  ;;  %v118_v24 = vld [vmem:[#allocation2] sm:$0xff] }
  0xe5   :  { %v127_v25 = vmul.f32 %v185_v17, %v118_v24  ;;  %v121_v27 = vld [vmem:[#allocation2 + $0x18] sm:$0xff] }
  0xe6   :  { %v138_v28 = vadd.f32 %v186_v21, %v129_v22  ;;  %v130_v29 = vmul.f32 %v185_v17, %v121_v27  ;;  %v119_v31 = vld [vmem:[#allocation2 + $0x8] sm:$0xff] }
  0xe7   :  { %v136_v32 = vadd.f32 %v186_v21, %v127_v25  ;;  %v128_v33 = vmul.f32 %v185_v17, %v119_v31 }
  0xe8   :  { %v150_v35 = vadd.f32 %v201_v23, %v138_v28  ;;  %v139_v36 = vadd.f32 %v186_v21, %v130_v29 }
  0xe9   :  { %v148_v37 = vadd.f32 %v197_v26, %v136_v32  ;;  %v137_v38 = vadd.f32 %v186_v21, %v128_v33 }
  0xea   :  { %v154_v39 = vmax.f32 %v150_v35, 0.0  ;;  %v151_v40 = vadd.f32 %v202_v30, %v139_v36 }
  0xeb   :  { %v152_v41 = vmax.f32 %v148_v37, 0.0  ;;  %v149_v42 = vadd.f32 %v198_v34, %v137_v38 }
  0xec   :  { %v193_v43 = vpack.c.bf16 %v154_v39, %v154_v39  ;;  %v155_v44 = vmax.f32 %v151_v40, 0.0 }
  0xed   :  { %v191_v45 = vpack.c.bf16 %v152_v41, %v152_v41  ;;  %v153_v46 = vmax.f32 %v149_v42, 0.0 }
  0xee   :  { %175 = vst.msk [vmem:[%s288_s4 + $0x8] sm:$0xf] %vm172_vm3, %v193_v43  ;;  %v194_v47 = vpack.c.bf16 %v155_v44, %v155_v44 }
  0xef   :  { %173 = vst.msk [vmem:[%s288_s4] sm:$0xf] %vm172_vm3, %v191_v45  ;;  %v192_v48 = vpack.c.bf16 %v153_v46, %v153_v46 }
  0xf0   :  { %176 = vst.msk [vmem:[%s288_s4 + $0xc] sm:$0xf] %vm172_vm3, %v194_v47 }
  0xf1   :  { %174 = vst.msk [vmem:[%s288_s4 + $0x4] sm:$0xf] %vm172_vm3, %v192_v48 }

// kernel: _lambda_.25
= control target key start
LH: loop header
LB: loop body
LE: loop exit
PB: predicated region body
PF: predicated region fallthrough
CT: control target
= control target key end

     0   :  { %vm172_vm0 = vcmask 1041408   ;;  %vm88_vm1 = vcmask 31744   ;;  %v1876_v0 = vmov 0.0   ;;  %vm1877_vm2 = vmmov 0   ;;  %s2418_s2 = inlined_call_operand.vmem [shape: bf16[9,4,4], index: 2, kind: input, shape index: {}]   ;;  %s2419_s0 = inlined_call_operand.vmem [shape: bf16[96,4], index: 0, kind: input, shape index: {}, may-alias: {0,1}]   ;;  %s2420_s1 = inlined_call_operand.vmem [shape: bf16[96,4], index: 1, kind: input, shape index: {}, may-alias: {0,1}]   ;;  %s2421_s4 = inlined_call_operand.vmem [shape: f32[80,1], index: 4, kind: input, shape index: {}]   ;;  %s2422_s3 = inlined_call_operand.vmem [shape: f32[2,4], index: 3, kind: input, shape index: {}]   ;;  %s2423_s5 = inlined_call_operand.vmem [shape: bf16[80,4], index: 5, kind: output, shape index: {}]  }
   0x1   :  { %1603 = vmatprep.subr.bf16.mxu0 %v1876_v0  ;;  %1515 = vmatprep.subr.bf16.mxu1 %v1876_v0  ;;  %v1409_v1 = vld [vmem:[%s2418_s2 + $0x8] sm:$0x3]  ;;  %v1386_v2 = vld [vmem:[%s2418_s2 + $0x2] sm:$0x3]  ;;  %v1872_v7 = vld [vmem:[%s2419_s0 + $0x10] sm:$0xff]   ;;  %vm344_vm5 = vcmask 1046528  }
   0x2   :  { %v1918_v3 = vsel %vm172_vm0, %v1409_v1, 0  ;;  %v174_v4 = vsel %vm172_vm0, %v1386_v2, 0  ;;  %1517 = vmatprep.mubr.msk.bf16.mxu1 %vm1877_vm2, %v1876_v0  ;;  %1605 = vmatprep.mubr.msk.bf16.mxu0 %vm1877_vm2, %v1876_v0  ;;  %v1870_v5 = vld [vmem:[%s2419_s0] sm:$0xff]   ;;  %v1871_v6 = vld [vmem:[%s2419_s0 + $0x8] sm:$0xff]   ;;  %v1873_v8 = vld [vmem:[%s2419_s0 + $0x18] sm:$0xff]   ;;  %91 = vst.msk [vmem:[#allocation2 + $0x10] sm:$0xff] %vm88_vm1, %v1872_v7 }
   0x3   :  { %1604 = vmatpush3.bf16.msra.mxu0 %v1918_v3  ;;  %1516 = vmatpush3.bf16.msra.mxu1 %v174_v4  ;;  %89 = vst.msk [vmem:[#allocation2] sm:$0xff] %vm88_vm1, %v1870_v5  ;;  %90 = vst.msk [vmem:[#allocation2 + $0x8] sm:$0xff] %vm88_vm1, %v1871_v6  ;;  %v1874_v9 = vld [vmem:[%s2419_s0 + $0x20] sm:$0xff]   ;;  %v1875_v10 = vld [vmem:[%s2420_s1 + $0x28] sm:$0xff]   ;;  %vm112_vm3 = vsmask.f32 7424 }
   0x4   :  { %1625 = vmatprep.subr.bf16.mxu0 %v1876_v0  ;;  %1537 = vmatprep.subr.bf16.mxu1 %v1876_v0  ;;  %92 = vst.msk [vmem:[#allocation2 + $0x18] sm:$0xff] %vm88_vm1, %v1873_v8  ;;  %93 = vst.msk [vmem:[#allocation2 + $0x20] sm:$0xff] %vm88_vm1, %v1874_v9  ;;  %v1427_v11 = vld [vmem:[%s2418_s2 + $0xe] sm:$0x3]  ;;  %v1403_v13 = vld [vmem:[%s2418_s2 + $0x6] sm:$0x3] }
   0x5   :  { %v1955_v12 = vsel %vm172_vm0, %v1427_v11, 0  ;;  %102 = vst.msk [vmem:[#allocation2 + $0x28] sm:$0xff] %vm88_vm1, %v1875_v10  ;;  %v1962_v14 = vsel %vm172_vm0, %v1403_v13, 0  ;;  %v1433_v15 = vld [vmem:[%s2418_s2 + $0x10] sm:$0x3]  ;;  %vm463_vm6 = vcmask 1044480  }
   0x6   :  { %v1974_v19 = vsel %vm172_vm0, %v1433_v15, 0  ;;  %v1415_v33 = vld [vmem:[%s2418_s2 + $0xa] sm:$0x3]  ;;  %vm579_vm4 = vsmask.f32 4352  ;;  %vm719_vm8 = vcmask 1043456  }
   0x7   :  { %v108_v38 = vld [vmem:[%s2418_s2] sm:$0x3]  ;;  %v747_v43 = vsel %vm172_vm0, %v1415_v33, 0  ;;  %vm954_vm7 = vsmask.f32 1280  ;;  %vm1094_vm9 = vcmask 1040384  }
   0x8   :  { %v260_v46 = vsel %vm172_vm0, %v108_v38, 0  ;;  %vm1357_vm10 = vcmask 27648  }
   0x9   :  { %v1986_v26 = vld [vmem:[#allocation2 + $0x10] sm:$0xff] }
   0xa   :  { %v1967_v16 = vld [vmem:[#allocation2] sm:$0xff]  ;;  %v1969_v17 = vld [vmem:[#allocation2 + $0x8] sm:$0xff]  ;;  %v1995_v34 = vshll.u32 %v1986_v26, 16  ;;  %v1998_v35 = vshrl.u32 %v1986_v26, 16  ;;  %v842_v59 = vrot.slane %v1986_v26, 6  ;;  %v348_v63 = vrot.slane %v1986_v26, 1 }
   0xb   :  { %v1971_v18 = vld [vmem:[#allocation2] sm:$0xf8]  ;;  %v114_v20 = vshrl.u32 %v1967_v16, 16  ;;  %v116_v21 = vshll.u32 %v1967_v16, 16  ;;  %v1979_v22 = vshll.u32 %v1969_v17, 16  ;;  %v1982_v23 = vshrl.u32 %v1969_v17, 16 }
   0xc   :  { %v581_v24 = vshrl.u32 %v1971_v18, 16  ;;  %v584_v25 = vshll.u32 %v1971_v18, 16  ;;  %v592_v40 = vrot.slane %v1998_v35, 3  ;;  %v593_v41 = vrot.slane %v1995_v34, 4  ;;  %v2007_v44 = vld [vmem:[#allocation2 + $0x18] sm:$0xff]  ;;  %v2041_v4 = vld [vmem:[#allocation2 + $0x20] sm:$0xff] }
   0xd   :  { %v118_v27 = vrot.slane %v116_v21, 1  ;;  %v123_v28 = vrot.slane %v1979_v22, 1  ;;  %v588_v29 = vrot.slane %v1982_v23, 3  ;;  %v589_v30 = vrot.slane %v1979_v22, 4  ;;  %v2017_v49 = vld [vmem:[#allocation2] sm:$0xc0] }
   0xe   :  { %v583_v31 = vrot.slane %v581_v24, 3  ;;  %v586_v32 = vrot.slane %v584_v25, 4  ;;  %v131_v48 = vrot.slane %v1995_v34, 1  ;;  %v594_v50 = vor.u32 %v593_v41, %v592_v40  ;;  %v2090_v40 = vld [vmem:[#allocation2 + $0x28] sm:$0x1] }
   0xf   :  { %v119_v36 = vor.u32 %v118_v27, %v114_v20  ;;  %v590_v37 = vor.u32 %v589_v30, %v588_v29  ;;  %v127_v47 = vor.u32 %v1982_v23, %v123_v28  ;;  %v137_v51 = vshll.u32 %v2007_v44, 16 }
  0x10   :  { %v587_v39 = vor.u32 %v586_v32, %v583_v31  ;;  %v141_v52 = vshrl.u32 %v2007_v44, 16  ;;  %v839_v53 = vrot.slane %v2017_v49, 6  ;;  %v840_v58 = vrot.slane %v1969_v17, 6 }
  0x11   :  { %v124_v42 = vsel %vm112_vm3, %v119_v36, %v123_v28  ;;  %v132_v54 = vsel %vm112_vm3, %v127_v47, %v131_v48  ;;  %v595_v55 = vsel %vm579_vm4, %v590_v37, %v594_v50  ;;  %v597_v57 = vrot.slane %v137_v51, 4  ;;  %v714_v28 = vld [vmem:[#allocation2] sm:$0xf0] }
  0x12   :  { %1518 = vmatmul.mubr.msk.bf16.vlgmr.msra.gmra.mrb[0].mxu1 %vm88_vm1, %v124_v42  ;;  %v591_v45 = vsel %vm579_vm4, %v587_v39, %v590_v37  ;;  %v596_v56 = vrot.slane %v141_v52, 3  ;;  %v2032_v60 = vsel %vm172_vm0, %v839_v53, %v840_v58  ;;  %v346_v61 = vrot.slane %v1969_v17, 1 }
  0x13   :  { %1606 = vmatmul.mubr.msk.bf16.vlgmr.msra.gmra.mrb[0].mxu0 %vm88_vm1, %v591_v45  ;;  %1521 = vmatprep.mubr.msk.bf16.mxu1 %vm1877_vm2, %v1876_v0  ;;  %v844_v62 = vrot.slane %v2007_v44, 6  ;;  %v135_v1 = vor.u32 %v1998_v35, %v131_v48  ;;  %v139_v2 = vrot.slane %v137_v51, 1  ;;  %v2044_v5 = vsel %vm172_vm0, %v840_v58, %v842_v59  ;;  %v1421_v45 = vld [vmem:[%s2418_s2 + $0xc] sm:$0x3] }
  0x14   :  { %1626 = vmatpush3.bf16.msra.mxu0 %v747_v43  ;;  %1609 = vmatprep.mubr.msk.bf16.mxu0 %vm1877_vm2, %v1876_v0  ;;  %v2048_v6 = vor.u32 %v597_v57, %v596_v56  ;;  %v2060_v8 = vsel %vm344_vm5, %v346_v61, %v348_v63  ;;  %v145_v9 = vshll.u32 %v2041_v4, 16  ;;  %v963_v10 = vrot.slane %v1982_v23, 6 }
  0x15   :  { %1538 = vmatpush3.bf16.msra.mxu1 %v260_v46  ;;  %1647 = vmatprep.subr.bf16.mxu0 %v1876_v0  ;;  %v2053_v7 = vsel %vm172_vm0, %v842_v59, %v844_v62  ;;  %v964_v11 = vrot.slane %v1979_v22, 7  ;;  %v140_v13 = vsel %vm112_vm3, %v135_v1, %v139_v2  ;;  %v149_v15 = vshrl.u32 %v2041_v4, 16 }
  0x16   :  { %1559 = vmatprep.subr.bf16.mxu1 %v1876_v0  ;;  %v967_v20 = vrot.slane %v1998_v35, 6  ;;  %v968_v21 = vrot.slane %v1995_v34, 7  ;;  %v599_v24 = vsel %vm579_vm4, %v594_v50, %v2048_v6  ;;  %v464_v27 = vrot.slane %v1971_v18, 3 }
  0x17   :  { %v2071_v25 = vor.u32 %v964_v11, %v963_v10  ;;  %v465_v23 = vrot.slane %v1969_v17, 3  ;;  %v971_v29 = vrot.slane %v141_v52, 6  ;;  %v972_v30 = vrot.slane %v137_v51, 7 }
  0x18   :  { %v969_v22 = vor.u32 %v968_v21, %v967_v20  ;;  %v467_v32 = vrot.slane %v1986_v26, 3  ;;  %v975_v33 = vrot.slane %v149_v15, 6  ;;  %v976_v34 = vrot.slane %v145_v9, 7 }
  0x19   :  { %v2077_v31 = vsel %vm463_vm6, %v464_v27, %v465_v23  ;;  %v143_v18 = vor.u32 %v141_v52, %v139_v2  ;;  %v147_v35 = vrot.slane %v145_v9, 1  ;;  %v973_v37 = vor.u32 %v972_v30, %v971_v29 }
  0x1a   :  { %1522 = vmatmul.mubr.msk.bf16.gmra.mrb[4].mxu1 %vm88_vm1, %v132_v54  ;;  %v2085_v36 = vsel %vm954_vm7, %v2071_v25, %v969_v22  ;;  %v720_v38 = vrot.slane %v714_v28, 4  ;;  %v721_v39 = vrot.slane %v1969_v17, 4  ;;  %v2095_v41 = vsel %vm463_vm6, %v465_v23, %v467_v32 }
  0x1b   :  { %1610 = vmatmul.mubr.msk.bf16.gmra.mrb[4].mxu0 %vm88_vm1, %v595_v55  ;;  %1525 = vmatprep.mubr.msk.bf16.mxu1 %vm1877_vm2, %v1876_v0  ;;  %v2097_v42 = vor.u32 %v976_v34, %v975_v33  ;;  %v2100_v43 = vsel %vm954_vm7, %v969_v22, %v973_v37  ;;  %v148_v47 = vsel %vm112_vm3, %v143_v18, %v147_v35  ;;  %v153_v48 = vshll.u32 %v2090_v40, 16  ;;  %v1247_v34 = vld [vmem:[%s2421_s4] sm:$0xff]  ;;  %v1249_v18 = vld [vmem:[%s2421_s4 + $0x10] sm:$0xff] }
  0x1c   :  { %1613 = vmatprep.mubr.msk.bf16.mxu0 %vm1877_vm2, %v1876_v0  ;;  %v722_v50 = vsel %vm719_vm8, %v720_v38, %v721_v39  ;;  %v1096_v51 = vrot.slane %v1969_v17, 7  ;;  %v1098_v52 = vrot.slane %v1986_v26, 7  ;;  %v866_v53 = vsel %vm172_vm0, %v1421_v45, 0  ;;  %v1252_v45 = vld [vmem:[%s2421_s4 + $0x28] sm:$0xff] }
  0x1d   :  { %v2107_v46 = vsel %vm954_vm7, %v973_v37, %v2097_v42  ;;  %v151_v55 = vor.u32 %v149_v15, %v147_v35  ;;  %v155_v56 = vrot.slane %v153_v48, 1  ;;  %v723_v57 = vrot.slane %v1986_v26, 4  ;;  %v1248_v35 = vld [vmem:[%s2421_s4 + $0x8] sm:$0xff]  ;;  %v1250_v37 = vld [vmem:[%s2421_s4 + $0x18] sm:$0xff] }
  0x1e   :  { %v2121_v54 = vsel %vm1094_vm9, %v1096_v51, %v1098_v52  ;;  %v600_v58 = vrot.slane %v149_v15, 3  ;;  %v601_v59 = vrot.slane %v145_v9, 4  ;;  %v725_v9 = vrot.slane %v2007_v44, 4  ;;  %v1254_v48 = vld [vmem:[%s2421_s4 + $0x38] sm:$0xff] }
  0x1f   :  { %v156_v2 = vsel %vm112_vm3, %v151_v55, %v155_v56  ;;  %v724_v10 = vsel %vm719_vm8, %v721_v39, %v723_v57  ;;  %v727_v29 = vrot.slane %v2041_v4, 4  ;;  %v1878_v33 = vmov 0   ;;  %v1251_v39 = vld [vmem:[%s2421_s4 + $0x20] sm:$0xff]  ;;  %v833_v56 = vld [vmem:[#allocation2 + $0x28] sm:$0x3f] }
  0x20   :  { %v602_v1 = vor.u32 %v601_v59, %v600_v58  ;;  %v726_v27 = vsel %vm719_vm8, %v723_v57, %v725_v9  ;;  %1868 = vset.pattern.permute.xlu0 %v1878_v33  ;;  %1869 = vset.pattern.permute.xlu1 %v1878_v33  ;;  %v335_v55 = vld [vmem:[#allocation2] sm:$0xfe]  ;;  %v956_v57 = vshrl.u32 %v2017_v49, 16  ;;  %v959_v58 = vshll.u32 %v2017_v49, 16 }
  0x21   :  { %v728_v30 = vsel %vm719_vm8, %v725_v9, %v727_v29  ;;  %1259 = vperm.xlu0 %1868, %v1247_v34   ;;  %1269 = vperm.xlu1 %1869, %v1249_v18  }
  0x22   :  { %1526 = vmatmul.mubr.msk.bf16.gmra.mrb[8].mxu1 %vm88_vm1, %v140_v13  ;;  %v2134_v11 = vsel %vm579_vm4, %v2048_v6, %v602_v1  ;;  %v576_v13 = vld [vmem:[#allocation2 + $0x28] sm:$0xf]  ;;  %v1397_v6 = vld [vmem:[%s2418_s2 + $0x4] sm:$0x3]  ;;  %v958_v59 = vrot.slane %v956_v57, 6 }
  0x23   :  { %1614 = vmatmul.mubr.msk.bf16.gmra.mrb[8].mxu0 %vm88_vm1, %v599_v24  ;;  %1529 = vmatprep.mubr.msk.bf16.mxu1 %vm1877_vm2, %v1876_v0  ;;  %v605_v15 = vshrl.u32 %v576_v13, 16  ;;  %v608_v20 = vshll.u32 %v576_v13, 16  ;;  %v372_v28 = vsel %vm172_vm0, %v1397_v6, 0 }
  0x24   :  { %1627 = vmatprep.mubr.msk.bf16.mxu0 %vm1877_vm2, %v1876_v0 }
  0x25   :  { %v607_v21 = vrot.slane %v605_v15, 3  ;;  %v610_v24 = vrot.slane %v608_v20, 4  ;;  %1264 = vperm.xlu0 %1868, %v1248_v35   ;;  %1274 = vperm.xlu1 %1869, %v1250_v37  }
  0x27   :  { %v611_v23 = vor.u32 %v610_v24, %v607_v21 }
  0x29   :  { %v2151_v22 = vsel %vm579_vm4, %v602_v1, %v611_v23  ;;  %1279 = vperm.xlu0 %1868, %v1251_v39   ;;  %1284 = vperm.xlu1 %1869, %v1252_v45   ;;  %v961_v1 = vrot.slane %v959_v58, 7 }
  0x2a   :  { %1530 = vmatmul.mubr.msk.bf16.gmra.mrb[12].mxu1 %vm88_vm1, %v148_v47  ;;  %v1253_v47 = vld [vmem:[%s2421_s4 + $0x30] sm:$0xff] }
  0x2b   :  { %1628 = vmatmul.mubr.msk.bf16.vlgmr.msra.gmra.mrb[0].mxu0 %vm88_vm1, %v722_v50  ;;  %1533 = vmatprep.mubr.msk.bf16.mxu1 %vm1877_vm2, %v1876_v0  ;;  %v1255_v50 = vld [vmem:[%s2421_s4 + $0x40] sm:$0xff]  ;;  %v962_v49 = vor.u32 %v961_v1, %v958_v59 }
  0x2c   :  { %1648 = vmatpush3.bf16.msra.mxu0 %v866_v53  ;;  %1631 = vmatprep.mubr.msk.bf16.mxu0 %vm1877_vm2, %v1876_v0  ;;  %v1256_v53 = vld [vmem:[%s2421_s4 + $0x48] sm:$0xff] }
  0x2d   :  { %1669 = vmatprep.subr.bf16.mxu0 %v1876_v0  ;;  %1289 = vperm.xlu0 %1868, %v1253_v47  }
  0x2e   :  { %1294 = vperm.xlu1 %1869, %v1254_v48   ;;  %v2356_v48 = vld [vmem:[%s2422_s3 + $0x1] ss:$0 sm:$0xff] }
  0x31   :  { %1299 = vperm.xlu0 %1868, %v1255_v50  }
  0x32   :  { %1534 = vmatmul.mubr.msk.bf16.gmra.mrb[16].mxu1 %vm88_vm1, %v156_v2  ;;  %1304 = vperm.xlu1 %1869, %v1256_v53   ;;  %v352_v2 = vrot.slane %v2041_v4, 1 }
  0x33   :  { %1632 = vmatmul.mubr.msk.bf16.gmra.mrb[4].mxu0 %vm88_vm1, %v724_v10  ;;  %1539 = vmatprep.mubr.msk.bf16.mxu1 %vm1877_vm2, %v1876_v0 }
  0x34   :  { %1635 = vmatprep.mubr.msk.bf16.mxu0 %vm1877_vm2, %v1876_v0 }
  0x3a   :  { %1540 = vmatmul.mubr.msk.bf16.vlgmr.msra.gmra.mrb[0].mxu1 %vm88_vm1, %v1967_v16  ;;  %v729_v16 = vrot.slane %v576_v13, 4  ;;  %v354_v13 = vrot.slane %v2090_v40, 1 }
  0x3b   :  { %1636 = vmatmul.mubr.msk.bf16.gmra.mrb[8].mxu0 %vm88_vm1, %v726_v27  ;;  %1543 = vmatprep.mubr.msk.bf16.mxu1 %vm1877_vm2, %v1876_v0 }
  0x3c   :  { %1639 = vmatprep.mubr.msk.bf16.mxu0 %vm1877_vm2, %v1876_v0  ;;  %1560 = vmatpush3.bf16.msra.mxu1 %v372_v28  ;;  %v730_v38 = vsel %vm719_vm8, %v727_v29, %v729_v16  ;;  %v355_v9 = vsel %vm344_vm5, %v352_v2, %v354_v13 }
  0x3d   :  { %1581 = vmatprep.subr.bf16.mxu1 %v1876_v0 }
  0x42   :  { %1544 = vmatmul.mubr.msk.bf16.gmra.mrb[4].mxu1 %vm88_vm1, %v1969_v17  ;;  %v1100_v17 = vrot.slane %v2007_v44, 7 }
  0x43   :  { %1640 = vmatmul.mubr.msk.bf16.gmra.mrb[12].mxu0 %vm88_vm1, %v728_v30  ;;  %1547 = vmatprep.mubr.msk.bf16.mxu1 %vm1877_vm2, %v1876_v0 }
  0x44   :  { %1643 = vmatprep.mubr.msk.bf16.mxu0 %vm1877_vm2, %v1876_v0 }
  0x4a   :  { %1548 = vmatmul.mubr.msk.bf16.gmra.mrb[8].mxu1 %vm88_vm1, %v1986_v26 }
  0x4b   :  { %1644 = vmatmul.mubr.msk.bf16.gmra.mrb[16].mxu0 %vm88_vm1, %v730_v38  ;;  %1551 = vmatprep.mubr.msk.bf16.mxu1 %vm1877_vm2, %v1876_v0 }
  0x4c   :  { %1649 = vmatprep.mubr.msk.bf16.mxu0 %vm1877_vm2, %v1876_v0 }
  0x52   :  { %1552 = vmatmul.mubr.msk.bf16.gmra.mrb[12].mxu1 %vm88_vm1, %v2007_v44 }
  0x53   :  { %1650 = vmatmul.mubr.msk.bf16.vlgmr.msra.gmra.mrb[0].mxu0 %vm88_vm1, %v2032_v60  ;;  %1555 = vmatprep.mubr.msk.bf16.mxu1 %vm1877_vm2, %v1876_v0  ;;  %v345_v60 = vrot.slane %v335_v55, 1 }
  0x54   :  { %1670 = vmatpush3.bf16.msra.mxu0 %v1955_v12  ;;  %1653 = vmatprep.mubr.msk.bf16.mxu0 %vm1877_vm2, %v1876_v0 }
  0x55   :  { %1691 = vmatprep.subr.bf16.mxu0 %v1876_v0  ;;  %v347_v12 = vsel %vm344_vm5, %v345_v60, %v346_v61 }
  0x5a   :  { %1556 = vmatmul.mubr.msk.bf16.gmra.mrb[16].mxu1 %vm88_vm1, %v2041_v4 }
  0x5b   :  { %1654 = vmatmul.mubr.msk.bf16.gmra.mrb[4].mxu0 %vm88_vm1, %v2044_v5  ;;  %1561 = vmatprep.mubr.msk.bf16.mxu1 %vm1877_vm2, %v1876_v0  ;;  %v846_v5 = vrot.slane %v2041_v4, 6 }
  0x5c   :  { %1657 = vmatprep.mubr.msk.bf16.mxu0 %vm1877_vm2, %v1876_v0 }
  0x5d   :  { %v847_v61 = vsel %vm172_vm0, %v844_v62, %v846_v5 }
  0x62   :  { %1562 = vmatmul.mubr.msk.bf16.vlgmr.msra.gmra.mrb[0].mxu1 %vm88_vm1, %v347_v12 }
  0x63   :  { %1658 = vmatmul.mubr.msk.bf16.gmra.mrb[8].mxu0 %vm88_vm1, %v2053_v7  ;;  %1565 = vmatprep.mubr.msk.bf16.mxu1 %vm1877_vm2, %v1876_v0  ;;  %v350_v7 = vrot.slane %v2007_v44, 1 }
  0x64   :  { %1661 = vmatprep.mubr.msk.bf16.mxu0 %vm1877_vm2, %v1876_v0  ;;  %1582 = vmatpush3.bf16.msra.mxu1 %v1962_v14  ;;  %v848_v14 = vrot.slane %v833_v56, 6 }
  0x65   :  { %1713 = vmatprep.subr.bf16.mxu1 %v1876_v0  ;;  %v351_v62 = vsel %vm344_vm5, %v348_v63, %v350_v7  ;;  %v353_v10 = vsel %vm344_vm5, %v350_v7, %v352_v2  ;;  %v966_v63 = vsel %vm954_vm7, %v962_v49, %v2071_v25  ;;  %v951_v25 = vld [vmem:[#allocation2 + $0x28] sm:$0x7f] }
  0x66   :  { %v1104_v26 = vrot.slane %v951_v25, 7 }
  0x6a   :  { %1566 = vmatmul.mubr.msk.bf16.gmra.mrb[4].mxu1 %vm88_vm1, %v2060_v8  ;;  %v849_v8 = vsel %vm172_vm0, %v846_v5, %v848_v14 }
  0x6b   :  { %1662 = vmatmul.mubr.msk.bf16.gmra.mrb[12].mxu0 %vm88_vm1, %v847_v61  ;;  %1569 = vmatprep.mubr.msk.bf16.mxu1 %vm1877_vm2, %v1876_v0 }
  0x6c   :  { %1665 = vmatprep.mubr.msk.bf16.mxu0 %vm1877_vm2, %v1876_v0 }
  0x72   :  { %1570 = vmatmul.mubr.msk.bf16.gmra.mrb[8].mxu1 %vm88_vm1, %v351_v62 }
  0x73   :  { %1666 = vmatmul.mubr.msk.bf16.gmra.mrb[16].mxu0 %vm88_vm1, %v849_v8  ;;  %1573 = vmatprep.mubr.msk.bf16.mxu1 %vm1877_vm2, %v1876_v0 }
  0x74   :  { %1671 = vmatprep.mubr.msk.bf16.mxu0 %vm1877_vm2, %v1876_v0 }
  0x7a   :  { %1574 = vmatmul.mubr.msk.bf16.gmra.mrb[12].mxu1 %vm88_vm1, %v353_v10 }
  0x7b   :  { %1672 = vmatmul.mubr.msk.bf16.vlgmr.msra.gmra.mrb[0].mxu0 %vm88_vm1, %v966_v63  ;;  %1577 = vmatprep.mubr.msk.bf16.mxu1 %vm1877_vm2, %v1876_v0 }
  0x7c   :  { %1692 = vmatpush3.bf16.msra.mxu0 %v1974_v19  ;;  %1675 = vmatprep.mubr.msk.bf16.mxu0 %vm1877_vm2, %v1876_v0  ;;  %v980_v19 = vshrl.u32 %v951_v25, 16 }
  0x7e   :  { %v982_v40 = vrot.slane %v980_v19, 6 }
  0x82   :  { %1578 = vmatmul.mubr.msk.bf16.gmra.mrb[16].mxu1 %vm88_vm1, %v355_v9 }
  0x83   :  { %1676 = vmatmul.mubr.msk.bf16.gmra.mrb[4].mxu0 %vm88_vm1, %v2085_v36  ;;  %1583 = vmatprep.mubr.msk.bf16.mxu1 %vm1877_vm2, %v1876_v0  ;;  %v983_v36 = vshll.u32 %v951_v25, 16 }
  0x84   :  { %1679 = vmatprep.mubr.msk.bf16.mxu0 %vm1877_vm2, %v1876_v0 }
  0x85   :  { %v985_v15 = vrot.slane %v983_v36, 7 }
  0x8a   :  { %1584 = vmatmul.mubr.msk.bf16.vlgmr.msra.gmra.mrb[0].mxu1 %vm88_vm1, %v2077_v31  ;;  %v469_v31 = vrot.slane %v2007_v44, 3 }
  0x8b   :  { %1680 = vmatmul.mubr.msk.bf16.gmra.mrb[8].mxu0 %vm88_vm1, %v2100_v43  ;;  %1587 = vmatprep.mubr.msk.bf16.mxu1 %vm1877_vm2, %v1876_v0  ;;  %v986_v43 = vor.u32 %v985_v15, %v982_v40 }
  0x8c   :  { %1683 = vmatprep.mubr.msk.bf16.mxu0 %vm1877_vm2, %v1876_v0  ;;  %1714 = vmatpush3.bf16.msra.mxu1 %v1918_v3  ;;  %v470_v3 = vsel %vm463_vm6, %v467_v32, %v469_v31 }
  0x8d   :  { %v987_v20 = vsel %vm954_vm7, %v2097_v42, %v986_v43  ;;  %v458_v42 = vld [vmem:[#allocation2 + $0x28] sm:$0x7] }
  0x8e   :  { %v473_v24 = vrot.slane %v458_v42, 3 }
  0x92   :  { %1588 = vmatmul.mubr.msk.bf16.gmra.mrb[4].mxu1 %vm88_vm1, %v2095_v41  ;;  %v1089_v41 = vld [vmem:[#allocation2] sm:$0x80] }
  0x93   :  { %1684 = vmatmul.mubr.msk.bf16.gmra.mrb[12].mxu0 %vm88_vm1, %v2107_v46  ;;  %1591 = vmatprep.mubr.msk.bf16.mxu1 %vm1877_vm2, %v1876_v0  ;;  %v471_v46 = vrot.slane %v2041_v4, 3  ;;  %v1095_v6 = vrot.slane %v1089_v41, 7 }
  0x94   :  { %1687 = vmatprep.mubr.msk.bf16.mxu0 %vm1877_vm2, %v1876_v0 }
  0x95   :  { %v472_v21 = vsel %vm463_vm6, %v469_v31, %v471_v46  ;;  %v1097_v32 = vsel %vm1094_vm9, %v1095_v6, %v1096_v51  ;;  %v474_v27 = vsel %vm463_vm6, %v471_v46, %v473_v24  ;;  %v1101_v51 = vsel %vm1094_vm9, %v1098_v52, %v1100_v17 }
  0x9a   :  { %1592 = vmatmul.mubr.msk.bf16.gmra.mrb[8].mxu1 %vm88_vm1, %v470_v3 }
  0x9b   :  { %1688 = vmatmul.mubr.msk.bf16.gmra.mrb[16].mxu0 %vm88_vm1, %v987_v20  ;;  %1595 = vmatprep.mubr.msk.bf16.mxu1 %vm1877_vm2, %v1876_v0 }
  0x9c   :  { %1693 = vmatprep.mubr.msk.bf16.mxu0 %vm1877_vm2, %v1876_v0 }
  0xa0   :  { %v1260_v47 = vpop.permute.xlu0 %1259  ;;  %v1270_v62 = vpop.permute.xlu1 %1269 }
  0xa2   :  { %1596 = vmatmul.mubr.msk.bf16.gmra.mrb[12].mxu1 %vm88_vm1, %v472_v21 }
  0xa3   :  { %1694 = vmatmul.mubr.msk.bf16.vlgmr.msra.gmra.mrb[0].mxu0 %vm88_vm1, %v1097_v32  ;;  %1599 = vmatprep.mubr.msk.bf16.mxu1 %vm1877_vm2, %v1876_v0 }
  0xa4   :  { %1697 = vmatprep.mubr.msk.bf16.mxu0 %vm1877_vm2, %v1876_v0  ;;  %v1265_v7 = vpop.permute.xlu0 %1264  ;;  %v1275_v36 = vpop.permute.xlu1 %1274 }
  0xaa   :  { %1600 = vmatmul.mubr.msk.bf16.gmra.mrb[16].mxu1 %vm88_vm1, %v474_v27 }
  0xab   :  { %1698 = vmatmul.mubr.msk.bf16.gmra.mrb[4].mxu0 %vm88_vm1, %v2121_v54  ;;  %1617 = vmatprep.mubr.msk.bf16.mxu1 %vm1877_vm2, %v1876_v0  ;;  %v1102_v54 = vrot.slane %v2041_v4, 7 }
  0xac   :  { %1701 = vmatprep.mubr.msk.bf16.mxu0 %vm1877_vm2, %v1876_v0 }
  0xad   :  { %v1103_v23 = vsel %vm1094_vm9, %v1100_v17, %v1102_v54  ;;  %v1105_v44 = vsel %vm1094_vm9, %v1102_v54, %v1104_v26 }
  0xb2   :  { %1618 = vmatmul.mubr.msk.bf16.vlgmr.msra.gmra.mrb[12].mxu1 %vm88_vm1, %v2134_v11 }
  0xb3   :  { %1702 = vmatmul.mubr.msk.bf16.gmra.mrb[8].mxu0 %vm88_vm1, %v1101_v51  ;;  %1621 = vmatprep.mubr.msk.bf16.mxu1 %vm1877_vm2, %v1876_v0 }
  0xb4   :  { %1705 = vmatprep.mubr.msk.bf16.mxu0 %vm1877_vm2, %v1876_v0 }
  0xba   :  { %1622 = vmatmul.mubr.msk.bf16.gmra.mrb[16].mxu1 %vm88_vm1, %v2151_v22 }
  0xbb   :  { %1706 = vmatmul.mubr.msk.bf16.gmra.mrb[12].mxu0 %vm88_vm1, %v1103_v23 }
  0xbc   :  { %1709 = vmatprep.mubr.msk.bf16.mxu0 %vm1877_vm2, %v1876_v0  ;;  %v2351_v0 = vld [vmem:[%s2422_s3] ss:$0 sm:$0xff] }
  0xc3   :  { %1710 = vmatmul.mubr.msk.bf16.gmra.mrb[16].mxu0 %vm88_vm1, %v1105_v44  ;;  %v1285_v44 = vpop.permute.xlu1 %1284 }
 0x15d   :  { %v527_v52 = vpop.f32.mrb[0].mxu1 }
 0x15e   :  { %v1585_v11 = vpop.f32.mrb[1].mxu1 }
 0x15f   :  { %v530_v28 = vpop.f32.mrb[2].mxu1 }
 0x160   :  { %v1586_v29 = vpop.f32.mrb[3].mxu1 }
 0x165   :  { %v535_v4 = vpop.f32.mrb[4].mxu1 }
 0x166   :  { %v1589_v30 = vpop.f32.mrb[5].mxu1 }
 0x167   :  { %v538_v16 = vpop.f32.mrb[6].mxu1 }
 0x168   :  { %v1590_v33 = vpop.f32.mrb[7].mxu1 }
 0x16d   :  { %v543_v34 = vpop.f32.mrb[8].mxu1 }
 0x16e   :  { %v1593_v22 = vpop.f32.mrb[9].mxu1 }
 0x16f   :  { %v546_v18 = vpop.f32.mrb[10].mxu1 }
 0x170   :  { %v1594_v35 = vpop.f32.mrb[11].mxu1 }
 0x176   :  { %v1158_v37 = vpop.f32.mrb[0].mxu0 }
 0x177   :  { %v1715_v38 = vadd.f32 %v1158_v37, %v527_v52  ;;  %v1695_v39 = vpop.f32.mrb[1].mxu0  ;;  %v1280_v52 = vpop.permute.xlu0 %1279 }
 0x178   :  { %v1161_v45 = vpop.f32.mrb[2].mxu0 }
 0x179   :  { %v1212_v50 = vmul.f32 %v1715_v38, %v2351_v0  ;;  %v1716_v53 = vadd.f32 %v1161_v45, %v530_v28  ;;  %v1696_v55 = vpop.f32.mrb[3].mxu0 }
 0x17b   :  { %v1213_v60 = vmul.f32 %v1716_v53, %v2351_v0  ;;  %v1227_v12 = vadd.f32 %v2356_v48, %v1212_v50 }
 0x17d   :  { %v1237_v5 = vmax.f32 %v1227_v12, 0.0  ;;  %v1228_v61 = vadd.f32 %v2356_v48, %v1213_v60 }
 0x17e   :  { %v1166_v56 = vpop.f32.mrb[4].mxu0 }
 0x17f   :  { %v1307_v14 = vmul.f32 %v1260_v47, %v1237_v5  ;;  %v1717_v57 = vadd.f32 %v1166_v56, %v535_v4  ;;  %v1699_v58 = vpop.f32.mrb[5].mxu0  ;;  %v1238_v8 = vmax.f32 %v1228_v61, 0.0  ;;  %v1290_v61 = vpop.permute.xlu0 %1289 }
 0x180   :  { %v1169_v59 = vpop.f32.mrb[6].mxu0 }
 0x181   :  { %v1451_v1 = vpack.c.bf16 %v1307_v14, %v1307_v14  ;;  %v1214_v2 = vmul.f32 %v1717_v57, %v2351_v0  ;;  %v1308_v49 = vmul.f32 %v1265_v7, %v1238_v8  ;;  %v1718_v10 = vadd.f32 %v1169_v59, %v538_v16  ;;  %v1700_v63 = vpop.f32.mrb[7].mxu0 }
 0x183   :  { %1358 = vst.msk [vmem:[%s2423_s5] sm:$0xf] %vm1357_vm10, %v1451_v1  ;;  %v1229_v13 = vadd.f32 %v2356_v48, %v1214_v2  ;;  %v1452_v9 = vpack.c.bf16 %v1308_v49, %v1308_v49  ;;  %v1215_v25 = vmul.f32 %v1718_v10, %v2351_v0 }
 0x185   :  { %v1239_v19 = vmax.f32 %v1229_v13, 0.0  ;;  %1359 = vst.msk [vmem:[%s2423_s5 + $0x4] sm:$0xf] %vm1357_vm10, %v1452_v9  ;;  %v1230_v40 = vadd.f32 %v2356_v48, %v1215_v25  ;;  %v689_v15 = vpop.f32.mrb[12].mxu1 }
 0x186   :  { %v1174_v31 = vpop.f32.mrb[8].mxu0  ;;  %v1619_v43 = vpop.f32.mrb[13].mxu1 }
 0x187   :  { %v1309_v3 = vmul.f32 %v1270_v62, %v1239_v19  ;;  %v1240_v20 = vmax.f32 %v1230_v40, 0.0  ;;  %v1719_v41 = vadd.f32 %v1174_v31, %v543_v34  ;;  %v1703_v46 = vpop.f32.mrb[9].mxu0  ;;  %v692_v6 = vpop.f32.mrb[14].mxu1 }
 0x188   :  { %v1177_v21 = vpop.f32.mrb[10].mxu0  ;;  %v1620_v32 = vpop.f32.mrb[15].mxu1 }
 0x189   :  { %v1453_v42 = vpack.c.bf16 %v1309_v3, %v1309_v3  ;;  %v1310_v24 = vmul.f32 %v1275_v36, %v1240_v20  ;;  %v1216_v27 = vmul.f32 %v1719_v41, %v2351_v0  ;;  %v1720_v17 = vadd.f32 %v1177_v21, %v546_v18  ;;  %v1704_v51 = vpop.f32.mrb[11].mxu0  ;;  %v1295_v62 = vpop.permute.xlu1 %1294 }
 0x18a   :  { %v1300_v36 = vpop.permute.xlu0 %1299 }
 0x18b   :  { %1360 = vst.msk [vmem:[%s2423_s5 + $0x8] sm:$0xf] %vm1357_vm10, %v1453_v42  ;;  %v1454_v54 = vpack.c.bf16 %v1310_v24, %v1310_v24  ;;  %v1231_v23 = vadd.f32 %v2356_v48, %v1216_v27  ;;  %v1217_v26 = vmul.f32 %v1720_v17, %v2351_v0 }
 0x18d   :  { %1361 = vst.msk [vmem:[%s2423_s5 + $0xc] sm:$0xf] %vm1357_vm10, %v1454_v54  ;;  %v1241_v11 = vmax.f32 %v1231_v23, 0.0  ;;  %v1232_v28 = vadd.f32 %v2356_v48, %v1217_v26  ;;  %v697_v29 = vpop.f32.mrb[16].mxu1  ;;  %v1305_v31 = vpop.permute.xlu1 %1304 }
 0x18e   :  { %v1182_v4 = vpop.f32.mrb[12].mxu0  ;;  %v1623_v30 = vpop.f32.mrb[17].mxu1 }
 0x18f   :  { %v1311_v16 = vmul.f32 %v1280_v52, %v1241_v11  ;;  %v1242_v33 = vmax.f32 %v1232_v28, 0.0  ;;  %v1721_v34 = vadd.f32 %v1182_v4, %v689_v15  ;;  %v1707_v22 = vpop.f32.mrb[13].mxu0  ;;  %v700_v18 = vpop.f32.mrb[18].mxu1 }
 0x190   :  { %v1185_v35 = vpop.f32.mrb[14].mxu0  ;;  %v1624_v37 = vpop.f32.mrb[19].mxu1 }
 0x191   :  { %v1455_v38 = vpack.c.bf16 %v1311_v16, %v1311_v16  ;;  %v1312_v39 = vmul.f32 %v1285_v44, %v1242_v33  ;;  %v1218_v45 = vmul.f32 %v1721_v34, %v2351_v0  ;;  %v1722_v47 = vadd.f32 %v1185_v35, %v692_v6  ;;  %v1708_v50 = vpop.f32.mrb[15].mxu0 }
 0x193   :  { %1362 = vst.msk [vmem:[%s2423_s5 + $0x10] sm:$0xf] %vm1357_vm10, %v1455_v38  ;;  %v1456_v53 = vpack.c.bf16 %v1312_v39, %v1312_v39  ;;  %v1233_v55 = vadd.f32 %v2356_v48, %v1218_v45  ;;  %v1219_v60 = vmul.f32 %v1722_v47, %v2351_v0 }
 0x195   :  { %1363 = vst.msk [vmem:[%s2423_s5 + $0x14] sm:$0xf] %vm1357_vm10, %v1456_v53  ;;  %v1243_v12 = vmax.f32 %v1233_v55, 0.0  ;;  %v1234_v5 = vadd.f32 %v2356_v48, %v1219_v60 }
 0x196   :  { %v1190_v56 = vpop.f32.mrb[16].mxu0 }
 0x197   :  { %v1313_v7 = vmul.f32 %v1290_v61, %v1243_v12  ;;  %v1244_v14 = vmax.f32 %v1234_v5, 0.0  ;;  %v1723_v57 = vadd.f32 %v1190_v56, %v697_v29  ;;  %v1711_v58 = vpop.f32.mrb[17].mxu0 }
 0x198   :  { %v1193_v8 = vpop.f32.mrb[18].mxu0 }
 0x199   :  { %v1457_v59 = vpack.c.bf16 %v1313_v7, %v1313_v7  ;;  %v1314_v1 = vmul.f32 %v1295_v62, %v1244_v14  ;;  %v1220_v2 = vmul.f32 %v1723_v57, %v2351_v0  ;;  %v1724_v49 = vadd.f32 %v1193_v8, %v700_v18  ;;  %v1712_v10 = vpop.f32.mrb[19].mxu0 }
 0x19b   :  { %1364 = vst.msk [vmem:[%s2423_s5 + $0x18] sm:$0xf] %vm1357_vm10, %v1457_v59  ;;  %v1458_v63 = vpack.c.bf16 %v1314_v1, %v1314_v1  ;;  %v1235_v13 = vadd.f32 %v2356_v48, %v1220_v2  ;;  %v1221_v9 = vmul.f32 %v1724_v49, %v2351_v0 }
 0x19d   :  { %1365 = vst.msk [vmem:[%s2423_s5 + $0x1c] sm:$0xf] %vm1357_vm10, %v1458_v63  ;;  %v1245_v25 = vmax.f32 %v1235_v13, 0.0  ;;  %v1236_v19 = vadd.f32 %v2356_v48, %v1221_v9 }
 0x19f   :  { %v1315_v40 = vmul.f32 %v1300_v36, %v1245_v25  ;;  %v1246_v15 = vmax.f32 %v1236_v19, 0.0 }
 0x1a1   :  { %v1459_v43 = vpack.c.bf16 %v1315_v40, %v1315_v40  ;;  %v1316_v3 = vmul.f32 %v1305_v31, %v1246_v15 }
 0x1a3   :  { %1366 = vst.msk [vmem:[%s2423_s5 + $0x20] sm:$0xf] %vm1357_vm10, %v1459_v43  ;;  %v1460_v0 = vpack.c.bf16 %v1316_v3, %v1316_v3 }
 0x1a5   :  { %1367 = vst.msk [vmem:[%s2423_s5 + $0x24] sm:$0xf] %vm1357_vm10, %v1460_v0 }

</bundles_post_ra>
